<compile_context>
chip_gen: v6e
topology: v6e:2x2x1
jax: 0.10.0
libtpu: 0.0.40
codegen_flags: <defaults>
</compile_context>

<pallas_src>
import functools
import math

import jax
import jax.numpy as jnp
from jax import lax
from jax.experimental import pallas as pl
from jax.experimental.pallas import tpu as pltpu

INPUT_SIZE = 2
N_LAYERS = 6
HIDDEN = 32
LEAKY_SLOPE = 0.01


def _leaky_relu(x):
    # max-form: 2 VALU ops per vreg (mul + max) instead of cmp+mul+select.
    return jnp.maximum(x, LEAKY_SLOPE * x)


def rnvp_kernel(x_ref, w1_ref, b1_ref, w2_ref, b2_ref, w3_ref, b3_ref,
                out_ref, *, chunk):
    # x_ref  : (2, TILE_B)   batch on lanes, f32
    # out_ref: (3, TILE_B)   rows = [y0, y1, logdet], lane dense, f32
    # fused s+t params (weights-on-the-left orientation):
    #   w1 (L, 64, 1)  f32   b1 (L, 64, 1) f32
    #   w2 (L, 64, 64) bf16  b2 (L, 64, 1) f32   (block-diagonal: s block | t block)
    #   w3 (L, 2, 64)  bf16  b3 (L, 2, 1)  f32   (row 0 -> s head, row 1 -> t head)
    tile_b = x_ref.shape[-1]
    n_chunks = tile_b // chunk  # static

    def chunk_body(c, carry):
        off = pl.multiple_of(c * chunk, 128)
        xc = x_ref[:, pl.ds(off, chunk)]                       # (2, chunk) f32
        x0 = xc[0:1, :]                                        # (1, chunk)
        x1 = xc[1:2, :]
        logdet = jnp.zeros((1, chunk), jnp.float32)

        # Layer loop is a true data dependence chain -> static unroll is fine.
        for l in range(N_LAYERS):
            up = (l % 2 == 0)
            cond = x0 if up else x1                            # (1, chunk)
            # fused s/t MLP; batch stays on lanes throughout; per-layer static
            # ref slices so weights are not pinned in vregs across the kernel.
            h = w1_ref[l] * cond + b1_ref[l]                   # (64, chunk) f32
            h = _leaky_relu(h)
            h = jnp.dot(w2_ref[l], h.astype(jnp.bfloat16),
                        preferred_element_type=jnp.float32) + b2_ref[l]
            h = _leaky_relu(h)
            o = jnp.dot(w3_ref[l], h.astype(jnp.bfloat16),
                        preferred_element_type=jnp.float32) + b3_ref[l]  # (2, chunk)
            s = jnp.tanh(o[0:1, :])
            t = o[1:2, :]
            if up:
                x1 = x1 * jnp.exp(s) + t
            else:
                x0 = x0 * jnp.exp(s) + t
            logdet = logdet + s

        # Direct row stores (lane dense); no sublane concat materialization.
        out_ref[0:1, pl.ds(off, chunk)] = x0
        out_ref[1:2, pl.ds(off, chunk)] = x1
        out_ref[2:3, pl.ds(off, chunk)] = logdet
        return carry

    lax.fori_loop(0, n_chunks, chunk_body, 0)


def init_params(key, hidden=HIDDEN, n_layers=N_LAYERS):
    """Deterministic synthetic parameters, pre-fused: the s-net and t-net of every
    coupling layer packed into one MLP (block-diagonal W2, 2-row W3 head)."""
    ks = jax.random.split(key, 6)
    out_scale = 0.1 / math.sqrt(hidden)

    w1_s = jax.random.normal(ks[0], (n_layers, hidden, 1), jnp.float32)
    w1_t = jax.random.normal(ks[1], (n_layers, hidden, 1), jnp.float32)
    w1 = jnp.concatenate([w1_s, w1_t], axis=1)                       # (L, 64, 1)
    b1 = jnp.zeros((n_layers, 2 * hidden, 1), jnp.float32)

    w2_s = jax.random.normal(ks[2], (n_layers, hidden, hidden), jnp.float32) / math.sqrt(hidden)
    w2_t = jax.random.normal(ks[3], (n_layers, hidden, hidden), jnp.float32) / math.sqrt(hidden)
    z = jnp.zeros((n_layers, hidden, hidden), jnp.float32)
    w2 = jnp.concatenate([jnp.concatenate([w2_s, z], axis=2),
                          jnp.concatenate([z, w2_t], axis=2)], axis=1)  # (L, 64, 64)
    b2 = jnp.zeros((n_layers, 2 * hidden, 1), jnp.float32)

    w3_s = jax.random.normal(ks[4], (n_layers, 1, hidden), jnp.float32) * out_scale
    w3_t = jax.random.normal(ks[5], (n_layers, 1, hidden), jnp.float32) * out_scale
    z1 = jnp.zeros((n_layers, 1, hidden), jnp.float32)
    w3 = jnp.concatenate([jnp.concatenate([w3_s, z1], axis=2),
                          jnp.concatenate([z1, w3_t], axis=2)], axis=1)  # (L, 2, 64)
    b3 = jnp.zeros((n_layers, 2, 1), jnp.float32)

    return (w1, b1, w2, b2, w3, b3)


def rnvp_forward(x, params, tile_b=4096, chunk=256):
    """Fused 6-layer RNVP forward. Returns (y, sum_det_J) like the PyTorch module:
    y (N, 2), sum_det_J (N,)."""
    N, F = x.shape
    assert F == INPUT_SIZE
    assert chunk % 128 == 0

    # tile_b: multiple of chunk, no bigger than needed for this N; when N spans
    # >= 2 chunks, cap so the (parallel) grid has >= 2 steps for both v7x TCs.
    n_chunks_total = pl.cdiv(N, chunk)
    tile_b = max(chunk, min((tile_b // chunk) * chunk, n_chunks_total * chunk))
    if n_chunks_total >= 2:
        tile_b = min(tile_b, max(chunk, (n_chunks_total // 2) * chunk))
    n_pad = pl.cdiv(N, tile_b) * tile_b

    xT = jnp.transpose(x).astype(jnp.float32)               # (2, N): batch -> lanes
    if n_pad != N:
        xT = jnp.pad(xT, ((0, 0), (0, n_pad - N)))

    w1, b1, w2, b2, w3, b3 = params
    # Pre-cast matmul weights to bf16 on the host (VPU/EUP math stays f32).
    kernel_params = (w1, b1, w2.astype(jnp.bfloat16), b2,
                     w3.astype(jnp.bfloat16), b3)

    in_specs = [pl.BlockSpec((INPUT_SIZE, tile_b), lambda i: (0, i))] + [
        pl.BlockSpec(p.shape, lambda i: (0, 0, 0)) for p in kernel_params
    ]

    out = pl.pallas_call(
        functools.partial(rnvp_kernel, chunk=chunk),
        out_shape=jax.ShapeDtypeStruct((3, n_pad), jnp.float32),
        grid=(n_pad // tile_b,),
        in_specs=in_specs,
        out_specs=pl.BlockSpec((3, tile_b), lambda i: (0, i)),
        compiler_params=pltpu.CompilerParams(
            dimension_semantics=("parallel",)),
    )(xT, *kernel_params)

    y = jnp.transpose(out[:INPUT_SIZE, :N]).astype(x.dtype)  # (N, 2)
    sum_det_J = out[INPUT_SIZE, :N]                          # (N,)
    return y, sum_det_J


def rnvp_reference(x, params):
    """Pure-JAX f32 reference (standard batch-on-rows orientation)."""
    w1, b1, w2, b2, w3, b3 = params
    x = x.astype(jnp.float32)
    x0 = x[:, 0:1]
    x1 = x[:, 1:2]
    logdet = jnp.zeros((x.shape[0], 1), jnp.float32)
    for l in range(N_LAYERS):
        up = (l % 2 == 0)
        cond = x0 if up else x1
        h = cond @ w1[l].T + b1[l].T
        h = jnp.where(h > 0, h, LEAKY_SLOPE * h)
        h = h @ w2[l].T + b2[l].T
        h = jnp.where(h > 0, h, LEAKY_SLOPE * h)
        o = h @ w3[l].T + b3[l].T
        s = jnp.tanh(o[:, 0:1])
        t = o[:, 1:2]
        if up:
            x1 = x1 * jnp.exp(s) + t
        else:
            x0 = x0 * jnp.exp(s) + t
        logdet = logdet + s
    return jnp.concatenate([x0, x1], axis=1), logdet[:, 0]


if __name__ == "__main__":
    key = jax.random.PRNGKey(0)
    kx, kp = jax.random.split(key)
    N = 2048                      # >= 2 grid steps (keeps both v7x TCs fed)
    x = jax.random.normal(kx, (N, INPUT_SIZE), jnp.float32)
    params = init_params(kp)

    y, sum_det_J = rnvp_forward(x, params)
    jax.block_until_ready((y, sum_det_J))

    assert y.shape == (N, INPUT_SIZE)
    assert sum_det_J.shape == (N,)
    assert bool(jnp.all(jnp.isfinite(y))) and bool(jnp.all(jnp.isfinite(sum_det_J)))

    y_ref, ld_ref = rnvp_reference(x, params)
    # bf16 MXU operands -> validate against f32 reference with bf16-level tolerance.
    assert bool(jnp.allclose(y, y_ref, rtol=1e-2, atol=1e-2))
    assert bool(jnp.allclose(sum_det_J, ld_ref, rtol=1e-2, atol=1e-2))

    print("KERNEL_OK")
</pallas_src>

<mosaic_0001>
module attributes {stable_mosaic.version = 11 : i64} {
  func.func @rnvp_kernel(%arg0: i32, %arg1: memref<2x1024xf32, #tpu.memory_space<vmem>>, %arg2: memref<6x64x1xf32, #tpu.memory_space<vmem>>, %arg3: memref<6x64x1xf32, #tpu.memory_space<vmem>>, %arg4: memref<6x64x64xbf16, #tpu.memory_space<vmem>>, %arg5: memref<6x64x1xf32, #tpu.memory_space<vmem>>, %arg6: memref<6x2x64xbf16, #tpu.memory_space<vmem>>, %arg7: memref<6x2x1xf32, #tpu.memory_space<vmem>>, %arg8: memref<3x1024xf32, #tpu.memory_space<vmem>>) attributes {dimension_semantics = [#tpu.dimension_semantics<parallel>], iteration_bounds = array<i64: 2>, scalar_prefetch = 0 : i64, scratch_operands = 0 : i64, tpu.core_type = #tpu.core_type<tc>, window_params = [{transform_indices = @transform_0, window_bounds = array<i64: 2, 1024>}, {pipeline_mode = #tpu.pipeline_mode<synchronous>, transform_indices = @transform_1, window_bounds = array<i64: 6, 64, 1>}, {pipeline_mode = #tpu.pipeline_mode<synchronous>, transform_indices = @transform_2, window_bounds = array<i64: 6, 64, 1>}, {pipeline_mode = #tpu.pipeline_mode<synchronous>, transform_indices = @transform_3, window_bounds = array<i64: 6, 64, 64>}, {pipeline_mode = #tpu.pipeline_mode<synchronous>, transform_indices = @transform_4, window_bounds = array<i64: 6, 64, 1>}, {pipeline_mode = #tpu.pipeline_mode<synchronous>, transform_indices = @transform_5, window_bounds = array<i64: 6, 2, 64>}, {pipeline_mode = #tpu.pipeline_mode<synchronous>, transform_indices = @transform_6, window_bounds = array<i64: 6, 2, 1>}, {transform_indices = @transform_7, window_bounds = array<i64: 3, 1024>}]} {
    %c0_i32 = arith.constant 0 : i32
    %c4_i32 = arith.constant 4 : i32
    %0 = arith.addi %c0_i32, %c4_i32 : i32
    %c1_i32 = arith.constant 1 : i32
    scf.for %arg9 = %c0_i32 to %0 step %c1_i32  : i32 {
      %c256_i32 = arith.constant 256 : i32
      %1 = arith.muli %arg9, %c256_i32 : i32
      %2 = tpu.assume_multiple %1, 128 : i32
      %c0 = arith.constant 0 : index
      %3 = arith.index_cast %2 : i32 to index
      %4 = vector.load %arg1[%c0, %3] : memref<2x1024xf32, #tpu.memory_space<vmem>>, vector<2x256xf32>
      %5 = vector.extract_strided_slice %4 {offsets = [0, 0], sizes = [1, 256], strides = [1, 1]} : vector<2x256xf32> to vector<1x256xf32>
      %6 = vector.extract_strided_slice %4 {offsets = [1, 0], sizes = [1, 256], strides = [1, 1]} : vector<2x256xf32> to vector<1x256xf32>
      %cst = arith.constant 0.000000e+00 : f32
      %7 = vector.broadcast %cst : f32 to vector<1x256xf32>
      %c0_1 = arith.constant 0 : index
      %c0_2 = arith.constant 0 : index
      %c0_3 = arith.constant 0 : index
      %8 = vector.load %arg2[%c0_1, %c0_2, %c0_3] : memref<6x64x1xf32, #tpu.memory_space<vmem>>, vector<1x64x1xf32>
      %9 = vector.shape_cast %8 : vector<1x64x1xf32> to vector<64x1xf32>
      %10 = vector.broadcast %9 : vector<64x1xf32> to vector<64x256xf32>
      %11 = vector.broadcast %5 : vector<1x256xf32> to vector<64x256xf32>
      %12 = arith.mulf %10, %11 : vector<64x256xf32>
      %c0_4 = arith.constant 0 : index
      %c0_5 = arith.constant 0 : index
      %c0_6 = arith.constant 0 : index
      %13 = vector.load %arg3[%c0_4, %c0_5, %c0_6] : memref<6x64x1xf32, #tpu.memory_space<vmem>>, vector<1x64x1xf32>
      %14 = vector.shape_cast %13 : vector<1x64x1xf32> to vector<64x1xf32>
      %15 = vector.broadcast %14 : vector<64x1xf32> to vector<64x256xf32>
      %16 = arith.addf %12, %15 : vector<64x256xf32>
      %cst_7 = arith.constant 0.00999999977 : f32
      %17 = vector.broadcast %cst_7 : f32 to vector<64x256xf32>
      %18 = arith.mulf %17, %16 : vector<64x256xf32>
      %19 = arith.maximumf %16, %18 : vector<64x256xf32>
      %c0_8 = arith.constant 0 : index
      %c0_9 = arith.constant 0 : index
      %c0_10 = arith.constant 0 : index
      %20 = vector.load %arg4[%c0_8, %c0_9, %c0_10] : memref<6x64x64xbf16, #tpu.memory_space<vmem>>, vector<1x64x64xbf16>
      %21 = vector.shape_cast %20 : vector<1x64x64xbf16> to vector<64x64xbf16>
      %22 = arith.truncf %19 : vector<64x256xf32> to vector<64x256xbf16>
      %cst_11 = arith.constant dense<0.000000e+00> : vector<64x256xf32>
      %23 = tpu.matmul %21, %22, %cst_11 {dimension_numbers = #tpu.dot_dimension_numbers<[1], [0], [0], [1], [0, 0, 1, 1], [], []>} : vector<64x64xbf16>, vector<64x256xbf16>, vector<64x256xf32> -> vector<64x256xf32>
      %c0_12 = arith.constant 0 : index
      %c0_13 = arith.constant 0 : index
      %c0_14 = arith.constant 0 : index
      %24 = vector.load %arg5[%c0_12, %c0_13, %c0_14] : memref<6x64x1xf32, #tpu.memory_space<vmem>>, vector<1x64x1xf32>
      %25 = vector.shape_cast %24 : vector<1x64x1xf32> to vector<64x1xf32>
      %26 = vector.broadcast %25 : vector<64x1xf32> to vector<64x256xf32>
      %27 = arith.addf %23, %26 : vector<64x256xf32>
      %cst_15 = arith.constant 0.00999999977 : f32
      %28 = vector.broadcast %cst_15 : f32 to vector<64x256xf32>
      %29 = arith.mulf %28, %27 : vector<64x256xf32>
      %30 = arith.maximumf %27, %29 : vector<64x256xf32>
      %c0_16 = arith.constant 0 : index
      %c0_17 = arith.constant 0 : index
      %c0_18 = arith.constant 0 : index
      %31 = vector.load %arg6[%c0_16, %c0_17, %c0_18] : memref<6x2x64xbf16, #tpu.memory_space<vmem>>, vector<1x2x64xbf16>
      %32 = vector.shape_cast %31 : vector<1x2x64xbf16> to vector<2x64xbf16>
      %33 = arith.truncf %30 : vector<64x256xf32> to vector<64x256xbf16>
      %cst_19 = arith.constant dense<0.000000e+00> : vector<2x256xf32>
      %34 = tpu.matmul %32, %33, %cst_19 {dimension_numbers = #tpu.dot_dimension_numbers<[1], [0], [0], [1], [0, 0, 1, 1], [], []>} : vector<2x64xbf16>, vector<64x256xbf16>, vector<2x256xf32> -> vector<2x256xf32>
      %c0_20 = arith.constant 0 : index
      %c0_21 = arith.constant 0 : index
      %c0_22 = arith.constant 0 : index
      %35 = vector.load %arg7[%c0_20, %c0_21, %c0_22] : memref<6x2x1xf32, #tpu.memory_space<vmem>>, vector<1x2x1xf32>
      %36 = vector.shape_cast %35 : vector<1x2x1xf32> to vector<2x1xf32>
      %37 = vector.broadcast %36 : vector<2x1xf32> to vector<2x256xf32>
      %38 = arith.addf %34, %37 : vector<2x256xf32>
      %39 = vector.extract_strided_slice %38 {offsets = [0, 0], sizes = [1, 256], strides = [1, 1]} : vector<2x256xf32> to vector<1x256xf32>
      %40 = math.tanh %39 : vector<1x256xf32>
      %41 = vector.extract_strided_slice %38 {offsets = [1, 0], sizes = [1, 256], strides = [1, 1]} : vector<2x256xf32> to vector<1x256xf32>
      %42 = math.exp %40 : vector<1x256xf32>
      %43 = arith.mulf %6, %42 : vector<1x256xf32>
      %44 = arith.addf %43, %41 : vector<1x256xf32>
      %45 = arith.addf %7, %40 : vector<1x256xf32>
      %c1 = arith.constant 1 : index
      %c0_23 = arith.constant 0 : index
      %c0_24 = arith.constant 0 : index
      %46 = vector.load %arg2[%c1, %c0_23, %c0_24] : memref<6x64x1xf32, #tpu.memory_space<vmem>>, vector<1x64x1xf32>
      %47 = vector.shape_cast %46 : vector<1x64x1xf32> to vector<64x1xf32>
      %48 = vector.broadcast %47 : vector<64x1xf32> to vector<64x256xf32>
      %49 = vector.broadcast %44 : vector<1x256xf32> to vector<64x256xf32>
      %50 = arith.mulf %48, %49 : vector<64x256xf32>
      %c1_25 = arith.constant 1 : index
      %c0_26 = arith.constant 0 : index
      %c0_27 = arith.constant 0 : index
      %51 = vector.load %arg3[%c1_25, %c0_26, %c0_27] : memref<6x64x1xf32, #tpu.memory_space<vmem>>, vector<1x64x1xf32>
      %52 = vector.shape_cast %51 : vector<1x64x1xf32> to vector<64x1xf32>
      %53 = vector.broadcast %52 : vector<64x1xf32> to vector<64x256xf32>
      %54 = arith.addf %50, %53 : vector<64x256xf32>
      %cst_28 = arith.constant 0.00999999977 : f32
      %55 = vector.broadcast %cst_28 : f32 to vector<64x256xf32>
      %56 = arith.mulf %55, %54 : vector<64x256xf32>
      %57 = arith.maximumf %54, %56 : vector<64x256xf32>
      %c1_29 = arith.constant 1 : index
      %c0_30 = arith.constant 0 : index
      %c0_31 = arith.constant 0 : index
      %58 = vector.load %arg4[%c1_29, %c0_30, %c0_31] : memref<6x64x64xbf16, #tpu.memory_space<vmem>>, vector<1x64x64xbf16>
      %59 = vector.shape_cast %58 : vector<1x64x64xbf16> to vector<64x64xbf16>
      %60 = arith.truncf %57 : vector<64x256xf32> to vector<64x256xbf16>
      %cst_32 = arith.constant dense<0.000000e+00> : vector<64x256xf32>
      %61 = tpu.matmul %59, %60, %cst_32 {dimension_numbers = #tpu.dot_dimension_numbers<[1], [0], [0], [1], [0, 0, 1, 1], [], []>} : vector<64x64xbf16>, vector<64x256xbf16>, vector<64x256xf32> -> vector<64x256xf32>
      %c1_33 = arith.constant 1 : index
      %c0_34 = arith.constant 0 : index
      %c0_35 = arith.constant 0 : index
      %62 = vector.load %arg5[%c1_33, %c0_34, %c0_35] : memref<6x64x1xf32, #tpu.memory_space<vmem>>, vector<1x64x1xf32>
      %63 = vector.shape_cast %62 : vector<1x64x1xf32> to vector<64x1xf32>
      %64 = vector.broadcast %63 : vector<64x1xf32> to vector<64x256xf32>
      %65 = arith.addf %61, %64 : vector<64x256xf32>
      %cst_36 = arith.constant 0.00999999977 : f32
      %66 = vector.broadcast %cst_36 : f32 to vector<64x256xf32>
      %67 = arith.mulf %66, %65 : vector<64x256xf32>
      %68 = arith.maximumf %65, %67 : vector<64x256xf32>
      %c1_37 = arith.constant 1 : index
      %c0_38 = arith.constant 0 : index
      %c0_39 = arith.constant 0 : index
      %69 = vector.load %arg6[%c1_37, %c0_38, %c0_39] : memref<6x2x64xbf16, #tpu.memory_space<vmem>>, vector<1x2x64xbf16>
      %70 = vector.shape_cast %69 : vector<1x2x64xbf16> to vector<2x64xbf16>
      %71 = arith.truncf %68 : vector<64x256xf32> to vector<64x256xbf16>
      %cst_40 = arith.constant dense<0.000000e+00> : vector<2x256xf32>
      %72 = tpu.matmul %70, %71, %cst_40 {dimension_numbers = #tpu.dot_dimension_numbers<[1], [0], [0], [1], [0, 0, 1, 1], [], []>} : vector<2x64xbf16>, vector<64x256xbf16>, vector<2x256xf32> -> vector<2x256xf32>
      %c1_41 = arith.constant 1 : index
      %c0_42 = arith.constant 0 : index
      %c0_43 = arith.constant 0 : index
      %73 = vector.load %arg7[%c1_41, %c0_42, %c0_43] : memref<6x2x1xf32, #tpu.memory_space<vmem>>, vector<1x2x1xf32>
      %74 = vector.shape_cast %73 : vector<1x2x1xf32> to vector<2x1xf32>
      %75 = vector.broadcast %74 : vector<2x1xf32> to vector<2x256xf32>
      %76 = arith.addf %72, %75 : vector<2x256xf32>
      %77 = vector.extract_strided_slice %76 {offsets = [0, 0], sizes = [1, 256], strides = [1, 1]} : vector<2x256xf32> to vector<1x256xf32>
      %78 = math.tanh %77 : vector<1x256xf32>
      %79 = vector.extract_strided_slice %76 {offsets = [1, 0], sizes = [1, 256], strides = [1, 1]} : vector<2x256xf32> to vector<1x256xf32>
      %80 = math.exp %78 : vector<1x256xf32>
      %81 = arith.mulf %5, %80 : vector<1x256xf32>
      %82 = arith.addf %81, %79 : vector<1x256xf32>
      %83 = arith.addf %45, %78 : vector<1x256xf32>
      %c2 = arith.constant 2 : index
      %c0_44 = arith.constant 0 : index
      %c0_45 = arith.constant 0 : index
      %84 = vector.load %arg2[%c2, %c0_44, %c0_45] : memref<6x64x1xf32, #tpu.memory_space<vmem>>, vector<1x64x1xf32>
      %85 = vector.shape_cast %84 : vector<1x64x1xf32> to vector<64x1xf32>
      %86 = vector.broadcast %85 : vector<64x1xf32> to vector<64x256xf32>
      %87 = vector.broadcast %82 : vector<1x256xf32> to vector<64x256xf32>
      %88 = arith.mulf %86, %87 : vector<64x256xf32>
      %c2_46 = arith.constant 2 : index
      %c0_47 = arith.constant 0 : index
      %c0_48 = arith.constant 0 : index
      %89 = vector.load %arg3[%c2_46, %c0_47, %c0_48] : memref<6x64x1xf32, #tpu.memory_space<vmem>>, vector<1x64x1xf32>
      %90 = vector.shape_cast %89 : vector<1x64x1xf32> to vector<64x1xf32>
      %91 = vector.broadcast %90 : vector<64x1xf32> to vector<64x256xf32>
      %92 = arith.addf %88, %91 : vector<64x256xf32>
      %cst_49 = arith.constant 0.00999999977 : f32
      %93 = vector.broadcast %cst_49 : f32 to vector<64x256xf32>
      %94 = arith.mulf %93, %92 : vector<64x256xf32>
      %95 = arith.maximumf %92, %94 : vector<64x256xf32>
      %c2_50 = arith.constant 2 : index
      %c0_51 = arith.constant 0 : index
      %c0_52 = arith.constant 0 : index
      %96 = vector.load %arg4[%c2_50, %c0_51, %c0_52] : memref<6x64x64xbf16, #tpu.memory_space<vmem>>, vector<1x64x64xbf16>
      %97 = vector.shape_cast %96 : vector<1x64x64xbf16> to vector<64x64xbf16>
      %98 = arith.truncf %95 : vector<64x256xf32> to vector<64x256xbf16>
      %cst_53 = arith.constant dense<0.000000e+00> : vector<64x256xf32>
      %99 = tpu.matmul %97, %98, %cst_53 {dimension_numbers = #tpu.dot_dimension_numbers<[1], [0], [0], [1], [0, 0, 1, 1], [], []>} : vector<64x64xbf16>, vector<64x256xbf16>, vector<64x256xf32> -> vector<64x256xf32>
      %c2_54 = arith.constant 2 : index
      %c0_55 = arith.constant 0 : index
      %c0_56 = arith.constant 0 : index
      %100 = vector.load %arg5[%c2_54, %c0_55, %c0_56] : memref<6x64x1xf32, #tpu.memory_space<vmem>>, vector<1x64x1xf32>
      %101 = vector.shape_cast %100 : vector<1x64x1xf32> to vector<64x1xf32>
      %102 = vector.broadcast %101 : vector<64x1xf32> to vector<64x256xf32>
      %103 = arith.addf %99, %102 : vector<64x256xf32>
      %cst_57 = arith.constant 0.00999999977 : f32
      %104 = vector.broadcast %cst_57 : f32 to vector<64x256xf32>
      %105 = arith.mulf %104, %103 : vector<64x256xf32>
      %106 = arith.maximumf %103, %105 : vector<64x256xf32>
      %c2_58 = arith.constant 2 : index
      %c0_59 = arith.constant 0 : index
      %c0_60 = arith.constant 0 : index
      %107 = vector.load %arg6[%c2_58, %c0_59, %c0_60] : memref<6x2x64xbf16, #tpu.memory_space<vmem>>, vector<1x2x64xbf16>
      %108 = vector.shape_cast %107 : vector<1x2x64xbf16> to vector<2x64xbf16>
      %109 = arith.truncf %106 : vector<64x256xf32> to vector<64x256xbf16>
      %cst_61 = arith.constant dense<0.000000e+00> : vector<2x256xf32>
      %110 = tpu.matmul %108, %109, %cst_61 {dimension_numbers = #tpu.dot_dimension_numbers<[1], [0], [0], [1], [0, 0, 1, 1], [], []>} : vector<2x64xbf16>, vector<64x256xbf16>, vector<2x256xf32> -> vector<2x256xf32>
      %c2_62 = arith.constant 2 : index
      %c0_63 = arith.constant 0 : index
      %c0_64 = arith.constant 0 : index
      %111 = vector.load %arg7[%c2_62, %c0_63, %c0_64] : memref<6x2x1xf32, #tpu.memory_space<vmem>>, vector<1x2x1xf32>
      %112 = vector.shape_cast %111 : vector<1x2x1xf32> to vector<2x1xf32>
      %113 = vector.broadcast %112 : vector<2x1xf32> to vector<2x256xf32>
      %114 = arith.addf %110, %113 : vector<2x256xf32>
      %115 = vector.extract_strided_slice %114 {offsets = [0, 0], sizes = [1, 256], strides = [1, 1]} : vector<2x256xf32> to vector<1x256xf32>
      %116 = math.tanh %115 : vector<1x256xf32>
      %117 = vector.extract_strided_slice %114 {offsets = [1, 0], sizes = [1, 256], strides = [1, 1]} : vector<2x256xf32> to vector<1x256xf32>
      %118 = math.exp %116 : vector<1x256xf32>
      %119 = arith.mulf %44, %118 : vector<1x256xf32>
      %120 = arith.addf %119, %117 : vector<1x256xf32>
      %121 = arith.addf %83, %116 : vector<1x256xf32>
      %c3 = arith.constant 3 : index
      %c0_65 = arith.constant 0 : index
      %c0_66 = arith.constant 0 : index
      %122 = vector.load %arg2[%c3, %c0_65, %c0_66] : memref<6x64x1xf32, #tpu.memory_space<vmem>>, vector<1x64x1xf32>
      %123 = vector.shape_cast %122 : vector<1x64x1xf32> to vector<64x1xf32>
      %124 = vector.broadcast %123 : vector<64x1xf32> to vector<64x256xf32>
      %125 = vector.broadcast %120 : vector<1x256xf32> to vector<64x256xf32>
      %126 = arith.mulf %124, %125 : vector<64x256xf32>
      %c3_67 = arith.constant 3 : index
      %c0_68 = arith.constant 0 : index
      %c0_69 = arith.constant 0 : index
      %127 = vector.load %arg3[%c3_67, %c0_68, %c0_69] : memref<6x64x1xf32, #tpu.memory_space<vmem>>, vector<1x64x1xf32>
      %128 = vector.shape_cast %127 : vector<1x64x1xf32> to vector<64x1xf32>
      %129 = vector.broadcast %128 : vector<64x1xf32> to vector<64x256xf32>
      %130 = arith.addf %126, %129 : vector<64x256xf32>
      %cst_70 = arith.constant 0.00999999977 : f32
      %131 = vector.broadcast %cst_70 : f32 to vector<64x256xf32>
      %132 = arith.mulf %131, %130 : vector<64x256xf32>
      %133 = arith.maximumf %130, %132 : vector<64x256xf32>
      %c3_71 = arith.constant 3 : index
      %c0_72 = arith.constant 0 : index
      %c0_73 = arith.constant 0 : index
      %134 = vector.load %arg4[%c3_71, %c0_72, %c0_73] : memref<6x64x64xbf16, #tpu.memory_space<vmem>>, vector<1x64x64xbf16>
      %135 = vector.shape_cast %134 : vector<1x64x64xbf16> to vector<64x64xbf16>
      %136 = arith.truncf %133 : vector<64x256xf32> to vector<64x256xbf16>
      %cst_74 = arith.constant dense<0.000000e+00> : vector<64x256xf32>
      %137 = tpu.matmul %135, %136, %cst_74 {dimension_numbers = #tpu.dot_dimension_numbers<[1], [0], [0], [1], [0, 0, 1, 1], [], []>} : vector<64x64xbf16>, vector<64x256xbf16>, vector<64x256xf32> -> vector<64x256xf32>
      %c3_75 = arith.constant 3 : index
      %c0_76 = arith.constant 0 : index
      %c0_77 = arith.constant 0 : index
      %138 = vector.load %arg5[%c3_75, %c0_76, %c0_77] : memref<6x64x1xf32, #tpu.memory_space<vmem>>, vector<1x64x1xf32>
      %139 = vector.shape_cast %138 : vector<1x64x1xf32> to vector<64x1xf32>
      %140 = vector.broadcast %139 : vector<64x1xf32> to vector<64x256xf32>
      %141 = arith.addf %137, %140 : vector<64x256xf32>
      %cst_78 = arith.constant 0.00999999977 : f32
      %142 = vector.broadcast %cst_78 : f32 to vector<64x256xf32>
      %143 = arith.mulf %142, %141 : vector<64x256xf32>
      %144 = arith.maximumf %141, %143 : vector<64x256xf32>
      %c3_79 = arith.constant 3 : index
      %c0_80 = arith.constant 0 : index
      %c0_81 = arith.constant 0 : index
      %145 = vector.load %arg6[%c3_79, %c0_80, %c0_81] : memref<6x2x64xbf16, #tpu.memory_space<vmem>>, vector<1x2x64xbf16>
      %146 = vector.shape_cast %145 : vector<1x2x64xbf16> to vector<2x64xbf16>
      %147 = arith.truncf %144 : vector<64x256xf32> to vector<64x256xbf16>
      %cst_82 = arith.constant dense<0.000000e+00> : vector<2x256xf32>
      %148 = tpu.matmul %146, %147, %cst_82 {dimension_numbers = #tpu.dot_dimension_numbers<[1], [0], [0], [1], [0, 0, 1, 1], [], []>} : vector<2x64xbf16>, vector<64x256xbf16>, vector<2x256xf32> -> vector<2x256xf32>
      %c3_83 = arith.constant 3 : index
      %c0_84 = arith.constant 0 : index
      %c0_85 = arith.constant 0 : index
      %149 = vector.load %arg7[%c3_83, %c0_84, %c0_85] : memref<6x2x1xf32, #tpu.memory_space<vmem>>, vector<1x2x1xf32>
      %150 = vector.shape_cast %149 : vector<1x2x1xf32> to vector<2x1xf32>
      %151 = vector.broadcast %150 : vector<2x1xf32> to vector<2x256xf32>
      %152 = arith.addf %148, %151 : vector<2x256xf32>
      %153 = vector.extract_strided_slice %152 {offsets = [0, 0], sizes = [1, 256], strides = [1, 1]} : vector<2x256xf32> to vector<1x256xf32>
      %154 = math.tanh %153 : vector<1x256xf32>
      %155 = vector.extract_strided_slice %152 {offsets = [1, 0], sizes = [1, 256], strides = [1, 1]} : vector<2x256xf32> to vector<1x256xf32>
      %156 = math.exp %154 : vector<1x256xf32>
      %157 = arith.mulf %82, %156 : vector<1x256xf32>
      %158 = arith.addf %157, %155 : vector<1x256xf32>
      %159 = arith.addf %121, %154 : vector<1x256xf32>
      %c4 = arith.constant 4 : index
      %c0_86 = arith.constant 0 : index
      %c0_87 = arith.constant 0 : index
      %160 = vector.load %arg2[%c4, %c0_86, %c0_87] : memref<6x64x1xf32, #tpu.memory_space<vmem>>, vector<1x64x1xf32>
      %161 = vector.shape_cast %160 : vector<1x64x1xf32> to vector<64x1xf32>
      %162 = vector.broadcast %161 : vector<64x1xf32> to vector<64x256xf32>
      %163 = vector.broadcast %158 : vector<1x256xf32> to vector<64x256xf32>
      %164 = arith.mulf %162, %163 : vector<64x256xf32>
      %c4_88 = arith.constant 4 : index
      %c0_89 = arith.constant 0 : index
      %c0_90 = arith.constant 0 : index
      %165 = vector.load %arg3[%c4_88, %c0_89, %c0_90] : memref<6x64x1xf32, #tpu.memory_space<vmem>>, vector<1x64x1xf32>
      %166 = vector.shape_cast %165 : vector<1x64x1xf32> to vector<64x1xf32>
      %167 = vector.broadcast %166 : vector<64x1xf32> to vector<64x256xf32>
      %168 = arith.addf %164, %167 : vector<64x256xf32>
      %cst_91 = arith.constant 0.00999999977 : f32
      %169 = vector.broadcast %cst_91 : f32 to vector<64x256xf32>
      %170 = arith.mulf %169, %168 : vector<64x256xf32>
      %171 = arith.maximumf %168, %170 : vector<64x256xf32>
      %c4_92 = arith.constant 4 : index
      %c0_93 = arith.constant 0 : index
      %c0_94 = arith.constant 0 : index
      %172 = vector.load %arg4[%c4_92, %c0_93, %c0_94] : memref<6x64x64xbf16, #tpu.memory_space<vmem>>, vector<1x64x64xbf16>
      %173 = vector.shape_cast %172 : vector<1x64x64xbf16> to vector<64x64xbf16>
      %174 = arith.truncf %171 : vector<64x256xf32> to vector<64x256xbf16>
      %cst_95 = arith.constant dense<0.000000e+00> : vector<64x256xf32>
      %175 = tpu.matmul %173, %174, %cst_95 {dimension_numbers = #tpu.dot_dimension_numbers<[1], [0], [0], [1], [0, 0, 1, 1], [], []>} : vector<64x64xbf16>, vector<64x256xbf16>, vector<64x256xf32> -> vector<64x256xf32>
      %c4_96 = arith.constant 4 : index
      %c0_97 = arith.constant 0 : index
      %c0_98 = arith.constant 0 : index
      %176 = vector.load %arg5[%c4_96, %c0_97, %c0_98] : memref<6x64x1xf32, #tpu.memory_space<vmem>>, vector<1x64x1xf32>
      %177 = vector.shape_cast %176 : vector<1x64x1xf32> to vector<64x1xf32>
      %178 = vector.broadcast %177 : vector<64x1xf32> to vector<64x256xf32>
      %179 = arith.addf %175, %178 : vector<64x256xf32>
      %cst_99 = arith.constant 0.00999999977 : f32
      %180 = vector.broadcast %cst_99 : f32 to vector<64x256xf32>
      %181 = arith.mulf %180, %179 : vector<64x256xf32>
      %182 = arith.maximumf %179, %181 : vector<64x256xf32>
      %c4_100 = arith.constant 4 : index
      %c0_101 = arith.constant 0 : index
      %c0_102 = arith.constant 0 : index
      %183 = vector.load %arg6[%c4_100, %c0_101, %c0_102] : memref<6x2x64xbf16, #tpu.memory_space<vmem>>, vector<1x2x64xbf16>
      %184 = vector.shape_cast %183 : vector<1x2x64xbf16> to vector<2x64xbf16>
      %185 = arith.truncf %182 : vector<64x256xf32> to vector<64x256xbf16>
      %cst_103 = arith.constant dense<0.000000e+00> : vector<2x256xf32>
      %186 = tpu.matmul %184, %185, %cst_103 {dimension_numbers = #tpu.dot_dimension_numbers<[1], [0], [0], [1], [0, 0, 1, 1], [], []>} : vector<2x64xbf16>, vector<64x256xbf16>, vector<2x256xf32> -> vector<2x256xf32>
      %c4_104 = arith.constant 4 : index
      %c0_105 = arith.constant 0 : index
      %c0_106 = arith.constant 0 : index
      %187 = vector.load %arg7[%c4_104, %c0_105, %c0_106] : memref<6x2x1xf32, #tpu.memory_space<vmem>>, vector<1x2x1xf32>
      %188 = vector.shape_cast %187 : vector<1x2x1xf32> to vector<2x1xf32>
      %189 = vector.broadcast %188 : vector<2x1xf32> to vector<2x256xf32>
      %190 = arith.addf %186, %189 : vector<2x256xf32>
      %191 = vector.extract_strided_slice %190 {offsets = [0, 0], sizes = [1, 256], strides = [1, 1]} : vector<2x256xf32> to vector<1x256xf32>
      %192 = math.tanh %191 : vector<1x256xf32>
      %193 = vector.extract_strided_slice %190 {offsets = [1, 0], sizes = [1, 256], strides = [1, 1]} : vector<2x256xf32> to vector<1x256xf32>
      %194 = math.exp %192 : vector<1x256xf32>
      %195 = arith.mulf %120, %194 : vector<1x256xf32>
      %196 = arith.addf %195, %193 : vector<1x256xf32>
      %197 = arith.addf %159, %192 : vector<1x256xf32>
      %c5 = arith.constant 5 : index
      %c0_107 = arith.constant 0 : index
      %c0_108 = arith.constant 0 : index
      %198 = vector.load %arg2[%c5, %c0_107, %c0_108] : memref<6x64x1xf32, #tpu.memory_space<vmem>>, vector<1x64x1xf32>
      %199 = vector.shape_cast %198 : vector<1x64x1xf32> to vector<64x1xf32>
      %200 = vector.broadcast %199 : vector<64x1xf32> to vector<64x256xf32>
      %201 = vector.broadcast %196 : vector<1x256xf32> to vector<64x256xf32>
      %202 = arith.mulf %200, %201 : vector<64x256xf32>
      %c5_109 = arith.constant 5 : index
      %c0_110 = arith.constant 0 : index
      %c0_111 = arith.constant 0 : index
      %203 = vector.load %arg3[%c5_109, %c0_110, %c0_111] : memref<6x64x1xf32, #tpu.memory_space<vmem>>, vector<1x64x1xf32>
      %204 = vector.shape_cast %203 : vector<1x64x1xf32> to vector<64x1xf32>
      %205 = vector.broadcast %204 : vector<64x1xf32> to vector<64x256xf32>
      %206 = arith.addf %202, %205 : vector<64x256xf32>
      %cst_112 = arith.constant 0.00999999977 : f32
      %207 = vector.broadcast %cst_112 : f32 to vector<64x256xf32>
      %208 = arith.mulf %207, %206 : vector<64x256xf32>
      %209 = arith.maximumf %206, %208 : vector<64x256xf32>
      %c5_113 = arith.constant 5 : index
      %c0_114 = arith.constant 0 : index
      %c0_115 = arith.constant 0 : index
      %210 = vector.load %arg4[%c5_113, %c0_114, %c0_115] : memref<6x64x64xbf16, #tpu.memory_space<vmem>>, vector<1x64x64xbf16>
      %211 = vector.shape_cast %210 : vector<1x64x64xbf16> to vector<64x64xbf16>
      %212 = arith.truncf %209 : vector<64x256xf32> to vector<64x256xbf16>
      %cst_116 = arith.constant dense<0.000000e+00> : vector<64x256xf32>
      %213 = tpu.matmul %211, %212, %cst_116 {dimension_numbers = #tpu.dot_dimension_numbers<[1], [0], [0], [1], [0, 0, 1, 1], [], []>} : vector<64x64xbf16>, vector<64x256xbf16>, vector<64x256xf32> -> vector<64x256xf32>
      %c5_117 = arith.constant 5 : index
      %c0_118 = arith.constant 0 : index
      %c0_119 = arith.constant 0 : index
      %214 = vector.load %arg5[%c5_117, %c0_118, %c0_119] : memref<6x64x1xf32, #tpu.memory_space<vmem>>, vector<1x64x1xf32>
      %215 = vector.shape_cast %214 : vector<1x64x1xf32> to vector<64x1xf32>
      %216 = vector.broadcast %215 : vector<64x1xf32> to vector<64x256xf32>
      %217 = arith.addf %213, %216 : vector<64x256xf32>
      %cst_120 = arith.constant 0.00999999977 : f32
      %218 = vector.broadcast %cst_120 : f32 to vector<64x256xf32>
      %219 = arith.mulf %218, %217 : vector<64x256xf32>
      %220 = arith.maximumf %217, %219 : vector<64x256xf32>
      %c5_121 = arith.constant 5 : index
      %c0_122 = arith.constant 0 : index
      %c0_123 = arith.constant 0 : index
      %221 = vector.load %arg6[%c5_121, %c0_122, %c0_123] : memref<6x2x64xbf16, #tpu.memory_space<vmem>>, vector<1x2x64xbf16>
      %222 = vector.shape_cast %221 : vector<1x2x64xbf16> to vector<2x64xbf16>
      %223 = arith.truncf %220 : vector<64x256xf32> to vector<64x256xbf16>
      %cst_124 = arith.constant dense<0.000000e+00> : vector<2x256xf32>
      %224 = tpu.matmul %222, %223, %cst_124 {dimension_numbers = #tpu.dot_dimension_numbers<[1], [0], [0], [1], [0, 0, 1, 1], [], []>} : vector<2x64xbf16>, vector<64x256xbf16>, vector<2x256xf32> -> vector<2x256xf32>
      %c5_125 = arith.constant 5 : index
      %c0_126 = arith.constant 0 : index
      %c0_127 = arith.constant 0 : index
      %225 = vector.load %arg7[%c5_125, %c0_126, %c0_127] : memref<6x2x1xf32, #tpu.memory_space<vmem>>, vector<1x2x1xf32>
      %226 = vector.shape_cast %225 : vector<1x2x1xf32> to vector<2x1xf32>
      %227 = vector.broadcast %226 : vector<2x1xf32> to vector<2x256xf32>
      %228 = arith.addf %224, %227 : vector<2x256xf32>
      %229 = vector.extract_strided_slice %228 {offsets = [0, 0], sizes = [1, 256], strides = [1, 1]} : vector<2x256xf32> to vector<1x256xf32>
      %230 = math.tanh %229 : vector<1x256xf32>
      %231 = vector.extract_strided_slice %228 {offsets = [1, 0], sizes = [1, 256], strides = [1, 1]} : vector<2x256xf32> to vector<1x256xf32>
      %232 = math.exp %230 : vector<1x256xf32>
      %233 = arith.mulf %158, %232 : vector<1x256xf32>
      %234 = arith.addf %233, %231 : vector<1x256xf32>
      %235 = arith.addf %197, %230 : vector<1x256xf32>
      %c0_128 = arith.constant 0 : index
      %236 = arith.index_cast %2 : i32 to index
      %237 = vector.load %arg8[%c0_128, %236] : memref<3x1024xf32, #tpu.memory_space<vmem>>, vector<1x256xf32>
      tpu.vector_store %arg8[%c0_128, %236], %234 {strides = array<i32>} : memref<3x1024xf32, #tpu.memory_space<vmem>>, vector<1x256xf32>,
      %c1_129 = arith.constant 1 : index
      %238 = arith.index_cast %2 : i32 to index
      %239 = vector.load %arg8[%c1_129, %238] : memref<3x1024xf32, #tpu.memory_space<vmem>>, vector<1x256xf32>
      tpu.vector_store %arg8[%c1_129, %238], %196 {strides = array<i32>} : memref<3x1024xf32, #tpu.memory_space<vmem>>, vector<1x256xf32>,
      %c2_130 = arith.constant 2 : index
      %240 = arith.index_cast %2 : i32 to index
      %241 = vector.load %arg8[%c2_130, %240] : memref<3x1024xf32, #tpu.memory_space<vmem>>, vector<1x256xf32>
      tpu.vector_store %arg8[%c2_130, %240], %235 {strides = array<i32>} : memref<3x1024xf32, #tpu.memory_space<vmem>>, vector<1x256xf32>,
    }
    %c4_i32_0 = arith.constant 4 : i32
    return
  }
  func.func @transform_0(%arg0: i32) -> (i32, i32) {
    %c0_i32 = arith.constant 0 : i32
    %c0_i32_0 = arith.constant 0 : i32
    return %c0_i32, %arg0 : i32, i32
  }
  func.func @transform_1(%arg0: i32) -> (i32, i32, i32) {
    %c0_i32 = arith.constant 0 : i32
    %c0_i32_0 = arith.constant 0 : i32
    %c0_i32_1 = arith.constant 0 : i32
    %c0_i32_2 = arith.constant 0 : i32
    return %c0_i32, %c0_i32_0, %c0_i32_1 : i32, i32, i32
  }
  func.func @transform_2(%arg0: i32) -> (i32, i32, i32) {
    %c0_i32 = arith.constant 0 : i32
    %c0_i32_0 = arith.constant 0 : i32
    %c0_i32_1 = arith.constant 0 : i32
    %c0_i32_2 = arith.constant 0 : i32
    return %c0_i32, %c0_i32_0, %c0_i32_1 : i32, i32, i32
  }
  func.func @transform_3(%arg0: i32) -> (i32, i32, i32) {
    %c0_i32 = arith.constant 0 : i32
    %c0_i32_0 = arith.constant 0 : i32
    %c0_i32_1 = arith.constant 0 : i32
    %c0_i32_2 = arith.constant 0 : i32
    return %c0_i32, %c0_i32_0, %c0_i32_1 : i32, i32, i32
  }
  func.func @transform_4(%arg0: i32) -> (i32, i32, i32) {
    %c0_i32 = arith.constant 0 : i32
    %c0_i32_0 = arith.constant 0 : i32
    %c0_i32_1 = arith.constant 0 : i32
    %c0_i32_2 = arith.constant 0 : i32
    return %c0_i32, %c0_i32_0, %c0_i32_1 : i32, i32, i32
  }
  func.func @transform_5(%arg0: i32) -> (i32, i32, i32) {
    %c0_i32 = arith.constant 0 : i32
    %c0_i32_0 = arith.constant 0 : i32
    %c0_i32_1 = arith.constant 0 : i32
    %c0_i32_2 = arith.constant 0 : i32
    return %c0_i32, %c0_i32_0, %c0_i32_1 : i32, i32, i32
  }
  func.func @transform_6(%arg0: i32) -> (i32, i32, i32) {
    %c0_i32 = arith.constant 0 : i32
    %c0_i32_0 = arith.constant 0 : i32
    %c0_i32_1 = arith.constant 0 : i32
    %c0_i32_2 = arith.constant 0 : i32
    return %c0_i32, %c0_i32_0, %c0_i32_1 : i32, i32, i32
  }
  func.func @transform_7(%arg0: i32) -> (i32, i32) {
    %c0_i32 = arith.constant 0 : i32
    %c0_i32_0 = arith.constant 0 : i32
    return %c0_i32, %arg0 : i32, i32
  }
}

</mosaic_0001>

<bundles_post_ra>
// kernel: tpu_custom_call.1
= control target key start
LH: loop header
LB: loop body
LE: loop exit
PB: predicated region body
PF: predicated region fallthrough
CT: control target
= control target key end

     0   :  { %s4844_s0 = inlined_call_operand.vmem [shape: f32[2,2048], index: 0, kind: input, shape index: {}]   ;;  %s4845_s1 = inlined_call_operand.vmem [shape: f32[6,64,1], index: 1, kind: input, shape index: {}]   ;;  %s4846_s2 = inlined_call_operand.vmem [shape: f32[6,64,1], index: 2, kind: input, shape index: {}]   ;;  %s4847_s3 = inlined_call_operand.vmem [shape: bf16[6,64,64], index: 3, kind: input, shape index: {}]   ;;  %s4848_s4 = inlined_call_operand.vmem [shape: f32[6,64,1], index: 4, kind: input, shape index: {}]   ;;  %s4849_s5 = inlined_call_operand.vmem [shape: bf16[6,2,64], index: 5, kind: input, shape index: {}]   ;;  %s4850_s6 = inlined_call_operand.vmem [shape: f32[6,2,1], index: 6, kind: input, shape index: {}]   ;;  %s4851_s7 = inlined_call_operand.hbm [shape: f32[3,2048], index: 7, kind: output, shape index: {}]  }
   0x1   :  { %4869 = sst [smem:[#allocation16_spill]] %s4844_s0 }
   0x2   :  { %12 = vsyncpa [#allocation3], 0 }
   0x3   :  { %14 = vsyncpa [#allocation3 + $0x1], 0  ;;  %s3773_s24 = smov 0   ;;  %s3775_s25 = smov 0  }
   0x4   :  { %s3777_s26 = smov 0   ;;  %s3779_s27 = smov 0  }
   0x5 LB: > { %s3794_s28 = sadd.s32 4294967295, %s3723_s27   ;;  %s3289_s29 = sadd.s32 4294967294, %s3723_s27   ;;  %s3723_s27 = sphi %s3779_s27, %s4905_s27   ;;  %s3719_s26 = sphi %s3777_s26, %s4904_s26   ;;  %s3715_s25 = sphi %s3775_s25, %s4903_s25   ;;  %s3711_s24 = sphi %s3773_s24, %s4902_s24  }
   0x6   : > { %s3798_s30 = sadd.s32 1, %s3723_s27   ;;  %s179_s8 = sadd.s32 1, %s3719_s26 }
   0x7   : > { %s176_s9 = ssub.s32 %s3723_s27, %s3798_s30  ;;  %p189_p0 = scmp.ne.s32.totalorder %s3719_s26, %s3715_s25 }
   0x8   : > { %p177_p1 = scmp.eq.s32.totalorder %s176_s9, 0  ;;  %p190_p2 = scmp.eq.s32.totalorder %s3794_s28, 1 }
   0x9   : > { %p195_p3 = scmp.ne.s32.totalorder %s3715_s25, %s3711_s24  ;;  %p196_p4 = scmp.eq.s32.totalorder %s3289_s29, 1 }
   0xa   : > { %s3809_s10 = scalar_select %p177_p1, %s3719_s26, %s179_s8  }
   0xb   : > { %p3811_p5 = por %p190_p2, %p189_p0  ;;  %p3815_p6 = por %p196_p4, %p195_p3 }
   0xc   : > { %p3292_p7 = scmp.ge.s32.totalorder %s3723_s27, 1  ;;  %p241_p8 = scmp.lt.s32.totalorder %s3723_s27, 3 }
   0xe   : > { %p242_p9 = pnand %p3292_p7, %p241_p8 }
   0xf   : > { %s4852_s13 = sand.u32 (!%p242_p9), 1, %s3715_s25   ;;  %s3294_s14 = sshll.u32 (!%p242_p9), %s3794_s28, 3 }
  0x10   : > { %245 = sbr.rel (%p242_p9) target bundleno = 3259 (0xcbb), region = 48  ;;  %s3825_s15 = sshll.u32 (!%p242_p9), %s4852_s13, 5 }
  0x11   : > { %p274_p10 = scmp.lt.s32.totalorder (!%p242_p9), %s3294_s14, 15  ;;  %s4872_s0 = sld [smem:[#allocation16_spill]] (!%p242_p9) }
  0x12   : > { %s3833_s21 = smov (!%p242_p9), 0  }
  0x15   : > { %s4907_s14 = smov (!%p274_p10, %s3294_s14), 15 }
  0x16   : > { %s3295_s16 = sshll.u32 %s4907_s14, 1 }
  0x17   : > { %s3830_s19 = scalar_lea.vmem %s4872_s0, %s3295_s16 }
  0x18 LB: >> { %v382_v0 = vld [vmem:[%s4846_s2 + $0x30] sm:$0xff]  ;;  %v4854_v2 = vmov 0   ;;  %v383_v3 = vld [vmem:[%s4846_s2 + $0x38] sm:$0xff]  ;;  %v298_v5 = vld [vmem:[%s4845_s1 + $0x28] sm:$0xff]  ;;  %s3296_s18 = sshll.u32 %s3727_s21, 8  ;;  %v4853_v55 = vlaneseq  ;;  %vm556_vm0 = vcmask 523264   ;;  %s3727_s21 = sphi %s3833_s21, %s286_s21  }
  0x19   : >> { %v299_v1 = vld [vmem:[%s4845_s1 + $0x30] sm:$0xff]  ;;  %3585 = vset.pattern.permute.xlu1 %v4854_v2  ;;  %3584 = vset.pattern.permute.xlu0 %v4854_v2  ;;  %v300_v4 = vld [vmem:[%s4845_s1 + $0x38] sm:$0xff]  ;;  %v297_v6 = vld [vmem:[%s4845_s1 + $0x20] sm:$0xff]  ;;  %s4005_s22 = sshra.s32 %s3296_s18, 7  ;;  %s286_s21 = sadd.s32 1, %s3727_s21  }
  0x1a   : >> { %416 = vperm.xlu1 %3585, %v382_v0   ;;  %333 = vperm.xlu0 %3584, %v299_v1   ;;  %v381_v7 = vld [vmem:[%s4846_s2 + $0x28] sm:$0xff]  ;;  %v380_v8 = vld [vmem:[%s4846_s2 + $0x20] sm:$0xff]  ;;  %v296_v9 = vld [vmem:[%s4845_s1 + $0x18] sm:$0xff]  ;;  %s3297_s14 = sshll.u32 %s4005_s22, 1  ;;  %v4015_v58 = vshrl.u32 %v4853_v55, 7  ;;  %s3525_s20 = sshll.u32 %s4005_s22, 2 }
  0x1b   : >> { %601 = vmatprep.mubr.bf16.mxu0 %v4854_v2  ;;  %724 = vmatprep.mubr.bf16.mxu1 %v4854_v2  ;;  %v295_v10 = vld [vmem:[%s4845_s1 + $0x10] sm:$0xff]  ;;  %v379_v11 = vld [vmem:[%s4846_s2 + $0x18] sm:$0xff]  ;;  %v294_v13 = vld [vmem:[%s4845_s1 + $0x8] sm:$0xff]  ;;  %s4024_s23 = scalar_lea.vmem %s3830_s19, %s3297_s14  ;;  %s4896_s14 = scalar_lea.vmem [#allocation2], %s3825_s15 }
  0x1c   : >> { %v378_v12 = vld [vmem:[%s4846_s2 + $0x10] sm:$0xff]  ;;  %v293_v14 = vld [vmem:[%s4845_s1] sm:$0xff]  ;;  %v377_v15 = vld [vmem:[%s4846_s2 + $0x8] sm:$0xff]  ;;  %v4027_v61 = vsub.s32 0, %v4015_v58  ;;  %v4030_v62 = vsub.s32 2, %v4015_v58  ;;  %s4742_s13 = scalar_lea.vmem %s4896_s14, %s3525_s20 [#allocation2]  ;;  %p283_p11 = scmp.ge.s32.totalorder %s286_s21, 4  }
  0x1d   : >> { %v376_v16 = vld [vmem:[%s4846_s2] sm:$0xff]  ;;  %v495_v17 = vld [vmem:[%s4848_s4 + $0x38] sm:$0xff]  ;;  %v494_v18 = vld [vmem:[%s4848_s4 + $0x30] sm:$0xff]  ;;  %s3533_s14 = sshll.u32 (%p283_p11), %s3794_s28, 9  ;;  %s4900_s18 = scalar_lea.vmem (%p283_p11), [#allocation2], %s3825_s15 }
  0x1e   : >> { %421 = vperm.xlu1 %3585, %v383_v3   ;;  %338 = vperm.xlu0 %3584, %v300_v4   ;;  %v493_v19 = vld [vmem:[%s4848_s4 + $0x28] sm:$0xff]  ;;  %v492_v20 = vld [vmem:[%s4848_s4 + $0x20] sm:$0xff]  ;;  %v491_v21 = vld [vmem:[%s4848_s4 + $0x18] sm:$0xff]  ;;  %4873 = vst [vmem:[#allocation5_spill] sm:$0xff] %v4027_v61  ;;  %s3219_s17 = scalar_lea.hbm (%p283_p11), %s4851_s7, %s3533_s14  ;;  %s3221_s29 = sshll.u32 (%p283_p11), %s4900_s18, 4  ;;  %s3222_s29 = int_to_ptr.vmem [resolvable:$true] %s3221_s29 }
  0x1f   : >> { %v490_v22 = vld [vmem:[%s4848_s4 + $0x10] sm:$0xff]  ;;  %v489_v23 = vld [vmem:[%s4848_s4 + $0x8] sm:$0xff]  ;;  %v488_v24 = vld [vmem:[%s4848_s4] sm:$0xff]  ;;  %4874 = vst [vmem:[#allocation6_spill] sm:$0xff] %v4030_v62  ;;  %s4901_s8 = sand.u32 (%p283_p11), 1, %s3715_s25   ;;  %s3659_s9 = scalar_lea.vmem (%p283_p11), %s3222_s29, 512 }
  0x20   : >> { %v3313_v25 = vld [vmem:[%s4845_s1 + $0x70] sm:$0xff]  ;;  %v683_v26 = vld [vmem:[%s4850_s6] sm:$0x3]  ;;  %v3314_v28 = vld [vmem:[%s4845_s1 + $0x78] sm:$0xff]  ;;  %p3660_p12 = scmp.ne.s32.totalorder (%p283_p11), %s3222_s29, %s3659_s9  ;;  %s3732_s21 = smov (%p283_p11), [#allocation2]  }
  0x21   : >> { %v3321_v27 = vld [vmem:[%s4846_s2 + $0x70] sm:$0xff]  ;;  %v3311_v29 = vld [vmem:[%s4845_s1 + $0x60] sm:$0xff]  ;;  %v3322_v30 = vld [vmem:[%s4846_s2 + $0x78] sm:$0xff]  ;;  %s3663_s19 = sshll.u32 (%p283_p11), %s3732_s21, 4  ;;  %s3664_s19 = int_to_ptr.vmem [resolvable:$false] %s3663_s19 }
  0x22   : >> { %328 = vperm.xlu1 %3585, %v298_v5   ;;  %323 = vperm.xlu0 %3584, %v297_v6   ;;  %v3319_v31 = vld [vmem:[%s4846_s2 + $0x60] sm:$0xff]  ;;  %v3312_v32 = vld [vmem:[%s4845_s1 + $0x68] sm:$0xff]  ;;  %v3309_v33 = vld [vmem:[%s4845_s1 + $0x50] sm:$0xff]  ;;  %p3661_p13 = pnand (%p283_p11), %p3660_p12, %p3811_p5  ;;  %s3665_s16 = scalar_lea.vmem (%p283_p11), %s3664_s19, 1024 }
  0x23   : >> { %v3320_v34 = vld [vmem:[%s4846_s2 + $0x68] sm:$0xff]  ;;  %v3317_v35 = vld [vmem:[%s4846_s2 + $0x50] sm:$0xff]  ;;  %v3310_v36 = vld [vmem:[%s4845_s1 + $0x58] sm:$0xff]  ;;  %p3666_p1 = scmp.lt.s32.totalorder (%p283_p11), %s3222_s29, %s3664_s19  ;;  %p3667_p2 = scmp.lt.s32.totalorder (%p283_p11), %s3665_s16, %s3659_s9 }
  0x24   : >> { %v3307_v37 = vld [vmem:[%s4845_s1 + $0x40] sm:$0xff]  ;;  %v3318_v38 = vld [vmem:[%s4846_s2 + $0x58] sm:$0xff]  ;;  %v3308_v40 = vld [vmem:[%s4845_s1 + $0x48] sm:$0xff]  ;;  %p3662_p0 = pneg (%p283_p11), %p3661_p13 }
  0x25   : >> { %v3315_v39 = vld [vmem:[%s4846_s2 + $0x40] sm:$0xff]  ;;  %v3337_v41 = vld [vmem:[%s4848_s4 + $0x70] sm:$0xff]  ;;  %v3316_v42 = vld [vmem:[%s4846_s2 + $0x48] sm:$0xff]  ;;  %p3668_p3 = por (%p283_p11), %p3667_p2, %p3666_p1 }
  0x26   : >> { %411 = vperm.xlu1 %3585, %v381_v7   ;;  %406 = vperm.xlu0 %3584, %v380_v8   ;;  %v3335_v43 = vld [vmem:[%s4848_s4 + $0x60] sm:$0xff]  ;;  %v3338_v44 = vld [vmem:[%s4848_s4 + $0x78] sm:$0xff]  ;;  %v3333_v45 = vld [vmem:[%s4848_s4 + $0x50] sm:$0xff] }
  0x27   : >> { %v3336_v46 = vld [vmem:[%s4848_s4 + $0x68] sm:$0xff]  ;;  %v3331_v47 = vld [vmem:[%s4848_s4 + $0x40] sm:$0xff]  ;;  %v3334_v48 = vld [vmem:[%s4848_s4 + $0x58] sm:$0xff]  ;;  %p3669_p4 = pnand (%p283_p11), %p3668_p3, %p3662_p0 }
  0x28   : >> { %v3348_v49 = vld [vmem:[%s4850_s6 + $0x2] sm:$0x3]  ;;  %v3332_v50 = vld [vmem:[%s4848_s4 + $0x48] sm:$0xff]  ;;  %v3358_v51 = vld [vmem:[%s4845_s1 + $0xb8] sm:$0xff] }
  0x29   : >> { %v3357_v52 = vld [vmem:[%s4845_s1 + $0xb0] sm:$0xff]  ;;  %v3366_v53 = vld [vmem:[%s4846_s2 + $0xb8] sm:$0xff]  ;;  %v3356_v56 = vld [vmem:[%s4845_s1 + $0xa8] sm:$0xff] }
  0x2a   : >> { %318 = vperm.xlu1 %3585, %v296_v9   ;;  %313 = vperm.xlu0 %3584, %v295_v10   ;;  %v3365_v54 = vld [vmem:[%s4846_s2 + $0xb0] sm:$0xff]  ;;  %v3355_v57 = vld [vmem:[%s4845_s1 + $0xa0] sm:$0xff]  ;;  %v3364_v59 = vld [vmem:[%s4846_s2 + $0xa8] sm:$0xff] }
  0x2b   : >> { %v3363_v60 = vld [vmem:[%s4846_s2 + $0xa0] sm:$0xff]  ;;  %v3354_v63 = vld [vmem:[%s4845_s1 + $0x98] sm:$0xff]  ;;  %v3353_v0 = vld [vmem:[%s4845_s1 + $0x90] sm:$0xff] }
  0x2c   : >> { %v4039_v1 = vld [vmem:[%s4024_s23] sm:$0xf]  ;;  %v3362_v5 = vld [vmem:[%s4846_s2 + $0x98] sm:$0xff]  ;;  %v3361_v6 = vld [vmem:[%s4846_s2 + $0x90] sm:$0xff] }
  0x2d   : >> { %v345_v3 = vrot.slane %v4039_v1, %v4027_v61  ;;  %v349_v4 = vrot.slane %v4039_v1, %v4030_v62  ;;  %v3352_v9 = vld [vmem:[%s4845_s1 + $0x88] sm:$0xff]  ;;  %v3351_v10 = vld [vmem:[%s4845_s1 + $0x80] sm:$0xff] }
  0x2e   : >> { %401 = vperm.xlu1 %3585, %v379_v11   ;;  %396 = vperm.xlu0 %3584, %v378_v12  }
  0x2f   : >> { %v4052_v7 = vrot.slane %v345_v3, %v4027_v61  ;;  %v4055_v8 = vrot.slane %v349_v4, %v4027_v61 }
  0x32   : >> { %308 = vperm.xlu1 %3585, %v294_v13   ;;  %303 = vperm.xlu0 %3584, %v293_v14  }
  0x36   : >> { %391 = vperm.xlu1 %3585, %v377_v15   ;;  %386 = vperm.xlu0 %3584, %v376_v16   ;;  %v3360_v15 = vld [vmem:[%s4846_s2 + $0x88] sm:$0xff]  ;;  %v3359_v16 = vld [vmem:[%s4846_s2 + $0x80] sm:$0xff] }
  0x3a   : >> { %533 = vperm.xlu1 %3585, %v495_v17   ;;  %528 = vperm.xlu0 %3584, %v494_v18  }
  0x3e   : >> { %523 = vperm.xlu1 %3585, %v493_v19   ;;  %518 = vperm.xlu0 %3584, %v492_v20  }
  0x42   : >> { %513 = vperm.xlu1 %3585, %v491_v21   ;;  %508 = vperm.xlu0 %3584, %v490_v22  }
  0x46   : >> { %503 = vperm.xlu1 %3585, %v489_v23   ;;  %498 = vperm.xlu0 %3584, %v488_v24   ;;  %v3382_v23 = vld [vmem:[%s4848_s4 + $0xb8] sm:$0xff]  ;;  %v3381_v24 = vld [vmem:[%s4848_s4 + $0xb0] sm:$0xff] }
  0x4a   : >> { %807 = vperm.xlu1 %3585, %v3313_v25   ;;  %686 = vperm.xlu0 %3584, %v683_v26  }
  0x4e   : >> { %891 = vperm.xlu1 %3585, %v3321_v27   ;;  %812 = vperm.xlu0 %3584, %v3314_v28  }
  0x52   : >> { %797 = vperm.xlu1 %3585, %v3311_v29   ;;  %896 = vperm.xlu0 %3584, %v3322_v30  }
  0x56   : >> { %881 = vperm.xlu1 %3585, %v3319_v31   ;;  %802 = vperm.xlu0 %3584, %v3312_v32   ;;  %v3380_v31 = vld [vmem:[%s4848_s4 + $0xa8] sm:$0xff] }
  0x5a   : >> { %787 = vperm.xlu1 %3585, %v3309_v33   ;;  %886 = vperm.xlu0 %3584, %v3320_v34  }
  0x5e   : >> { %871 = vperm.xlu1 %3585, %v3317_v35   ;;  %792 = vperm.xlu0 %3584, %v3310_v36  }
  0x62   : >> { %777 = vperm.xlu1 %3585, %v3307_v37   ;;  %876 = vperm.xlu0 %3584, %v3318_v38   ;;  %v3379_v38 = vld [vmem:[%s4848_s4 + $0xa0] sm:$0xff] }
  0x66   : >> { %861 = vperm.xlu1 %3585, %v3315_v39   ;;  %782 = vperm.xlu0 %3584, %v3308_v40  }
  0x6a   : >> { %1005 = vperm.xlu1 %3585, %v3337_v41   ;;  %866 = vperm.xlu0 %3584, %v3316_v42  }
  0x6e   : >> { %995 = vperm.xlu1 %3585, %v3335_v43   ;;  %1010 = vperm.xlu0 %3584, %v3338_v44  }
  0x72   : >> { %985 = vperm.xlu1 %3585, %v3333_v45   ;;  %1000 = vperm.xlu0 %3584, %v3336_v46  }
  0x76   : >> { %975 = vperm.xlu1 %3585, %v3331_v47   ;;  %990 = vperm.xlu0 %3584, %v3334_v48  }
  0x7a   : >> { %1164 = vperm.xlu1 %3585, %v3348_v49   ;;  %980 = vperm.xlu0 %3584, %v3332_v50  }
  0x7e   : >> { %1291 = vperm.xlu1 %3585, %v3358_v51   ;;  %1286 = vperm.xlu0 %3584, %v3357_v52   ;;  %v3378_v51 = vld [vmem:[%s4848_s4 + $0x98] sm:$0xff] }
  0x82   : >> { %1375 = vperm.xlu1 %3585, %v3366_v53   ;;  %1370 = vperm.xlu0 %3584, %v3365_v54  }
  0x86   : >> { %1281 = vperm.xlu1 %3585, %v3356_v56   ;;  %1276 = vperm.xlu0 %3584, %v3355_v57  }
  0x8a   : >> { %1365 = vperm.xlu1 %3585, %v3364_v59   ;;  %1360 = vperm.xlu0 %3584, %v3363_v60   ;;  %v3377_v60 = vld [vmem:[%s4848_s4 + $0x90] sm:$0xff] }
  0x8e   : >> { %1271 = vperm.xlu1 %3585, %v3354_v63   ;;  %1266 = vperm.xlu0 %3584, %v3353_v0  }
  0x92   : >> { %1355 = vperm.xlu1 %3585, %v3362_v5   ;;  %1350 = vperm.xlu0 %3584, %v3361_v6  }
  0x95   : >> { %v417_v11 = vpop.permute.xlu1 %416  ;;  %v334_v12 = vpop.permute.xlu0 %333 }
  0x96   : >> { %v372_v13 = vmul.f32 %v4052_v7, %v334_v12  ;;  %v373_v14 = vmul.f32 %v4055_v8, %v334_v12  ;;  %1261 = vperm.xlu1 %3585, %v3352_v9   ;;  %1256 = vperm.xlu0 %3584, %v3351_v10  }
  0x98   : >> { %v437_v19 = vadd.f32 %v417_v11, %v373_v14  ;;  %v436_v20 = vadd.f32 %v417_v11, %v372_v13  ;;  %v3376_v11 = vld [vmem:[%s4848_s4 + $0x88] sm:$0xff] }
  0x99   : >> { %v422_v17 = vpop.permute.xlu1 %421  ;;  %v339_v18 = vpop.permute.xlu0 %338 }
  0x9a   : >> { %v374_v21 = vmul.f32 %v4052_v7, %v339_v18  ;;  %v375_v22 = vmul.f32 %v4055_v8, %v339_v18  ;;  %1345 = vperm.xlu1 %3585, %v3360_v15   ;;  %1340 = vperm.xlu0 %3584, %v3359_v16   ;;  %v453_v29 = vmul.f32 0.01, %v437_v19  ;;  %v452_v30 = vmul.f32 0.01, %v436_v20  ;;  %v3375_v15 = vld [vmem:[%s4848_s4 + $0x80] sm:$0xff] }
  0x9c   : >> { %v439_v25 = vadd.f32 %v422_v17, %v375_v22  ;;  %v438_v26 = vadd.f32 %v422_v17, %v374_v21  ;;  %v469_v41 = vmax.f32 %v437_v19, %v453_v29  ;;  %v468_v43 = vmax.f32 %v436_v20, %v452_v30  ;;  %v3400_v21 = vld [vmem:[%s4845_s1 + $0xf0] sm:$0xff] }
  0x9d   : >> { %v329_v27 = vpop.permute.xlu1 %328  ;;  %v324_v28 = vpop.permute.xlu0 %323 }
  0x9e   : >> { %1489 = vperm.xlu1 %3585, %v3382_v23   ;;  %1484 = vperm.xlu0 %3584, %v3381_v24   ;;  %v455_v32 = vmul.f32 0.01, %v439_v25  ;;  %v454_v33 = vmul.f32 0.01, %v438_v26  ;;  %v370_v34 = vmul.f32 %v4052_v7, %v329_v27  ;;  %v371_v35 = vmul.f32 %v4055_v8, %v329_v27 }
  0x9f   : >> { %v368_v36 = vmul.f32 %v4052_v7, %v324_v28  ;;  %v369_v37 = vmul.f32 %v4055_v8, %v324_v28  ;;  %v3392_v28 = vld [vmem:[%s4850_s6 + $0x4] sm:$0x3] }
  0xa0   : >> { %v471_v42 = vmax.f32 %v439_v25, %v455_v32  ;;  %v470_v44 = vmax.f32 %v438_v26, %v454_v33 }
  0xa1   : >> { %v412_v39 = vpop.permute.xlu1 %411  ;;  %v407_v40 = vpop.permute.xlu0 %406 }
  0xa2   : >> { %v434_v45 = vadd.f32 %v412_v39, %v370_v34  ;;  %v435_v46 = vadd.f32 %v412_v39, %v371_v35  ;;  %v432_v47 = vadd.f32 %v407_v40, %v368_v36  ;;  %v433_v48 = vadd.f32 %v407_v40, %v369_v37  ;;  %1479 = vperm.xlu1 %3585, %v3380_v31   ;;  %v3408_v37 = vld [vmem:[%s4846_s2 + $0xf0] sm:$0xff] }
  0xa3   : >> { %1474 = vperm.xlu0 %3584, %v3379_v38   ;;  %v487_v49 = vpack.c.bf16 %v471_v42, %v469_v41  ;;  %v486_v50 = vpack.c.bf16 %v470_v44, %v468_v43  ;;  %v3401_v41 = vld [vmem:[%s4845_s1 + $0xf8] sm:$0xff] }
  0xa4   : >> { %v450_v52 = vmul.f32 0.01, %v434_v45  ;;  %v451_v53 = vmul.f32 0.01, %v435_v46  ;;  %v448_v54 = vmul.f32 0.01, %v432_v47 }
  0xa5   : >> { %v449_v56 = vmul.f32 0.01, %v433_v48  ;;  %577 = vmatprep.subr.bf16.mxu0 %v487_v49  ;;  %v319_v57 = vpop.permute.xlu1 %318  ;;  %v314_v59 = vpop.permute.xlu0 %313 }
  0xa6   : >> { %v466_v63 = vmax.f32 %v434_v45, %v450_v52  ;;  %v467_v0 = vmax.f32 %v435_v46, %v451_v53  ;;  %v464_v3 = vmax.f32 %v432_v47, %v448_v54  ;;  %578 = vmatpush1.bf16.msra.mxu0 %v486_v50  ;;  %v366_v5 = vmul.f32 %v4052_v7, %v319_v57  ;;  %v3409_v50 = vld [vmem:[%s4846_s2 + $0xf8] sm:$0xff] }
  0xa7   : >> { %v465_v4 = vmax.f32 %v433_v48, %v449_v56  ;;  %1469 = vperm.xlu1 %3585, %v3378_v51   ;;  %v367_v6 = vmul.f32 %v4055_v8, %v319_v57  ;;  %v364_v9 = vmul.f32 %v4052_v7, %v314_v59  ;;  %v365_v10 = vmul.f32 %v4055_v8, %v314_v59  ;;  %v3406_v56 = vld [vmem:[%s4846_s2 + $0xe0] sm:$0xff]  ;;  %v3399_v59 = vld [vmem:[%s4845_s1 + $0xe8] sm:$0xff] }
  0xa8   : >> { %1464 = vperm.xlu0 %3584, %v3377_v60   ;;  %v484_v12 = vpack.c.bf16 %v466_v63, %v464_v3  ;;  %v3586_v63 = vld [vmem:[%s4847_s3] sm:$0xff]   ;;  %v3407_v3 = vld [vmem:[%s4846_s2 + $0xe8] sm:$0xff] }
  0xa9   : >> { %v402_v13 = vpop.permute.xlu1 %401  ;;  %v397_v14 = vpop.permute.xlu0 %396  ;;  %v485_v16 = vpack.c.bf16 %v467_v0, %v465_v4  ;;  %v3396_v0 = vld [vmem:[%s4845_s1 + $0xd0] sm:$0xff] }
  0xaa   : >> { %v430_v17 = vadd.f32 %v402_v13, %v366_v5  ;;  %v431_v18 = vadd.f32 %v402_v13, %v367_v6  ;;  %v428_v19 = vadd.f32 %v397_v14, %v364_v9  ;;  %v429_v20 = vadd.f32 %v397_v14, %v365_v10  ;;  %v3404_v4 = vld [vmem:[%s4846_s2 + $0xd0] sm:$0xff]  ;;  %v3397_v5 = vld [vmem:[%s4845_s1 + $0xd8] sm:$0xff]  ;;  %v3587_v6 = vld [vmem:[%s4847_s3 + $0x8] sm:$0xff]  }
  0xab   : >> { %1459 = vperm.xlu1 %3585, %v3376_v11   ;;  %579 = vmatprep.subr.bf16.mxu0 %v485_v16  ;;  %v3394_v9 = vld [vmem:[%s4845_s1 + $0xc0] sm:$0xff]  ;;  %v3405_v10 = vld [vmem:[%s4846_s2 + $0xd8] sm:$0xff]  ;;  %v3588_v13 = vld [vmem:[%s4847_s3 + $0x10] sm:$0xff]  }
  0xac   : >> { %v446_v22 = vmul.f32 0.01, %v430_v17  ;;  %v447_v23 = vmul.f32 0.01, %v431_v18  ;;  %v444_v24 = vmul.f32 0.01, %v428_v19  ;;  %1454 = vperm.xlu0 %3584, %v3375_v15   ;;  %580 = vmatpush1.bf16.msra.mxu0 %v484_v12 }
  0xad   : >> { %v445_v25 = vmul.f32 0.01, %v429_v20  ;;  %v309_v26 = vpop.permute.xlu1 %308  ;;  %v304_v27 = vpop.permute.xlu0 %303  ;;  %v3402_v11 = vld [vmem:[%s4846_s2 + $0xc0] sm:$0xff]  ;;  %v3395_v12 = vld [vmem:[%s4845_s1 + $0xc8] sm:$0xff]  ;;  %v3424_v14 = vld [vmem:[%s4848_s4 + $0xf0] sm:$0xff] }
  0xae   : >> { %v462_v29 = vmax.f32 %v430_v17, %v446_v22  ;;  %v463_v30 = vmax.f32 %v431_v18, %v447_v23  ;;  %v460_v31 = vmax.f32 %v428_v19, %v444_v24  ;;  %v362_v33 = vmul.f32 %v4052_v7, %v309_v26  ;;  %v3403_v15 = vld [vmem:[%s4846_s2 + $0xc8] sm:$0xff]  ;;  %v3422_v16 = vld [vmem:[%s4848_s4 + $0xe0] sm:$0xff]  ;;  %v3425_v17 = vld [vmem:[%s4848_s4 + $0xf8] sm:$0xff] }
  0xaf   : >> { %v461_v32 = vmax.f32 %v429_v20, %v445_v25  ;;  %1764 = vperm.xlu1 %3585, %v3400_v21   ;;  %v363_v34 = vmul.f32 %v4055_v8, %v309_v26  ;;  %v360_v35 = vmul.f32 %v4052_v7, %v304_v27  ;;  %v361_v36 = vmul.f32 %v4055_v8, %v304_v27  ;;  %v3398_v7 = vld [vmem:[%s4845_s1 + $0xe0] sm:$0xff]  ;;  %v3589_v18 = vld [vmem:[%s4847_s3 + $0x18] sm:$0xff]   ;;  %v3420_v19 = vld [vmem:[%s4848_s4 + $0xd0] sm:$0xff] }
  0xb0   : >> { %1643 = vperm.xlu0 %3584, %v3392_v28   ;;  %v482_v38 = vpack.c.bf16 %v462_v29, %v460_v31  ;;  %v3423_v20 = vld [vmem:[%s4848_s4 + $0xe8] sm:$0xff]  ;;  %v3418_v21 = vld [vmem:[%s4848_s4 + $0xc0] sm:$0xff]  ;;  %v3421_v22 = vld [vmem:[%s4848_s4 + $0xd8] sm:$0xff] }
  0xb1   : >> { %v392_v39 = vpop.permute.xlu1 %391  ;;  %v387_v40 = vpop.permute.xlu0 %386  ;;  %v483_v42 = vpack.c.bf16 %v463_v30, %v461_v32  ;;  %v3435_v23 = vld [vmem:[%s4850_s6 + $0x6] sm:$0x3]  ;;  %v3419_v25 = vld [vmem:[%s4848_s4 + $0xc8] sm:$0xff]  ;;  %v3445_v27 = vld [vmem:[%s4845_s1 + $0x138] sm:$0xff] }
  0xb2   : >> { %v426_v43 = vadd.f32 %v392_v39, %v362_v33  ;;  %v427_v44 = vadd.f32 %v392_v39, %v363_v34  ;;  %v424_v45 = vadd.f32 %v387_v40, %v360_v35  ;;  %v425_v46 = vadd.f32 %v387_v40, %v361_v36  ;;  %v3444_v28 = vld [vmem:[%s4845_s1 + $0x130] sm:$0xff]  ;;  %v3453_v31 = vld [vmem:[%s4846_s2 + $0x138] sm:$0xff]  ;;  %v3443_v33 = vld [vmem:[%s4845_s1 + $0x128] sm:$0xff] }
  0xb3   : >> { %1848 = vperm.xlu1 %3585, %v3408_v37   ;;  %581 = vmatprep.subr.bf16.mxu0 %v483_v42  ;;  %v3452_v32 = vld [vmem:[%s4846_s2 + $0x130] sm:$0xff]  ;;  %v3442_v35 = vld [vmem:[%s4845_s1 + $0x120] sm:$0xff]  ;;  %v3451_v37 = vld [vmem:[%s4846_s2 + $0x128] sm:$0xff] }
  0xb4   : >> { %v442_v8 = vmul.f32 0.01, %v426_v43  ;;  %v443_v47 = vmul.f32 0.01, %v427_v44  ;;  %v440_v48 = vmul.f32 0.01, %v424_v45  ;;  %1769 = vperm.xlu0 %3584, %v3401_v41   ;;  %582 = vmatpush1.bf16.msra.mxu0 %v482_v38 }
  0xb5   : >> { %v441_v49 = vmul.f32 0.01, %v425_v46  ;;  %v4204_v24 = vpop.permute.xlu1 %533  ;;  %v4209_v26 = vpop.permute.xlu0 %528  ;;  %v3450_v38 = vld [vmem:[%s4846_s2 + $0x120] sm:$0xff]  ;;  %v3441_v41 = vld [vmem:[%s4845_s1 + $0x118] sm:$0xff]  ;;  %v3440_v42 = vld [vmem:[%s4845_s1 + $0x110] sm:$0xff] }
  0xb6   : >> { %v458_v51 = vmax.f32 %v426_v43, %v442_v8  ;;  %v459_v52 = vmax.f32 %v427_v44, %v443_v47  ;;  %v456_v53 = vmax.f32 %v424_v45, %v440_v48  ;;  %v3449_v43 = vld [vmem:[%s4846_s2 + $0x118] sm:$0xff]  ;;  %v3448_v45 = vld [vmem:[%s4846_s2 + $0x110] sm:$0xff]  ;;  %v3438_v8 = vld [vmem:[%s4845_s1 + $0x100] sm:$0xff] }
  0xb7   : >> { %v457_v54 = vmax.f32 %v425_v46, %v441_v49  ;;  %1754 = vperm.xlu1 %3585, %v3398_v7   ;;  %v3439_v7 = vld [vmem:[%s4845_s1 + $0x108] sm:$0xff] }
  0xb8   : >> { %1853 = vperm.xlu0 %3584, %v3409_v50   ;;  %v480_v57 = vpack.c.bf16 %v458_v51, %v456_v53  ;;  %v3447_v49 = vld [vmem:[%s4846_s2 + $0x108] sm:$0xff]  ;;  %v3446_v50 = vld [vmem:[%s4846_s2 + $0x100] sm:$0xff]  ;;  %v3469_v51 = vld [vmem:[%s4848_s4 + $0x138] sm:$0xff] }
  0xb9   : >> { %v481_v60 = vpack.c.bf16 %v459_v52, %v457_v54  ;;  %v4217_v29 = vpop.permute.xlu1 %523  ;;  %v4219_v30 = vpop.permute.xlu0 %518  ;;  %v3468_v53 = vld [vmem:[%s4848_s4 + $0x130] sm:$0xff] }
  0xbb   : >> { %1838 = vperm.xlu1 %3585, %v3406_v56   ;;  %583 = vmatprep.subr.bf16.mxu0 %v481_v60  ;;  %v3467_v56 = vld [vmem:[%s4848_s4 + $0x128] sm:$0xff] }
  0xbc   : >> { %1759 = vperm.xlu0 %3584, %v3399_v59   ;;  %584 = vmatpush1.bf16.msra.mxu0 %v480_v57  ;;  %v3466_v57 = vld [vmem:[%s4848_s4 + $0x120] sm:$0xff] }
  0xbd   : >> { %v4230_v34 = vpop.permute.xlu1 %513  ;;  %v4235_v36 = vpop.permute.xlu0 %508 }
  0xbf   : >> { %1744 = vperm.xlu1 %3585, %v3396_v0   ;;  %3302 = vmatmul.mubr.msk.bf16.vlgmr.msra.gmra.mxu0 %vm556_vm0, %v3586_v63  ;;  %v3465_v63 = vld [vmem:[%s4848_s4 + $0x118] sm:$0xff]  ;;  %v3464_v0 = vld [vmem:[%s4848_s4 + $0x110] sm:$0xff] }
  0xc0   : >> { %1843 = vperm.xlu0 %3584, %v3407_v3   ;;  %611 = vmatprep.mubr.bf16.mxu0 %v4854_v2  ;;  %v3463_v3 = vld [vmem:[%s4848_s4 + $0x108] sm:$0xff] }
  0xc1   : >> { %v4243_v39 = vpop.permute.xlu1 %503  ;;  %v4245_v40 = vpop.permute.xlu0 %498 }
  0xc3   : >> { %1828 = vperm.xlu1 %3585, %v3404_v4  }
  0xc4   : >> { %1749 = vperm.xlu0 %3584, %v3397_v5   ;;  %v3462_v5 = vld [vmem:[%s4848_s4 + $0x100] sm:$0xff] }
  0xc5   : >> { %v4256_v44 = vpop.permute.xlu1 %807  ;;  %v4261_v46 = vpop.permute.xlu0 %686 }
  0xc7   : >> { %1734 = vperm.xlu1 %3585, %v3394_v9   ;;  %3303 = vmatmul.mubr.msk.bf16.gmra.mxu0 %vm556_vm0, %v3587_v6  ;;  %v3487_v9 = vld [vmem:[%s4845_s1 + $0x170] sm:$0xff] }
  0xc8   : >> { %1833 = vperm.xlu0 %3584, %v3405_v10   ;;  %621 = vmatprep.mubr.bf16.mxu0 %v4854_v2  ;;  %v3479_v10 = vld [vmem:[%s4850_s6 + $0x8] sm:$0x3] }
  0xc9   : >> { %v4269_v47 = vpop.permute.xlu1 %891  ;;  %v4271_v48 = vpop.permute.xlu0 %812 }
  0xcb   : >> { %1818 = vperm.xlu1 %3585, %v3402_v11  }
  0xcc   : >> { %1739 = vperm.xlu0 %3584, %v3395_v12  }
  0xcd   : >> { %v4282_v52 = vpop.permute.xlu1 %797  ;;  %v4287_v54 = vpop.permute.xlu0 %896 }
  0xcf   : >> { %1962 = vperm.xlu1 %3585, %v3424_v14   ;;  %3304 = vmatmul.mubr.msk.bf16.gmra.mxu0 %vm556_vm0, %v3588_v13  ;;  %v3495_v13 = vld [vmem:[%s4846_s2 + $0x170] sm:$0xff]  ;;  %v3488_v14 = vld [vmem:[%s4845_s1 + $0x178] sm:$0xff] }
  0xd0   : >> { %1823 = vperm.xlu0 %3584, %v3403_v15   ;;  %631 = vmatprep.mubr.bf16.mxu0 %v4854_v2  ;;  %v3485_v15 = vld [vmem:[%s4845_s1 + $0x160] sm:$0xff] }
  0xd1   : >> { %v4295_v59 = vpop.permute.xlu1 %881  ;;  %v4297_v60 = vpop.permute.xlu0 %802 }
  0xd3   : >> { %1952 = vperm.xlu1 %3585, %v3422_v16  }
  0xd4   : >> { %1967 = vperm.xlu0 %3584, %v3425_v17   ;;  %v3496_v17 = vld [vmem:[%s4846_s2 + $0x178] sm:$0xff] }
  0xd5   : >> { %v4308_v4 = vpop.permute.xlu1 %787  ;;  %v4313_v6 = vpop.permute.xlu0 %886 }
  0xd7   : >> { %1942 = vperm.xlu1 %3585, %v3420_v19   ;;  %3305 = vmatmul.mubr.msk.bf16.gmra.mxu0 %vm556_vm0, %v3589_v18  ;;  %v3493_v19 = vld [vmem:[%s4846_s2 + $0x160] sm:$0xff] }
  0xd8   : >> { %1957 = vperm.xlu0 %3584, %v3423_v20   ;;  %1202 = vmatprep.mubr.bf16.mxu0 %v4854_v2  ;;  %v3486_v20 = vld [vmem:[%s4845_s1 + $0x168] sm:$0xff] }
  0xd9   : >> { %v4321_v11 = vpop.permute.xlu1 %871  ;;  %v4323_v12 = vpop.permute.xlu0 %792 }
  0xdb   : >> { %1932 = vperm.xlu1 %3585, %v3418_v21  }
  0xdc   : >> { %1947 = vperm.xlu0 %3584, %v3421_v22  }
  0xdd   : >> { %v4334_v16 = vpop.permute.xlu1 %777  ;;  %v4339_v18 = vpop.permute.xlu0 %876 }
  0xdf   : >> { %2121 = vperm.xlu1 %3585, %v3435_v23   ;;  %v3483_v23 = vld [vmem:[%s4845_s1 + $0x150] sm:$0xff] }
  0xe0   : >> { %1937 = vperm.xlu0 %3584, %v3419_v25   ;;  %v3494_v25 = vld [vmem:[%s4846_s2 + $0x168] sm:$0xff] }
  0xe1   : >> { %v4347_v21 = vpop.permute.xlu1 %861  ;;  %v4349_v22 = vpop.permute.xlu0 %782 }
  0xe3   : >> { %2248 = vperm.xlu1 %3585, %v3445_v27   ;;  %v3491_v27 = vld [vmem:[%s4846_s2 + $0x150] sm:$0xff] }
  0xe4   : >> { %2243 = vperm.xlu0 %3584, %v3444_v28  }
  0xe5   : >> { %v4360_v28 = vpop.permute.xlu1 %1005 }
  0xe7   : >> { %2332 = vperm.xlu1 %3585, %v3453_v31   ;;  %v3484_v31 = vld [vmem:[%s4845_s1 + $0x158] sm:$0xff] }
  0xe8   : >> { %2327 = vperm.xlu0 %3584, %v3452_v32   ;;  %v4365_v32 = vpop.permute.xlu0 %866 }
  0xeb   : >> { %2238 = vperm.xlu1 %3585, %v3443_v33   ;;  %v3481_v33 = vld [vmem:[%s4845_s1 + $0x140] sm:$0xff] }
  0xec   : >> { %2233 = vperm.xlu0 %3584, %v3442_v35   ;;  %v3492_v35 = vld [vmem:[%s4846_s2 + $0x158] sm:$0xff] }
  0xef   : >> { %2322 = vperm.xlu1 %3585, %v3451_v37   ;;  %v4373_v37 = vpop.permute.xlu1 %995 }
  0xf0   : >> { %2317 = vperm.xlu0 %3584, %v3450_v38   ;;  %4875 = vst [vmem:[#allocation7_spill] sm:$0xff] %v4373_v37  ;;  %v4375_v38 = vpop.permute.xlu0 %1010 }
  0xf1   : >> { %4876 = vst [vmem:[#allocation8_spill] sm:$0xff] %v4375_v38 }
  0xf3   : >> { %2228 = vperm.xlu1 %3585, %v3441_v41   ;;  %v3489_v41 = vld [vmem:[%s4846_s2 + $0x140] sm:$0xff] }
  0xf4   : >> { %2223 = vperm.xlu0 %3584, %v3440_v42   ;;  %v3482_v42 = vld [vmem:[%s4845_s1 + $0x148] sm:$0xff] }
  0xf7   : >> { %2312 = vperm.xlu1 %3585, %v3449_v43   ;;  %v3511_v43 = vld [vmem:[%s4848_s4 + $0x170] sm:$0xff] }
  0xf8   : >> { %2307 = vperm.xlu0 %3584, %v3448_v45   ;;  %v4386_v45 = vpop.permute.xlu1 %985 }
  0xf9   : >> { %4877 = vst [vmem:[#allocation9_spill] sm:$0xff] %v4386_v45 }
  0xfb   : >> { %2218 = vperm.xlu1 %3585, %v3439_v7   ;;  %v3490_v7 = vld [vmem:[%s4846_s2 + $0x148] sm:$0xff] }
  0xfc   : >> { %2213 = vperm.xlu0 %3584, %v3438_v8   ;;  %v4391_v8 = vpop.permute.xlu0 %1000 }
  0xff   : >> { %2302 = vperm.xlu1 %3585, %v3447_v49   ;;  %v3509_v49 = vld [vmem:[%s4848_s4 + $0x160] sm:$0xff] }
 0x100   : >> { %2297 = vperm.xlu0 %3584, %v3446_v50   ;;  %v3512_v50 = vld [vmem:[%s4848_s4 + $0x178] sm:$0xff] }
 0x103   : >> { %2446 = vperm.xlu1 %3585, %v3469_v51   ;;  %v4399_v51 = vpop.permute.xlu1 %975 }
 0x104   : >> { %2441 = vperm.xlu0 %3584, %v3468_v53   ;;  %4878 = vst [vmem:[#allocation10_spill] sm:$0xff] %v4399_v51  ;;  %v4401_v53 = vpop.permute.xlu0 %990 }
 0x105   : >> { %4879 = vst [vmem:[#allocation11_spill] sm:$0xff] %v4401_v53 }
 0x107   : >> { %2436 = vperm.xlu1 %3585, %v3467_v56   ;;  %v3507_v56 = vld [vmem:[%s4848_s4 + $0x150] sm:$0xff] }
 0x108   : >> { %2431 = vperm.xlu0 %3584, %v3466_v57   ;;  %v3510_v57 = vld [vmem:[%s4848_s4 + $0x168] sm:$0xff] }
 0x10b   : >> { %2426 = vperm.xlu1 %3585, %v3465_v63   ;;  %v3505_v63 = vld [vmem:[%s4848_s4 + $0x140] sm:$0xff] }
 0x10c   : >> { %2421 = vperm.xlu0 %3584, %v3464_v0   ;;  %v4412_v0 = vpop.permute.xlu1 %1164 }
 0x10d   : >> { %4880 = vst [vmem:[#allocation12_spill] sm:$0xff] %v4412_v0 }
 0x10f   : >> { %2416 = vperm.xlu1 %3585, %v3463_v3   ;;  %v3508_v3 = vld [vmem:[%s4848_s4 + $0x158] sm:$0xff] }
 0x110   : >> { %2411 = vperm.xlu0 %3584, %v3462_v5   ;;  %v4417_v5 = vpop.permute.xlu0 %980 }
 0x111   : >> { %4881 = vst [vmem:[#allocation13_spill] sm:$0xff] %v4417_v5 }
 0x113   : >> { %2721 = vperm.xlu1 %3585, %v3487_v9   ;;  %v3522_v9 = vld [vmem:[%s4850_s6 + $0xa] sm:$0x3] }
 0x114   : >> { %2600 = vperm.xlu0 %3584, %v3479_v10   ;;  %v3506_v10 = vld [vmem:[%s4848_s4 + $0x148] sm:$0xff] }
 0x117   : >> { %2805 = vperm.xlu1 %3585, %v3495_v13   ;;  %v4425_v13 = vpop.permute.xlu1 %1291 }
 0x118   : >> { %2726 = vperm.xlu0 %3584, %v3488_v14   ;;  %4882 = vst [vmem:[#allocation14_spill] sm:$0xff] %v4425_v13  ;;  %v4427_v14 = vpop.permute.xlu0 %1286 }
 0x119   : >> { %4883 = vst [vmem:[#allocation15_spill] sm:$0xff] %v4427_v14 }
 0x11b   : >> { %2711 = vperm.xlu1 %3585, %v3485_v15  }
 0x11c   : >> { %2810 = vperm.xlu0 %3584, %v3496_v17  }
 0x11f   : >> { %2795 = vperm.xlu1 %3585, %v3493_v19  }
 0x120   : >> { %2716 = vperm.xlu0 %3584, %v3486_v20  }
 0x123   : >> { %2701 = vperm.xlu1 %3585, %v3483_v23  }
 0x124   : >> { %2800 = vperm.xlu0 %3584, %v3494_v25  }
 0x127   : >> { %2785 = vperm.xlu1 %3585, %v3491_v27  }
 0x128   : >> { %2706 = vperm.xlu0 %3584, %v3484_v31  }
 0x12b   : >> { %2691 = vperm.xlu1 %3585, %v3481_v33  }
 0x12c   : >> { %2790 = vperm.xlu0 %3584, %v3492_v35  }
 0x12f   : >> { %2775 = vperm.xlu1 %3585, %v3489_v41  }
 0x130   : >> { %2696 = vperm.xlu0 %3584, %v3482_v42  }
 0x133   : >> { %2919 = vperm.xlu1 %3585, %v3511_v43  }
 0x134   : >> { %2780 = vperm.xlu0 %3584, %v3490_v7  }
 0x137   : >> { %2909 = vperm.xlu1 %3585, %v3509_v49  }
 0x138   : >> { %2924 = vperm.xlu0 %3584, %v3512_v50  }
 0x13b   : >> { %2899 = vperm.xlu1 %3585, %v3507_v56  }
 0x13c   : >> { %2914 = vperm.xlu0 %3584, %v3510_v57  }
 0x13f   : >> { %2889 = vperm.xlu1 %3585, %v3505_v63  }
 0x140   : >> { %2904 = vperm.xlu0 %3584, %v3508_v3  }
 0x143   : >> { %3078 = vperm.xlu1 %3585, %v3522_v9  }
 0x144   : >> { %2894 = vperm.xlu0 %3584, %v3506_v10  }
 0x17f   : >> { %v603_v15 = vpop.f32.mrf.mxu0 }
 0x181   : >> { %v605_v17 = vpop.f32.mrf.mxu0 }
 0x183   : >> { %v607_v19 = vpop.f32.mrf.mxu0 }
 0x184   : >> { %v608_v38 = vadd.f32 %v607_v19, %v4243_v39 }
 0x185   : >> { %v609_v20 = vpop.f32.mrf.mxu0 }
 0x187   : >> { %v613_v23 = vpop.f32.mrf.mxu0 }
 0x188   : >> { %v614_v45 = vadd.f32 %v613_v23, %v4235_v36 }
 0x189   : >> { %v615_v25 = vpop.f32.mrf.mxu0 }
 0x18b   : >> { %v617_v27 = vpop.f32.mrf.mxu0 }
 0x18d   : >> { %v619_v31 = vpop.f32.mrf.mxu0 }
 0x18e   : >> { %v620_v9 = vadd.f32 %v619_v31, %v4230_v34 }
 0x18f   : >> { %v623_v33 = vpop.f32.mrf.mxu0 }
 0x191   : >> { %v625_v35 = vpop.f32.mrf.mxu0 }
 0x192   : >> { %v626_v63 = vadd.f32 %v625_v35, %v4219_v30  ;;  %v610_v35 = vadd.f32 %v609_v20, %v4243_v39 }
 0x193   : >> { %v627_v41 = vpop.f32.mrf.mxu0 }
 0x194   : >> { %v628_v10 = vadd.f32 %v627_v41, %v4217_v29 }
 0x195   : >> { %v629_v42 = vpop.f32.mrf.mxu0 }
 0x196   : >> { %v630_v49 = vadd.f32 %v629_v42, %v4217_v29  ;;  %v624_v42 = vadd.f32 %v623_v33, %v4219_v30  ;;  %v652_v31 = vmul.f32 0.01, %v628_v10  ;;  %v649_v29 = vmul.f32 0.01, %v620_v9 }
 0x197   : >> { %v633_v43 = vpop.f32.mrf.mxu0  ;;  %v606_v30 = vadd.f32 %v605_v17, %v4245_v40  ;;  %v644_v17 = vmul.f32 0.01, %v608_v38 }
 0x198   : >> { %v634_v56 = vadd.f32 %v633_v43, %v4209_v26  ;;  %v653_v2 = vmul.f32 0.01, %v630_v49  ;;  %v651_v43 = vmul.f32 0.01, %v626_v63  ;;  %v668_v37 = vmax.f32 %v628_v10, %v652_v31 }
 0x199   : >> { %v635_v7 = vpop.f32.mrf.mxu0  ;;  %v3730_v31 = vmov 1983009808  }
 0x19a   : >> { %v636_v50 = vadd.f32 %v635_v7, %v4209_v26  ;;  %v654_v7 = vmul.f32 0.01, %v634_v56  ;;  %v616_v26 = vadd.f32 %v615_v25, %v4235_v36  ;;  %v669_v41 = vmax.f32 %v630_v49, %v653_v2 }
 0x19b   : >> { %v637_v57 = vpop.f32.mrf.mxu0  ;;  %v667_v25 = vmax.f32 %v626_v63, %v651_v43 }
 0x19c   : >> { %v638_v3 = vadd.f32 %v637_v57, %v4204_v24  ;;  %v655_v13 = vmul.f32 0.01, %v636_v50  ;;  %v618_v57 = vadd.f32 %v617_v27, %v4230_v34  ;;  %v647_v33 = vmul.f32 0.01, %v616_v26 }
 0x19d   : >> { %v639_v55 = vpop.f32.mrf.mxu0  ;;  %v645_v27 = vmul.f32 0.01, %v610_v35  ;;  %v680_v2 = vpack.c.bf16 %v669_v41, %v667_v25 }
 0x19e   : >> { %v656_v14 = vmul.f32 0.01, %v638_v3  ;;  %v640_v62 = vadd.f32 %v639_v55, %v4204_v24  ;;  %v671_v51 = vmax.f32 %v636_v50, %v655_v13  ;;  %v650_v55 = vmul.f32 0.01, %v624_v42 }
 0x19f   : >> { %v670_v24 = vmax.f32 %v634_v56, %v654_v7  ;;  %v648_v20 = vmul.f32 0.01, %v618_v57  ;;  %v643_v13 = vmul.f32 0.01, %v606_v30  ;;  %v663_v23 = vmax.f32 %v616_v26, %v647_v33 }
 0x1a0   : >> { %v657_v61 = vmul.f32 0.01, %v640_v62  ;;  %v672_v0 = vmax.f32 %v638_v3, %v656_v14  ;;  %v665_v14 = vmax.f32 %v620_v9, %v649_v29  ;;  %v666_v36 = vmax.f32 %v624_v42, %v650_v55  ;;  %v674_v3 = vld [vmem:[%s4849_s5] sm:$0x1] }
 0x1a1   : >> { %v664_v49 = vmax.f32 %v618_v57, %v648_v20  ;;  %v743_v29 = vunpack.c.l.s4 %v3730_v31 }
 0x1a2   : >> { %v673_v5 = vmax.f32 %v640_v62, %v657_v61  ;;  %v681_v34 = vpack.c.bf16 %v672_v0, %v670_v24  ;;  %v604_v61 = vadd.f32 %v603_v15, %v4245_v40  ;;  %v646_v62 = vmul.f32 0.01, %v614_v45 }
 0x1a3   : >> { %v678_v39 = vpack.c.bf16 %v665_v14, %v663_v23  ;;  %v659_v0 = vmax.f32 %v606_v30, %v643_v13  ;;  %v744_v41 = vunpack.c.0.s8 %v743_v29  ;;  %v4465_v14 = vsub.s32 1, %v4015_v58 }
 0x1a4   : >> { %v682_v53 = vpack.c.bf16 %v673_v5, %v671_v51  ;;  %v679_v51 = vpack.c.bf16 %v668_v37, %v666_v36  ;;  %v661_v5 = vmax.f32 %v610_v35, %v645_v27  ;;  %v642_v19 = vmul.f32 0.01, %v604_v61 }
 0x1a5   : >> { %v662_v50 = vmax.f32 %v614_v45, %v646_v62  ;;  %v4884_v37 = vmov 0  }
 0x1a6   : >> { %700 = vmatprep.subr.bf16.mxu1 %v682_v53  ;;  %v660_v53 = vmax.f32 %v608_v38, %v644_v17  ;;  %v676_v63 = vpack.c.bf16 %v661_v5, %v659_v0  ;;  %v658_v40 = vmax.f32 %v604_v61, %v642_v19 }
 0x1a7   : >> { %701 = vmatpush1.bf16.msra.mxu1 %v681_v34  ;;  %v677_v56 = vpack.c.bf16 %v664_v49, %v662_v50 }
 0x1a8   : >> { %702 = vmatprep.subr.bf16.mxu1 %v680_v2  ;;  %v675_v15 = vpack.c.bf16 %v660_v53, %v658_v40  ;;  %v4468_v2 = vsub.s32 3, %v4015_v58 }
 0x1ab   : >> { %703 = vmatpush1.bf16.msra.mxu1 %v679_v51 }
 0x1ac   : >> { %704 = vmatprep.subr.bf16.mxu1 %v678_v39 }
 0x1af   : >> { %705 = vmatpush1.bf16.msra.mxu1 %v677_v56 }
 0x1b0   : >> { %706 = vmatprep.subr.bf16.mxu1 %v676_v63 }
 0x1b3   : >> { %707 = vmatpush1.bf16.msra.mxu1 %v675_v15 }
 0x1b6   : >> { %3306 = vmatmul.mubr.msk.bf16.vlgmr.msra.gmra.mxu1 %vm556_vm0, %v674_v3 }
 0x1b7   : >> { %1077 = vmatprep.mubr.bf16.mxu1 %v4884_v37 }
 0x276   : >> { %v726_v45 = vpop.f32.mrf.mxu1 }
 0x277   : >> { %v727_v9 = vadd.f32 %v726_v45, %v4261_v46 }
 0x278   : >> { %v728_v10 = vpop.f32.mrf.mxu1 }
 0x279   : >> { %3610 = vtanh.f32 %v727_v9  ;;  %v729_v38 = vadd.f32 %v728_v10, %v4261_v46  ;;  %v4459_v46 = vsub.s32 %v744_v41, %v4015_v58 }
 0x27a   : >> { %v730_v42 = vpop.f32.mrf.mxu1 }
 0x27b   : >> { %3612 = vtanh.f32 %v729_v38  ;;  %v754_v25 = vcombine.low %v727_v9, %v729_v38 }
 0x27c   : >> { %v731_v7 = vpop.f32.mrf.mxu1 }
 0x27d   : >> { %v761_v27 = vrot.slane %v754_v25, %v4459_v46 }
 0x286   : >> { %v4452_v26 = vpop.eup %3610 }
 0x287   : >> { %v735_v43 = vmul.f32 1.442695, %v4452_v26 }
 0x288   : >> { %v4455_v35 = vpop.eup %3612 }
 0x289   : >> { %v737_v57 = vmul.f32 1.442695, %v4455_v35  ;;  %3614 = vpow2.f32 %v735_v43 }
 0x28b   : >> { %3616 = vpow2.f32 %v737_v57 }
 0x296   : >> { %v3615_v55 = vpop.eup %3614 }
 0x298   : >> { %v3617_v24 = vpop.eup %3616 }
 0x299   : >> { %v741_v30 = vcombine.low %v3615_v55, %v3617_v24 }
 0x29b   : >> { %v748_v33 = vrot.slane %v741_v30, %v4459_v46 }
 0x29d   : >> { %v749_v20 = vrot.slane %v748_v33, 7 }
 0x29f   : >> { %v751_v34 = vmul.f32 %v749_v20, %v4039_v1 }
 0x2a1   : >> { %v4470_v61 = vadd.f32 %v761_v27, %v751_v34 }
 0x2a3   : >> { %v819_v62 = vrot.slane %v4470_v61, %v4465_v14  ;;  %v823_v36 = vrot.slane %v4470_v61, %v4468_v2 }
 0x2a5   : >> { %v829_v13 = vrot.slane %v819_v62, %v4465_v14  ;;  %v833_v1 = vrot.slane %v823_v36, %v4465_v14 }
 0x2a7   : >> { %v847_v23 = vmul.f32 %v833_v1, %v4256_v44  ;;  %v849_v17 = vmul.f32 %v833_v1, %v4271_v48  ;;  %v846_v49 = vmul.f32 %v829_v13, %v4256_v44  ;;  %v848_v51 = vmul.f32 %v829_v13, %v4271_v48 }
 0x2a8   : >> { %v843_v5 = vmul.f32 %v833_v1, %v4282_v52  ;;  %v845_v39 = vmul.f32 %v833_v1, %v4297_v60  ;;  %v842_v19 = vmul.f32 %v829_v13, %v4282_v52  ;;  %v844_v50 = vmul.f32 %v829_v13, %v4297_v60 }
 0x2a9   : >> { %v912_v0 = vadd.f32 %v4269_v47, %v847_v23  ;;  %v914_v53 = vadd.f32 %v4287_v54, %v849_v17  ;;  %v911_v56 = vadd.f32 %v4269_v47, %v846_v49  ;;  %v913_v63 = vadd.f32 %v4287_v54, %v848_v51 }
 0x2aa   : >> { %v908_v44 = vadd.f32 %v4295_v59, %v843_v5  ;;  %v910_v48 = vadd.f32 %v4313_v6, %v845_v39  ;;  %v907_v40 = vadd.f32 %v4295_v59, %v842_v19  ;;  %v909_v15 = vadd.f32 %v4313_v6, %v844_v50 }
 0x2ab   : >> { %v928_v3 = vmul.f32 0.01, %v912_v0  ;;  %v930_v52 = vmul.f32 0.01, %v914_v53  ;;  %v927_v45 = vmul.f32 0.01, %v911_v56  ;;  %v839_v60 = vmul.f32 %v833_v1, %v4308_v4 }
 0x2ac   : >> { %v929_v9 = vmul.f32 0.01, %v913_v63  ;;  %v924_v10 = vmul.f32 0.01, %v908_v44  ;;  %v926_v38 = vmul.f32 0.01, %v910_v48  ;;  %v841_v47 = vmul.f32 %v833_v1, %v4323_v12 }
 0x2ad   : >> { %v944_v42 = vmax.f32 %v912_v0, %v928_v3  ;;  %v946_v54 = vmax.f32 %v914_v53, %v930_v52  ;;  %v943_v7 = vmax.f32 %v911_v56, %v927_v45  ;;  %v923_v43 = vmul.f32 0.01, %v907_v40 }
 0x2ae   : >> { %v945_v57 = vmax.f32 %v913_v63, %v929_v9  ;;  %v940_v31 = vmax.f32 %v908_v44, %v924_v10  ;;  %v942_v29 = vmax.f32 %v910_v48, %v926_v38  ;;  %v925_v59 = vmul.f32 0.01, %v909_v15  ;;  %v3592_v9 = vld [vmem:[%s4847_s3 + $0x30] sm:$0xff]   ;;  %v3593_v10 = vld [vmem:[%s4847_s3 + $0x38] sm:$0xff]  }
 0x2af   : >> { %v963_v41 = vpack.c.bf16 %v946_v54, %v944_v42  ;;  %v939_v6 = vmax.f32 %v907_v40, %v923_v43  ;;  %v904_v55 = vadd.f32 %v4321_v11, %v839_v60  ;;  %v906_v24 = vadd.f32 %v4339_v18, %v841_v47 }
 0x2b0   : >> { %v962_v30 = vpack.c.bf16 %v945_v57, %v943_v7  ;;  %v961_v33 = vpack.c.bf16 %v942_v29, %v940_v31  ;;  %v941_v25 = vmax.f32 %v909_v15, %v925_v59  ;;  %v838_v20 = vmul.f32 %v829_v13, %v4308_v4 }
 0x2b1   : >> { %1053 = vmatprep.subr.bf16.mxu1 %v963_v41  ;;  %v920_v34 = vmul.f32 0.01, %v904_v55  ;;  %v922_v27 = vmul.f32 0.01, %v906_v24  ;;  %v840_v62 = vmul.f32 %v829_v13, %v4323_v12  ;;  %v835_v36 = vmul.f32 %v833_v1, %v4334_v16 }
 0x2b2   : >> { %1054 = vmatpush1.bf16.msra.mxu1 %v962_v30  ;;  %v960_v23 = vpack.c.bf16 %v941_v25, %v939_v6  ;;  %v903_v17 = vadd.f32 %v4321_v11, %v838_v20  ;;  %v837_v49 = vmul.f32 %v833_v1, %v4349_v22  ;;  %v834_v51 = vmul.f32 %v829_v13, %v4334_v16 }
 0x2b3   : >> { %1055 = vmatprep.subr.bf16.mxu1 %v961_v33  ;;  %v936_v5 = vmax.f32 %v904_v55, %v920_v34  ;;  %v938_v39 = vmax.f32 %v906_v24, %v922_v27  ;;  %v905_v4 = vadd.f32 %v4339_v18, %v840_v62  ;;  %v900_v19 = vadd.f32 %v4347_v21, %v835_v36  ;;  %v4885_v34 = vld [vmem:[#allocation7_spill] sm:$0xff]  ;;  %v4886_v62 = vld [vmem:[#allocation8_spill] sm:$0xff] }
 0x2b4   : >> { %v919_v50 = vmul.f32 0.01, %v903_v17  ;;  %v902_v12 = vadd.f32 %v4365_v32, %v837_v49  ;;  %v836_v0 = vmul.f32 %v829_v13, %v4349_v22  ;;  %v899_v53 = vadd.f32 %v4347_v21, %v834_v51  ;;  %v3590_v13 = vld [vmem:[%s4847_s3 + $0x20] sm:$0xff]  }
 0x2b5   : >> { %v959_v56 = vpack.c.bf16 %v938_v39, %v936_v5  ;;  %v921_v11 = vmul.f32 0.01, %v905_v4  ;;  %v916_v63 = vmul.f32 0.01, %v900_v19 }
 0x2b6   : >> { %1056 = vmatpush1.bf16.msra.mxu1 %v960_v23  ;;  %v935_v1 = vmax.f32 %v903_v17, %v919_v50  ;;  %v918_v16 = vmul.f32 0.01, %v902_v12  ;;  %v901_v44 = vadd.f32 %v4365_v32, %v836_v0  ;;  %v915_v48 = vmul.f32 0.01, %v899_v53  ;;  %v3591_v32 = vld [vmem:[%s4847_s3 + $0x28] sm:$0xff]   ;;  %v4887_v23 = vld [vmem:[#allocation11_spill] sm:$0xff] }
 0x2b7   : >> { %1057 = vmatprep.subr.bf16.mxu1 %v959_v56  ;;  %v937_v18 = vmax.f32 %v905_v4, %v921_v11  ;;  %v932_v40 = vmax.f32 %v900_v19, %v916_v63  ;;  %v4888_v0 = vld [vmem:[#allocation9_spill] sm:$0xff] }
 0x2b8   : >> { %v934_v15 = vmax.f32 %v902_v12, %v918_v16  ;;  %v917_v3 = vmul.f32 0.01, %v901_v44  ;;  %v931_v45 = vmax.f32 %v899_v53, %v915_v48  ;;  %v4889_v11 = vld [vmem:[#allocation13_spill] sm:$0xff] }
 0x2b9   : >> { %v958_v52 = vpack.c.bf16 %v937_v18, %v935_v1 }
 0x2ba   : >> { %v957_v60 = vpack.c.bf16 %v934_v15, %v932_v40  ;;  %v933_v22 = vmax.f32 %v901_v44, %v917_v3 }
 0x2bb   : >> { %1058 = vmatpush1.bf16.msra.mxu1 %v958_v52 }
 0x2bc   : >> { %1059 = vmatprep.subr.bf16.mxu1 %v957_v60  ;;  %v956_v21 = vpack.c.bf16 %v933_v22, %v931_v45  ;;  %v4890_v45 = vld [vmem:[#allocation10_spill] sm:$0xff] }
 0x2bf   : >> { %1060 = vmatpush1.bf16.msra.mxu1 %v956_v21 }
 0x2c2   : >> { %3343 = vmatmul.mubr.msk.bf16.vlgmr.msra.gmra.mxu1 %vm556_vm0, %v3590_v13 }
 0x2c3   : >> { %1087 = vmatprep.mubr.bf16.mxu1 %v4884_v37 }
 0x2ca   : >> { %3344 = vmatmul.mubr.msk.bf16.gmra.mxu1 %vm556_vm0, %v3591_v32 }
 0x2cb   : >> { %1097 = vmatprep.mubr.bf16.mxu1 %v4884_v37 }
 0x2d2   : >> { %3345 = vmatmul.mubr.msk.bf16.gmra.mxu1 %vm556_vm0, %v3592_v9 }
 0x2d3   : >> { %1107 = vmatprep.mubr.bf16.mxu1 %v4884_v37 }
 0x2da   : >> { %3346 = vmatmul.mubr.msk.bf16.gmra.mxu1 %vm556_vm0, %v3593_v10 }
 0x2db   : >> { %1681 = vmatprep.mubr.bf16.mxu1 %v4884_v37 }
 0x382   : >> { %v1079_v38 = vpop.f32.mrf.mxu1 }
 0x384   : >> { %v1081_v47 = vpop.f32.mrf.mxu1 }
 0x385   : >> { %v1082_v60 = vadd.f32 %v1081_v47, %v4890_v45 }
 0x386   : >> { %v1083_v42 = vpop.f32.mrf.mxu1 }
 0x387   : >> { %v1084_v32 = vadd.f32 %v1083_v42, %v4889_v11 }
 0x388   : >> { %v1085_v54 = vpop.f32.mrf.mxu1 }
 0x389   : >> { %v1086_v63 = vadd.f32 %v1085_v54, %v4889_v11  ;;  %v1120_v47 = vmul.f32 0.01, %v1084_v32 }
 0x38a   : >> { %v1089_v7 = vpop.f32.mrf.mxu1 }
 0x38b   : >> { %v1090_v15 = vadd.f32 %v1089_v7, %v4888_v0 }
 0x38c   : >> { %v1091_v43 = vpop.f32.mrf.mxu1 }
 0x38e   : >> { %v1093_v57 = vpop.f32.mrf.mxu1 }
 0x38f   : >> { %v1094_v1 = vadd.f32 %v1093_v57, %v4887_v23 }
 0x390   : >> { %v1095_v31 = vpop.f32.mrf.mxu1 }
 0x391   : >> { %v1096_v17 = vadd.f32 %v1095_v31, %v4887_v23  ;;  %v1124_v9 = vmul.f32 0.01, %v1094_v1  ;;  %v3347_v23 = vld [vmem:[%s4849_s5 + $0x1] sm:$0x1] }
 0x392   : >> { %v1099_v29 = vpop.f32.mrf.mxu1 }
 0x393   : >> { %v1100_v50 = vadd.f32 %v1099_v29, %v4885_v34  ;;  %v1080_v29 = vadd.f32 %v1079_v38, %v4890_v45 }
 0x394   : >> { %v1101_v59 = vpop.f32.mrf.mxu1 }
 0x395   : >> { %v1102_v27 = vadd.f32 %v1101_v59, %v4885_v34  ;;  %v1126_v3 = vmul.f32 0.01, %v1100_v50  ;;  %v1122_v59 = vmul.f32 0.01, %v1090_v15  ;;  %v1136_v34 = vmax.f32 %v1084_v32, %v1120_v47 }
 0x396   : >> { %v1103_v41 = vpop.f32.mrf.mxu1 }
 0x397   : >> { %v1104_v49 = vadd.f32 %v1103_v41, %v4391_v8  ;;  %v1127_v53 = vmul.f32 0.01, %v1102_v27  ;;  %v1142_v7 = vmax.f32 %v1100_v50, %v1126_v3  ;;  %v1119_v41 = vmul.f32 0.01, %v1082_v60  ;;  %v3658_v3 = vld [vmem:[%s4024_s23] sm:$0xf] }
 0x398   : >> { %v1105_v6 = vpop.f32.mrf.mxu1 }
 0x399   : >> { %v1106_v30 = vadd.f32 %v1105_v6, %v4391_v8  ;;  %v1128_v16 = vmul.f32 0.01, %v1104_v49  ;;  %v1125_v8 = vmul.f32 0.01, %v1096_v17  ;;  %v1143_v21 = vmax.f32 %v1102_v27, %v1127_v53  ;;  %v1371_v53 = vpop.permute.xlu0 %1370 }
 0x39a   : >> { %v1109_v55 = vpop.f32.mrf.mxu1 }
 0x39b   : >> { %v1110_v25 = vadd.f32 %v1109_v55, %v4360_v28  ;;  %v1129_v5 = vmul.f32 0.01, %v1106_v30  ;;  %v1144_v10 = vmax.f32 %v1104_v49, %v1128_v16  ;;  %v1141_v57 = vmax.f32 %v1096_v17, %v1125_v8  ;;  %v4891_v49 = vld [vmem:[#allocation12_spill] sm:$0xff] }
 0x39c   : >> { %v1111_v24 = vpop.f32.mrf.mxu1  ;;  %v1140_v55 = vmax.f32 %v1094_v1, %v1124_v9  ;;  %v4893_v9 = vld [vmem:[#allocation6_spill] sm:$0xff] }
 0x39d   : >> { %v1112_v33 = vadd.f32 %v1111_v24, %v4360_v28  ;;  %v1130_v12 = vmul.f32 0.01, %v1110_v25  ;;  %v1092_v28 = vadd.f32 %v1091_v43, %v4888_v0  ;;  %v1145_v48 = vmax.f32 %v1106_v30, %v1129_v5  ;;  %v1277_v11 = vpop.permute.xlu0 %1276 }
 0x39e   : >> { %v1113_v20 = vpop.f32.mrf.mxu1  ;;  %v1121_v43 = vmul.f32 0.01, %v1086_v63  ;;  %v1156_v24 = vpack.c.bf16 %v1144_v10, %v1142_v7  ;;  %v4895_v7 = vld [vmem:[#allocation14_spill] sm:$0xff] }
 0x39f   : >> { %v1114_v36 = vadd.f32 %v1113_v20, %v4886_v62  ;;  %v1131_v39 = vmul.f32 0.01, %v1112_v33  ;;  %v1146_v52 = vmax.f32 %v1110_v25, %v1130_v12  ;;  %v1123_v22 = vmul.f32 0.01, %v1092_v28 }
 0x3a0   : >> { %v1115_v51 = vpop.f32.mrf.mxu1  ;;  %v1157_v31 = vpack.c.bf16 %v1145_v48, %v1143_v21  ;;  %v1137_v30 = vmax.f32 %v1086_v63, %v1121_v43  ;;  %v1138_v25 = vmax.f32 %v1090_v15, %v1122_v59  ;;  %v1135_v20 = vmax.f32 %v1082_v60, %v1119_v41 }
 0x3a1   : >> { %v1132_v4 = vmul.f32 0.01, %v1114_v36  ;;  %v1116_v19 = vadd.f32 %v1115_v51, %v4886_v62  ;;  %v1147_v18 = vmax.f32 %v1112_v33, %v1131_v39  ;;  %v1139_v6 = vmax.f32 %v1092_v28, %v1123_v22  ;;  %v1361_v8 = vpop.permute.xlu0 %1360 }
 0x3a2   : >> { %v1118_v33 = vmul.f32 0.01, %v1080_v29  ;;  %v1154_v27 = vpack.c.bf16 %v1140_v55, %v1138_v25  ;;  %v1153_v62 = vpack.c.bf16 %v1137_v30, %v1135_v20 }
 0x3a3   : >> { %v1133_v56 = vmul.f32 0.01, %v1116_v19  ;;  %v1148_v44 = vmax.f32 %v1114_v36, %v1132_v4  ;;  %v1155_v42 = vpack.c.bf16 %v1141_v57, %v1139_v6 }
 0x3a4   : >> { %v1134_v38 = vmax.f32 %v1080_v29, %v1118_v33  ;;  %v4894_v29 = vld [vmem:[#allocation15_spill] sm:$0xff] }
 0x3a5   : >> { %v1149_v40 = vmax.f32 %v1116_v19, %v1133_v56  ;;  %v1158_v54 = vpack.c.bf16 %v1148_v44, %v1146_v52  ;;  %v1376_v56 = vpop.permute.xlu1 %1375  ;;  %v1267_v60 = vpop.permute.xlu0 %1266 }
 0x3a6   : >> { %v1152_v36 = vpack.c.bf16 %v1136_v34, %v1134_v38 }
 0x3a7   : >> { %v1159_v13 = vpack.c.bf16 %v1149_v40, %v1147_v18 }
 0x3a9   : >> { %1178 = vmatprep.subr.bf16.mxu0 %v1159_v13  ;;  %v1282_v63 = vpop.permute.xlu1 %1281  ;;  %v4892_v13 = vld [vmem:[#allocation5_spill] sm:$0xff]  ;;  %v1351_v57 = vpop.permute.xlu0 %1350 }
 0x3aa   : >> { %1179 = vmatpush1.bf16.msra.mxu0 %v1158_v54 }
 0x3ab   : >> { %1180 = vmatprep.subr.bf16.mxu0 %v1157_v31 }
 0x3ad   : >> { %v1366_v48 = vpop.permute.xlu1 %1365 }
 0x3ae   : >> { %1181 = vmatpush1.bf16.msra.mxu0 %v1156_v24 }
 0x3af   : >> { %1182 = vmatprep.subr.bf16.mxu0 %v1155_v42 }
 0x3b1   : >> { %v1272_v22 = vpop.permute.xlu1 %1271 }
 0x3b2   : >> { %1183 = vmatpush1.bf16.msra.mxu0 %v1154_v27 }
 0x3b3   : >> { %1184 = vmatprep.subr.bf16.mxu0 %v1153_v62 }
 0x3b5   : >> { %v1356_v31 = vpop.permute.xlu1 %1355 }
 0x3b6   : >> { %1185 = vmatpush1.bf16.msra.mxu0 %v1152_v36 }
 0x3b9   : >> { %3349 = vmatmul.mubr.msk.bf16.vlgmr.msra.gmra.mxu0 %vm556_vm0, %v3347_v23 }
 0x3ba   : >> { %1556 = vmatprep.mubr.bf16.mxu0 %v4884_v37 }
 0x479   : >> { %v1204_v17 = vpop.f32.mrf.mxu0 }
 0x47a   : >> { %v1205_v51 = vadd.f32 %v1204_v17, %v4891_v49 }
 0x47b   : >> { %v1206_v5 = vpop.f32.mrf.mxu0 }
 0x47c   : >> { %3618 = vtanh.f32 %v1205_v51  ;;  %v1207_v39 = vadd.f32 %v1206_v5, %v4891_v49  ;;  %v1257_v5 = vpop.permute.xlu0 %1256 }
 0x47d   : >> { %v1208_v4 = vpop.f32.mrf.mxu0 }
 0x47e   : >> { %3620 = vtanh.f32 %v1207_v39  ;;  %v1231_v1 = vcombine.low %v1205_v51, %v1207_v39 }
 0x47f   : >> { %v1209_v19 = vpop.f32.mrf.mxu0 }
 0x480   : >> { %v1238_v40 = vrot.slane %v1231_v1, %v4459_v46 }
 0x482   : >> { %v3350_v45 = vrot.slane %v1238_v40, 9 }
 0x489   : >> { %v4553_v50 = vpop.eup %3618 }
 0x48a   : >> { %v1213_v12 = vmul.f32 1.442695, %v4553_v50 }
 0x48b   : >> { %v4556_v0 = vpop.eup %3620 }
 0x48c   : >> { %v1215_v28 = vmul.f32 1.442695, %v4556_v0  ;;  %3622 = vpow2.f32 %v1213_v12 }
 0x48e   : >> { %3624 = vpow2.f32 %v1215_v28  ;;  %v1262_v28 = vpop.permute.xlu1 %1261 }
 0x499   : >> { %v3623_v16 = vpop.eup %3622 }
 0x49b   : >> { %v3625_v44 = vpop.eup %3624 }
 0x49c   : >> { %v1219_v18 = vcombine.low %v3623_v16, %v3625_v44 }
 0x49e   : >> { %v1226_v15 = vrot.slane %v1219_v18, %v4459_v46 }
 0x4a0   : >> { %v1228_v52 = vmul.f32 %v3658_v3, %v1226_v15 }
 0x4a2   : >> { %v4562_v21 = vadd.f32 %v3350_v45, %v1228_v52 }
 0x4a4   : >> { %v1298_v32 = vrot.slane %v4562_v21, %v4892_v13  ;;  %v1302_v10 = vrot.slane %v4562_v21, %v4893_v9 }
 0x4a6   : >> { %v4569_v54 = vrot.slane %v1298_v32, %v4892_v13  ;;  %v1312_v43 = vrot.slane %v1302_v10, %v4892_v13 }
 0x4a8   : >> { %v1326_v59 = vmul.f32 %v1312_v43, %v4894_v29  ;;  %v1328_v41 = vmul.f32 %v1312_v43, %v4895_v7  ;;  %v1325_v6 = vmul.f32 %v4569_v54, %v4894_v29  ;;  %v1327_v47 = vmul.f32 %v4569_v54, %v4895_v7 }
 0x4a9   : >> { %v1322_v55 = vmul.f32 %v1312_v43, %v1277_v11  ;;  %v1324_v24 = vmul.f32 %v1312_v43, %v1282_v63  ;;  %v1321_v30 = vmul.f32 %v4569_v54, %v1277_v11  ;;  %v1323_v42 = vmul.f32 %v4569_v54, %v1282_v63 }
 0x4aa   : >> { %v1391_v33 = vadd.f32 %v1371_v53, %v1326_v59  ;;  %v1393_v25 = vadd.f32 %v1376_v56, %v1328_v41  ;;  %v1390_v20 = vadd.f32 %v1371_v53, %v1325_v6  ;;  %v1392_v34 = vadd.f32 %v1376_v56, %v1327_v47  ;;  %v1341_v41 = vpop.permute.xlu0 %1340 }
 0x4ab   : >> { %v1387_v27 = vadd.f32 %v1361_v8, %v1322_v55  ;;  %v1389_v62 = vadd.f32 %v1366_v48, %v1324_v24  ;;  %v1386_v38 = vadd.f32 %v1361_v8, %v1321_v30  ;;  %v1388_v36 = vadd.f32 %v1366_v48, %v1323_v42  ;;  %v1346_v30 = vpop.permute.xlu1 %1345 }
 0x4ac   : >> { %v1407_v23 = vmul.f32 0.01, %v1391_v33  ;;  %v1409_v17 = vmul.f32 0.01, %v1393_v25  ;;  %v1406_v49 = vmul.f32 0.01, %v1390_v20  ;;  %v1318_v51 = vmul.f32 %v1312_v43, %v1267_v60 }
 0x4ad   : >> { %v1408_v39 = vmul.f32 0.01, %v1392_v34  ;;  %v1403_v4 = vmul.f32 0.01, %v1387_v27  ;;  %v1405_v19 = vmul.f32 0.01, %v1389_v62  ;;  %v1320_v12 = vmul.f32 %v1312_v43, %v1272_v22 }
 0x4ae   : >> { %v1423_v11 = vmax.f32 %v1391_v33, %v1407_v23  ;;  %v1425_v63 = vmax.f32 %v1393_v25, %v1409_v17  ;;  %v1422_v1 = vmax.f32 %v1390_v20, %v1406_v49  ;;  %v1402_v16 = vmul.f32 0.01, %v1386_v38 }
 0x4af   : >> { %v1424_v53 = vmax.f32 %v1392_v34, %v1408_v39  ;;  %v1419_v56 = vmax.f32 %v1387_v27, %v1403_v4  ;;  %v1421_v44 = vmax.f32 %v1389_v62, %v1405_v19  ;;  %v1404_v18 = vmul.f32 0.01, %v1388_v36 }
 0x4b0   : >> { %v1442_v8 = vpack.c.bf16 %v1425_v63, %v1423_v11  ;;  %v1418_v48 = vmax.f32 %v1386_v38, %v1402_v16  ;;  %v1383_v40 = vadd.f32 %v1351_v57, %v1318_v51  ;;  %v1385_v15 = vadd.f32 %v1356_v31, %v1320_v12  ;;  %v3595_v11 = vld [vmem:[%s4847_s3 + $0x48] sm:$0xff]   ;;  %v3596_v63 = vld [vmem:[%s4847_s3 + $0x50] sm:$0xff]  }
 0x4b1   : >> { %v1441_v3 = vpack.c.bf16 %v1424_v53, %v1422_v1  ;;  %v1440_v52 = vpack.c.bf16 %v1421_v44, %v1419_v56  ;;  %v1420_v45 = vmax.f32 %v1388_v36, %v1404_v18  ;;  %v1317_v32 = vmul.f32 %v4569_v54, %v1267_v60  ;;  %v3597_v1 = vld [vmem:[%s4847_s3 + $0x58] sm:$0xff]  }
 0x4b2   : >> { %1532 = vmatprep.subr.bf16.mxu0 %v1442_v8  ;;  %v1399_v10 = vmul.f32 0.01, %v1383_v40  ;;  %v1401_v29 = vmul.f32 0.01, %v1385_v15  ;;  %v1319_v59 = vmul.f32 %v4569_v54, %v1272_v22  ;;  %v1314_v7 = vmul.f32 %v1312_v43, %v1257_v5 }
 0x4b3   : >> { %1533 = vmatpush1.bf16.msra.mxu0 %v1441_v3  ;;  %v1439_v6 = vpack.c.bf16 %v1420_v45, %v1418_v48  ;;  %v1382_v47 = vadd.f32 %v1351_v57, %v1317_v32  ;;  %v1316_v55 = vmul.f32 %v1312_v43, %v1262_v28  ;;  %v1313_v24 = vmul.f32 %v4569_v54, %v1257_v5 }
 0x4b4   : >> { %1534 = vmatprep.subr.bf16.mxu0 %v1440_v52  ;;  %v1415_v42 = vmax.f32 %v1383_v40, %v1399_v10  ;;  %v1417_v33 = vmax.f32 %v1385_v15, %v1401_v29  ;;  %v1384_v25 = vadd.f32 %v1356_v31, %v1319_v59  ;;  %v1379_v20 = vadd.f32 %v1341_v41, %v1314_v7  ;;  %v1490_v15 = vpop.permute.xlu1 %1489  ;;  %v1485_v52 = vpop.permute.xlu0 %1484 }
 0x4b5   : >> { %v1398_v60 = vmul.f32 0.01, %v1382_v47  ;;  %v1381_v34 = vadd.f32 %v1346_v30, %v1316_v55  ;;  %v1315_v27 = vmul.f32 %v4569_v54, %v1262_v28  ;;  %v1378_v62 = vadd.f32 %v1341_v41, %v1313_v24  ;;  %v3594_v28 = vld [vmem:[%s4847_s3 + $0x40] sm:$0xff]  }
 0x4b6   : >> { %v1438_v22 = vpack.c.bf16 %v1417_v33, %v1415_v42  ;;  %v1400_v38 = vmul.f32 0.01, %v1384_v25  ;;  %v1395_v36 = vmul.f32 0.01, %v1379_v20 }
 0x4b7   : >> { %1535 = vmatpush1.bf16.msra.mxu0 %v1439_v6  ;;  %v1414_v23 = vmax.f32 %v1382_v47, %v1398_v60  ;;  %v1397_v57 = vmul.f32 0.01, %v1381_v34  ;;  %v1380_v43 = vadd.f32 %v1346_v30, %v1315_v27  ;;  %v1394_v17 = vmul.f32 0.01, %v1378_v62 }
 0x4b8   : >> { %1536 = vmatprep.subr.bf16.mxu0 %v1438_v22  ;;  %v1416_v49 = vmax.f32 %v1384_v25, %v1400_v38  ;;  %v1411_v51 = vmax.f32 %v1379_v20, %v1395_v36  ;;  %v1480_v10 = vpop.permute.xlu1 %1479  ;;  %v1475_v59 = vpop.permute.xlu0 %1474 }
 0x4b9   : >> { %v1413_v5 = vmax.f32 %v1381_v34, %v1397_v57  ;;  %v1396_v39 = vmul.f32 0.01, %v1380_v43  ;;  %v1410_v4 = vmax.f32 %v1378_v62, %v1394_v17 }
 0x4ba   : >> { %v1437_v31 = vpack.c.bf16 %v1416_v49, %v1414_v23 }
 0x4bb   : >> { %v1436_v19 = vpack.c.bf16 %v1413_v5, %v1411_v51  ;;  %v1412_v12 = vmax.f32 %v1380_v43, %v1396_v39 }
 0x4bc   : >> { %1537 = vmatpush1.bf16.msra.mxu0 %v1437_v31  ;;  %v1470_v6 = vpop.permute.xlu1 %1469  ;;  %v1465_v25 = vpop.permute.xlu0 %1464 }
 0x4bd   : >> { %1538 = vmatprep.subr.bf16.mxu0 %v1436_v19  ;;  %v1435_v54 = vpack.c.bf16 %v1412_v12, %v1410_v4 }
 0x4c0   : >> { %1539 = vmatpush1.bf16.msra.mxu0 %v1435_v54  ;;  %v1460_v57 = vpop.permute.xlu1 %1459 }
 0x4c3   : >> { %3387 = vmatmul.mubr.msk.bf16.vlgmr.msra.gmra.mxu0 %vm556_vm0, %v3594_v28  ;;  %v1455_v28 = vpop.permute.xlu0 %1454 }
 0x4c4   : >> { %1566 = vmatprep.mubr.bf16.mxu0 %v4884_v37 }
 0x4cb   : >> { %3388 = vmatmul.mubr.msk.bf16.gmra.mxu0 %vm556_vm0, %v3595_v11 }
 0x4cc   : >> { %1576 = vmatprep.mubr.bf16.mxu0 %v4884_v37 }
 0x4d3   : >> { %3389 = vmatmul.mubr.msk.bf16.gmra.mxu0 %vm556_vm0, %v3596_v63 }
 0x4d4   : >> { %1586 = vmatprep.mubr.bf16.mxu0 %v4884_v37 }
 0x4db   : >> { %3390 = vmatmul.mubr.msk.bf16.gmra.mxu0 %vm556_vm0, %v3597_v1 }
 0x4dc   : >> { %2159 = vmatprep.mubr.bf16.mxu0 %v4884_v37 }
 0x583   : >> { %v4604_v16 = vpop.f32.mrf.mxu0 }
 0x585   : >> { %v1560_v53 = vpop.f32.mrf.mxu0 }
 0x587   : >> { %v1562_v56 = vpop.f32.mrf.mxu0 }
 0x589   : >> { %v1564_v44 = vpop.f32.mrf.mxu0 }
 0x58a   : >> { %v1565_v51 = vadd.f32 %v1564_v44, %v1460_v57 }
 0x58b   : >> { %v1568_v18 = vpop.f32.mrf.mxu0 }
 0x58c   : >> { %v1569_v11 = vadd.f32 %v1568_v18, %v1465_v25  ;;  %v1600_v44 = vmul.f32 0.01, %v1565_v51 }
 0x58d   : >> { %v1570_v8 = vpop.f32.mrf.mxu0 }
 0x58e   : >> { %v1571_v43 = vadd.f32 %v1570_v8, %v1465_v25 }
 0x58f   : >> { %v1572_v48 = vpop.f32.mrf.mxu0 }
 0x590   : >> { %v1573_v5 = vadd.f32 %v1572_v48, %v1470_v6 }
 0x591   : >> { %v1574_v40 = vpop.f32.mrf.mxu0 }
 0x592   : >> { %v1575_v20 = vadd.f32 %v1574_v40, %v1470_v6  ;;  %v1561_v40 = vadd.f32 %v1560_v53, %v1455_v28  ;;  %v1603_v8 = vmul.f32 0.01, %v1573_v5 }
 0x593   : >> { %v1578_v3 = vpop.f32.mrf.mxu0 }
 0x594   : >> { %v1579_v36 = vadd.f32 %v1578_v3, %v1475_v59  ;;  %v1604_v4 = vmul.f32 0.01, %v1575_v20  ;;  %v1598_v18 = vmul.f32 0.01, %v1561_v40 }
 0x595   : >> { %v1580_v45 = vpop.f32.mrf.mxu0 }
 0x596   : >> { %v1581_v42 = vadd.f32 %v1580_v45, %v1475_v59  ;;  %v1605_v63 = vmul.f32 0.01, %v1579_v36  ;;  %v1563_v45 = vadd.f32 %v1562_v56, %v1460_v57  ;;  %v1620_v48 = vmax.f32 %v1575_v20, %v1604_v4  ;;  %v1765_v4 = vpop.permute.xlu1 %1764 }
 0x597   : >> { %v1582_v32 = vpop.f32.mrf.mxu0  ;;  %v1559_v59 = vadd.f32 %v4604_v16, %v1455_v28 }
 0x598   : >> { %v1583_v60 = vadd.f32 %v1582_v32, %v1480_v10  ;;  %v1606_v17 = vmul.f32 0.01, %v1581_v42  ;;  %v1599_v53 = vmul.f32 0.01, %v1563_v45 }
 0x599   : >> { %v1584_v29 = vpop.f32.mrf.mxu0 }
 0x59a   : >> { %v1585_v47 = vadd.f32 %v1584_v29, %v1480_v10  ;;  %v1607_v39 = vmul.f32 0.01, %v1583_v60  ;;  %v1622_v3 = vmax.f32 %v1581_v42, %v1606_v17  ;;  %v1615_v25 = vmax.f32 %v1563_v45, %v1599_v53  ;;  %v1849_v28 = vpop.permute.xlu1 %1848 }
 0x59b   : >> { %v1588_v7 = vpop.f32.mrf.mxu0  ;;  %v1243_v17 = vadd.f32 %v4553_v50, %v4452_v26 }
 0x59c   : >> { %v1589_v24 = vadd.f32 %v1588_v7, %v1485_v52  ;;  %v1608_v27 = vmul.f32 0.01, %v1585_v47  ;;  %v1623_v32 = vmax.f32 %v1583_v60, %v1607_v39  ;;  %v1601_v7 = vmul.f32 0.01, %v1569_v11 }
 0x59d   : >> { %v1590_v41 = vpop.f32.mrf.mxu0 }
 0x59e   : >> { %v1591_v55 = vadd.f32 %v1590_v41, %v1485_v52  ;;  %v1609_v23 = vmul.f32 0.01, %v1589_v24  ;;  %v1624_v19 = vmax.f32 %v1585_v47, %v1608_v27  ;;  %v1621_v41 = vmax.f32 %v1579_v36, %v1605_v63  ;;  %v3391_v27 = vld [vmem:[%s4849_s5 + $0x2] sm:$0x1]  ;;  %v1755_v63 = vpop.permute.xlu1 %1754 }
 0x59f   : >> { %v1592_v30 = vpop.f32.mrf.mxu0  ;;  %v1619_v47 = vmax.f32 %v1573_v5, %v1603_v8  ;;  %v1617_v42 = vmax.f32 %v1569_v11, %v1601_v7 }
 0x5a0   : >> { %v1593_v33 = vadd.f32 %v1592_v30, %v1490_v15  ;;  %v1610_v62 = vmul.f32 0.01, %v1591_v55  ;;  %v1625_v1 = vmax.f32 %v1589_v24, %v1609_v23  ;;  %v1636_v29 = vpack.c.bf16 %v1624_v19, %v1622_v3 }
 0x5a1   : >> { %v1594_v34 = vpop.f32.mrf.mxu0  ;;  %v1616_v24 = vmax.f32 %v1565_v51, %v1600_v44  ;;  %v1597_v30 = vmul.f32 0.01, %v1559_v59  ;;  %v1633_v20 = vpack.c.bf16 %v1619_v47, %v1617_v42  ;;  %v1244_v51 = vadd.f32 %v4556_v0, %v4455_v35 }
 0x5a2   : >> { %v1611_v22 = vmul.f32 0.01, %v1593_v33  ;;  %v1595_v38 = vadd.f32 %v1594_v34, %v1490_v15  ;;  %v1626_v12 = vmax.f32 %v1591_v55, %v1610_v62  ;;  %v1602_v15 = vmul.f32 0.01, %v1571_v43  ;;  %v1644_v62 = vpop.permute.xlu0 %1643 }
 0x5a3   : >> { %v1635_v55 = vpack.c.bf16 %v1623_v32, %v1621_v41  ;;  %v1613_v16 = vmax.f32 %v1559_v59, %v1597_v30 }
 0x5a4   : >> { %v1612_v49 = vmul.f32 0.01, %v1595_v38  ;;  %v1627_v31 = vmax.f32 %v1593_v33, %v1611_v22  ;;  %v1618_v6 = vmax.f32 %v1571_v43, %v1602_v15  ;;  %v1614_v33 = vmax.f32 %v1561_v40, %v1598_v18  ;;  %v1839_v15 = vpop.permute.xlu1 %1838 }
 0x5a5   : >> { %v1631_v34 = vpack.c.bf16 %v1615_v25, %v1613_v16 }
 0x5a6   : >> { %v1628_v54 = vmax.f32 %v1595_v38, %v1612_v49  ;;  %v1637_v10 = vpack.c.bf16 %v1627_v31, %v1625_v1  ;;  %v1634_v56 = vpack.c.bf16 %v1620_v48, %v1618_v6  ;;  %v1632_v60 = vpack.c.bf16 %v1616_v24, %v1614_v33  ;;  %v1770_v19 = vpop.permute.xlu0 %1769 }
 0x5a8   : >> { %v1638_v52 = vpack.c.bf16 %v1628_v54, %v1626_v12  ;;  %v1745_v32 = vpop.permute.xlu1 %1744 }
 0x5aa   : >> { %1657 = vmatprep.subr.bf16.mxu1 %v1638_v52  ;;  %v1854_v11 = vpop.permute.xlu0 %1853 }
 0x5ab   : >> { %1658 = vmatpush1.bf16.msra.mxu1 %v1637_v10 }
 0x5ac   : >> { %1659 = vmatprep.subr.bf16.mxu1 %v1636_v29  ;;  %v1829_v41 = vpop.permute.xlu1 %1828 }
 0x5ae   : >> { %v1760_v1 = vpop.permute.xlu0 %1759 }
 0x5af   : >> { %1660 = vmatpush1.bf16.msra.mxu1 %v1635_v55 }
 0x5b0   : >> { %1661 = vmatprep.subr.bf16.mxu1 %v1634_v56 }
 0x5b2   : >> { %v1844_v35 = vpop.permute.xlu0 %1843 }
 0x5b3   : >> { %1662 = vmatpush1.bf16.msra.mxu1 %v1633_v20 }
 0x5b4   : >> { %1663 = vmatprep.subr.bf16.mxu1 %v1632_v60 }
 0x5b6   : >> { %v1750_v10 = vpop.permute.xlu0 %1749 }
 0x5b7   : >> { %1664 = vmatpush1.bf16.msra.mxu1 %v1631_v34 }
 0x5ba   : >> { %3393 = vmatmul.mubr.msk.bf16.vlgmr.msra.gmra.mxu1 %vm556_vm0, %v3391_v27  ;;  %v1834_v18 = vpop.permute.xlu0 %1833 }
 0x5bb   : >> { %2034 = vmatprep.mubr.bf16.mxu1 %v4884_v37 }
 0x67a   : >> { %v1683_v22 = vpop.f32.mrf.mxu1 }
 0x67b   : >> { %v1684_v38 = vadd.f32 %v1683_v22, %v1644_v62 }
 0x67c   : >> { %v1685_v36 = vpop.f32.mrf.mxu1 }
 0x67d   : >> { %3626 = vtanh.f32 %v1684_v38  ;;  %v1686_v23 = vadd.f32 %v1685_v36, %v1644_v62 }
 0x67e   : >> { %v1687_v57 = vpop.f32.mrf.mxu1 }
 0x67f   : >> { %3628 = vtanh.f32 %v1686_v23  ;;  %v1711_v3 = vcombine.low %v1684_v38, %v1686_v23  ;;  %v1735_v23 = vpop.permute.xlu1 %1734 }
 0x680   : >> { %v1688_v43 = vpop.f32.mrf.mxu1 }
 0x681   : >> { %v1718_v8 = vrot.slane %v1711_v3, %v4459_v46 }
 0x68a   : >> { %v3627_v49 = vpop.eup %3626 }
 0x68b   : >> { %v1692_v5 = vmul.f32 1.442695, %v3627_v49  ;;  %v4616_v39 = vadd.f32 %v3627_v49, %v1243_v17 }
 0x68c   : >> { %v3629_v31 = vpop.eup %3628 }
 0x68d   : >> { %v1694_v12 = vmul.f32 1.442695, %v3629_v31  ;;  %v4618_v54 = vadd.f32 %v3629_v31, %v1244_v51  ;;  %3630 = vpow2.f32 %v1692_v5  ;;  %v1740_v51 = vpop.permute.xlu0 %1739 }
 0x68f   : >> { %3632 = vpow2.f32 %v1694_v12 }
 0x69a   : >> { %v3631_v26 = vpop.eup %3630 }
 0x69c   : >> { %v3633_v50 = vpop.eup %3632 }
 0x69d   : >> { %v1698_v40 = vcombine.low %v3631_v26, %v3633_v50 }
 0x69f   : >> { %v1705_v0 = vrot.slane %v1698_v40, %v4459_v46 }
 0x6a1   : >> { %v1706_v52 = vrot.slane %v1705_v0, 7 }
 0x6a3   : >> { %v1708_v45 = vmul.f32 %v1706_v52, %v4470_v61 }
 0x6a5   : >> { %v4623_v44 = vadd.f32 %v1718_v8, %v1708_v45 }
 0x6a7   : >> { %v1776_v48 = vrot.slane %v4623_v44, %v4465_v14  ;;  %v1780_v29 = vrot.slane %v4623_v44, %v4468_v2 }
 0x6a9   : >> { %v4630_v59 = vrot.slane %v1776_v48, %v4465_v14  ;;  %v1790_v7 = vrot.slane %v1780_v29, %v4465_v14  ;;  %v1819_v29 = vpop.permute.xlu1 %1818 }
 0x6ab   : >> { %v1804_v61 = vmul.f32 %v1790_v7, %v1765_v4  ;;  %v1806_v6 = vmul.f32 %v1790_v7, %v1770_v19  ;;  %v1803_v53 = vmul.f32 %v4630_v59, %v1765_v4  ;;  %v1805_v47 = vmul.f32 %v4630_v59, %v1770_v19 }
 0x6ac   : >> { %v1800_v55 = vmul.f32 %v1790_v7, %v1755_v63  ;;  %v1802_v24 = vmul.f32 %v1790_v7, %v1760_v1  ;;  %v1799_v56 = vmul.f32 %v4630_v59, %v1755_v63  ;;  %v1801_v30 = vmul.f32 %v4630_v59, %v1760_v1 }
 0x6ad   : >> { %v1869_v42 = vadd.f32 %v1849_v28, %v1804_v61  ;;  %v1871_v33 = vadd.f32 %v1854_v11, %v1806_v6  ;;  %v1868_v25 = vadd.f32 %v1849_v28, %v1803_v53  ;;  %v1870_v20 = vadd.f32 %v1854_v11, %v1805_v47 }
 0x6ae   : >> { %v1865_v60 = vadd.f32 %v1839_v15, %v1800_v55  ;;  %v1867_v16 = vadd.f32 %v1844_v35, %v1802_v24  ;;  %v1864_v34 = vadd.f32 %v1839_v15, %v1799_v56  ;;  %v1866_v27 = vadd.f32 %v1844_v35, %v1801_v30  ;;  %v1824_v55 = vpop.permute.xlu0 %1823 }
 0x6af   : >> { %v1885_v62 = vmul.f32 0.01, %v1869_v42  ;;  %v1887_v22 = vmul.f32 0.01, %v1871_v33  ;;  %v1884_v38 = vmul.f32 0.01, %v1868_v25  ;;  %v1796_v36 = vmul.f32 %v1790_v7, %v1745_v32 }
 0x6b0   : >> { %v1886_v57 = vmul.f32 0.01, %v1870_v20  ;;  %v1881_v43 = vmul.f32 0.01, %v1865_v60  ;;  %v1883_v17 = vmul.f32 0.01, %v1867_v16  ;;  %v1798_v49 = vmul.f32 %v1790_v7, %v1750_v10 }
 0x6b1   : >> { %v1901_v5 = vmax.f32 %v1869_v42, %v1885_v62  ;;  %v1903_v31 = vmax.f32 %v1871_v33, %v1887_v22  ;;  %v1900_v4 = vmax.f32 %v1868_v25, %v1884_v38  ;;  %v1880_v19 = vmul.f32 0.01, %v1864_v34 }
 0x6b2   : >> { %v1902_v12 = vmax.f32 %v1870_v20, %v1886_v57  ;;  %v1897_v28 = vmax.f32 %v1865_v60, %v1881_v43  ;;  %v1899_v11 = vmax.f32 %v1867_v16, %v1883_v17  ;;  %v1882_v63 = vmul.f32 0.01, %v1866_v27  ;;  %v3598_v17 = vld [vmem:[%s4847_s3 + $0x60] sm:$0xff]  }
 0x6b3   : >> { %v1920_v1 = vpack.c.bf16 %v1903_v31, %v1901_v5  ;;  %v1896_v26 = vmax.f32 %v1864_v34, %v1880_v19  ;;  %v1861_v50 = vadd.f32 %v1829_v41, %v1796_v36  ;;  %v1863_v40 = vadd.f32 %v1834_v18, %v1798_v49  ;;  %v3599_v49 = vld [vmem:[%s4847_s3 + $0x68] sm:$0xff]   ;;  %v3601_v5 = vld [vmem:[%s4847_s3 + $0x78] sm:$0xff]  }
 0x6b4   : >> { %v1919_v15 = vpack.c.bf16 %v1902_v12, %v1900_v4  ;;  %v1918_v35 = vpack.c.bf16 %v1899_v11, %v1897_v28  ;;  %v1898_v0 = vmax.f32 %v1866_v27, %v1882_v63  ;;  %v1795_v3 = vmul.f32 %v4630_v59, %v1745_v32 }
 0x6b5   : >> { %2010 = vmatprep.subr.bf16.mxu1 %v1920_v1  ;;  %v1877_v52 = vmul.f32 0.01, %v1861_v50  ;;  %v1879_v45 = vmul.f32 0.01, %v1863_v40  ;;  %v1797_v8 = vmul.f32 %v4630_v59, %v1750_v10  ;;  %v1792_v48 = vmul.f32 %v1790_v7, %v1735_v23 }
 0x6b6   : >> { %2011 = vmatpush1.bf16.msra.mxu1 %v1919_v15  ;;  %v1917_v61 = vpack.c.bf16 %v1898_v0, %v1896_v26  ;;  %v1860_v6 = vadd.f32 %v1829_v41, %v1795_v3  ;;  %v1794_v53 = vmul.f32 %v1790_v7, %v1740_v51  ;;  %v1791_v47 = vmul.f32 %v4630_v59, %v1735_v23  ;;  %v1968_v26 = vpop.permute.xlu0 %1967 }
 0x6b7   : >> { %2012 = vmatprep.subr.bf16.mxu1 %v1918_v35  ;;  %v1893_v24 = vmax.f32 %v1861_v50, %v1877_v52  ;;  %v1895_v56 = vmax.f32 %v1863_v40, %v1879_v45  ;;  %v1862_v30 = vadd.f32 %v1834_v18, %v1797_v8  ;;  %v1857_v42 = vadd.f32 %v1819_v29, %v1792_v48  ;;  %v1963_v40 = vpop.permute.xlu1 %1962 }
 0x6b8   : >> { %v1876_v32 = vmul.f32 0.01, %v1860_v6  ;;  %v1859_v33 = vadd.f32 %v1824_v55, %v1794_v53  ;;  %v1793_v25 = vmul.f32 %v4630_v59, %v1740_v51  ;;  %v1856_v20 = vadd.f32 %v1819_v29, %v1791_v47  ;;  %v3600_v51 = vld [vmem:[%s4847_s3 + $0x70] sm:$0xff]  }
 0x6b9   : >> { %v1916_v10 = vpack.c.bf16 %v1895_v56, %v1893_v24  ;;  %v1878_v60 = vmul.f32 0.01, %v1862_v30  ;;  %v1873_v16 = vmul.f32 0.01, %v1857_v42 }
 0x6ba   : >> { %2013 = vmatpush1.bf16.msra.mxu1 %v1917_v61  ;;  %v1892_v34 = vmax.f32 %v1860_v6, %v1876_v32  ;;  %v1875_v41 = vmul.f32 0.01, %v1859_v33  ;;  %v1858_v7 = vadd.f32 %v1824_v55, %v1793_v25  ;;  %v1872_v27 = vmul.f32 0.01, %v1856_v20  ;;  %v1958_v0 = vpop.permute.xlu0 %1957 }
 0x6bb   : >> { %2014 = vmatprep.subr.bf16.mxu1 %v1916_v10  ;;  %v1894_v62 = vmax.f32 %v1862_v30, %v1878_v60  ;;  %v1889_v22 = vmax.f32 %v1857_v42, %v1873_v16  ;;  %v1953_v52 = vpop.permute.xlu1 %1952 }
 0x6bc   : >> { %v1891_v38 = vmax.f32 %v1859_v33, %v1875_v41  ;;  %v1874_v36 = vmul.f32 0.01, %v1858_v7  ;;  %v1888_v23 = vmax.f32 %v1856_v20, %v1872_v27 }
 0x6bd   : >> { %v1915_v18 = vpack.c.bf16 %v1894_v62, %v1892_v34 }
 0x6be   : >> { %v1914_v57 = vpack.c.bf16 %v1891_v38, %v1889_v22  ;;  %v1890_v43 = vmax.f32 %v1858_v7, %v1874_v36  ;;  %v1948_v48 = vpop.permute.xlu0 %1947 }
 0x6bf   : >> { %2015 = vmatpush1.bf16.msra.mxu1 %v1915_v18  ;;  %v1943_v24 = vpop.permute.xlu1 %1942 }
 0x6c0   : >> { %2016 = vmatprep.subr.bf16.mxu1 %v1914_v57  ;;  %v1913_v59 = vpack.c.bf16 %v1890_v43, %v1888_v23 }
 0x6c2   : >> { %v1938_v16 = vpop.permute.xlu0 %1937 }
 0x6c3   : >> { %2017 = vmatpush1.bf16.msra.mxu1 %v1913_v59  ;;  %v1933_v43 = vpop.permute.xlu1 %1932 }
 0x6c6   : >> { %3430 = vmatmul.mubr.msk.bf16.vlgmr.msra.gmra.mxu1 %vm556_vm0, %v3598_v17 }
 0x6c7   : >> { %2044 = vmatprep.mubr.bf16.mxu1 %v4884_v37 }
 0x6ce   : >> { %3431 = vmatmul.mubr.msk.bf16.gmra.mxu1 %vm556_vm0, %v3599_v49 }
 0x6cf   : >> { %2054 = vmatprep.mubr.bf16.mxu1 %v4884_v37 }
 0x6d6   : >> { %3432 = vmatmul.mubr.msk.bf16.gmra.mxu1 %vm556_vm0, %v3600_v51 }
 0x6d7   : >> { %2064 = vmatprep.mubr.bf16.mxu1 %v4884_v37 }
 0x6de   : >> { %3433 = vmatmul.mubr.msk.bf16.gmra.mxu1 %vm556_vm0, %v3601_v5 }
 0x6df   : >> { %2638 = vmatprep.mubr.bf16.mxu1 %v4884_v37 }
 0x786   : >> { %v4661_v31 = vpop.f32.mrf.mxu1 }
 0x788   : >> { %v2038_v4 = vpop.f32.mrf.mxu1 }
 0x789   : >> { %v2039_v51 = vadd.f32 %v2038_v4, %v1933_v43 }
 0x78a   : >> { %v2040_v19 = vpop.f32.mrf.mxu1 }
 0x78c   : >> { %v2042_v12 = vpop.f32.mrf.mxu1 }
 0x78d   : >> { %v2043_v27 = vadd.f32 %v2042_v12, %v1938_v16 }
 0x78e   : >> { %v2046_v28 = vpop.f32.mrf.mxu1 }
 0x78f   : >> { %v2047_v59 = vadd.f32 %v2046_v28, %v1943_v24  ;;  %v2078_v12 = vmul.f32 0.01, %v2043_v27  ;;  %v2076_v28 = vmul.f32 0.01, %v2039_v51 }
 0x790   : >> { %v2048_v11 = vpop.f32.mrf.mxu1 }
 0x791   : >> { %v2049_v34 = vadd.f32 %v2048_v11, %v1943_v24 }
 0x792   : >> { %v2050_v63 = vpop.f32.mrf.mxu1 }
 0x793   : >> { %v2051_v62 = vadd.f32 %v2050_v63, %v1948_v48  ;;  %v2080_v5 = vmul.f32 0.01, %v2049_v34 }
 0x794   : >> { %v2052_v1 = vpop.f32.mrf.mxu1 }
 0x795   : >> { %v2053_v56 = vadd.f32 %v2052_v1, %v1948_v48  ;;  %v2081_v11 = vmul.f32 0.01, %v2051_v62 }
 0x796   : >> { %v2056_v50 = vpop.f32.mrf.mxu1 }
 0x797   : >> { %v2057_v10 = vadd.f32 %v2056_v50, %v1953_v52  ;;  %v2082_v36 = vmul.f32 0.01, %v2053_v56  ;;  %v2041_v50 = vadd.f32 %v2040_v19, %v1938_v16 }
 0x798   : >> { %v2058_v15 = vpop.f32.mrf.mxu1 }
 0x799   : >> { %v2059_v47 = vadd.f32 %v2058_v15, %v1953_v52  ;;  %v2083_v17 = vmul.f32 0.01, %v2057_v10  ;;  %v2098_v63 = vmax.f32 %v2053_v56, %v2082_v36  ;;  %v2077_v4 = vmul.f32 0.01, %v2041_v50 }
 0x79a   : >> { %v2060_v35 = vpop.f32.mrf.mxu1 }
 0x79b   : >> { %v2061_v30 = vadd.f32 %v2060_v35, %v1958_v0  ;;  %v2084_v41 = vmul.f32 0.01, %v2059_v47  ;;  %v2099_v52 = vmax.f32 %v2057_v10, %v2083_v17 }
 0x79c   : >> { %v2062_v3 = vpop.f32.mrf.mxu1 }
 0x79d   : >> { %v2063_v29 = vadd.f32 %v2062_v3, %v1958_v0  ;;  %v2085_v22 = vmul.f32 0.01, %v2061_v30  ;;  %v2100_v1 = vmax.f32 %v2059_v47, %v2084_v41  ;;  %v2037_v0 = vadd.f32 %v4661_v31, %v1933_v43 }
 0x79e   : >> { %v2066_v45 = vpop.f32.mrf.mxu1  ;;  %v2079_v3 = vmul.f32 0.01, %v2047_v59  ;;  %v2093_v47 = vmax.f32 %v2041_v50, %v2077_v4 }
 0x79f   : >> { %v2067_v6 = vadd.f32 %v2066_v45, %v1963_v40  ;;  %v2086_v32 = vmul.f32 0.01, %v2063_v29  ;;  %v2096_v45 = vmax.f32 %v2049_v34, %v2080_v5  ;;  %v2244_v34 = vpop.permute.xlu0 %2243 }
 0x7a0   : >> { %v2068_v8 = vpop.f32.mrf.mxu1 }
 0x7a1   : >> { %v2069_v61 = vadd.f32 %v2068_v8, %v1963_v40  ;;  %v2087_v60 = vmul.f32 0.01, %v2067_v6  ;;  %v2102_v18 = vmax.f32 %v2063_v29, %v2086_v32  ;;  %v2101_v40 = vmax.f32 %v2061_v30, %v2085_v22  ;;  %v3434_v30 = vld [vmem:[%s4849_s5 + $0x3] sm:$0x1] }
 0x7a2   : >> { %v2070_v53 = vpop.f32.mrf.mxu1  ;;  %v2097_v8 = vmax.f32 %v2051_v62, %v2081_v11  ;;  %v2094_v29 = vmax.f32 %v2043_v27, %v2078_v12  ;;  %v2112_v19 = vpack.c.bf16 %v2098_v63, %v2096_v45 }
 0x7a3   : >> { %v2071_v55 = vadd.f32 %v2070_v53, %v1968_v26  ;;  %v2088_v33 = vmul.f32 0.01, %v2069_v61  ;;  %v2103_v49 = vmax.f32 %v2067_v6, %v2087_v60  ;;  %v2114_v35 = vpack.c.bf16 %v2102_v18, %v2100_v1  ;;  %v2328_v36 = vpop.permute.xlu0 %2327 }
 0x7a4   : >> { %v2072_v42 = vpop.f32.mrf.mxu1  ;;  %v2113_v48 = vpack.c.bf16 %v2101_v40, %v2099_v52  ;;  %v2095_v6 = vmax.f32 %v2047_v59, %v2079_v3  ;;  %v2092_v53 = vmax.f32 %v2039_v51, %v2076_v28 }
 0x7a5   : >> { %v2089_v25 = vmul.f32 0.01, %v2071_v55  ;;  %v2073_v20 = vadd.f32 %v2072_v42, %v1968_v26  ;;  %v2104_v23 = vmax.f32 %v2069_v61, %v2088_v33  ;;  %v2075_v61 = vmul.f32 0.01, %v2037_v0  ;;  %v2122_v42 = vpop.permute.xlu1 %2121 }
 0x7a6   : >> { %v2110_v24 = vpack.c.bf16 %v2094_v29, %v2092_v53 }
 0x7a7   : >> { %v2090_v7 = vmul.f32 0.01, %v2073_v20  ;;  %v2105_v38 = vmax.f32 %v2071_v55, %v2089_v25  ;;  %v2111_v55 = vpack.c.bf16 %v2097_v8, %v2095_v6  ;;  %v2091_v31 = vmax.f32 %v2037_v0, %v2075_v61 }
 0x7a9   : >> { %v2106_v57 = vmax.f32 %v2073_v20, %v2090_v7  ;;  %v2115_v15 = vpack.c.bf16 %v2105_v38, %v2103_v49  ;;  %v2109_v56 = vpack.c.bf16 %v2093_v47, %v2091_v31  ;;  %v2249_v41 = vpop.permute.xlu1 %2248 }
 0x7ab   : >> { %v2116_v26 = vpack.c.bf16 %v2106_v57, %v2104_v23  ;;  %v2234_v23 = vpop.permute.xlu0 %2233 }
 0x7ad   : >> { %2135 = vmatprep.subr.bf16.mxu0 %v2116_v26  ;;  %v2333_v18 = vpop.permute.xlu1 %2332 }
 0x7ae   : >> { %2136 = vmatpush1.bf16.msra.mxu0 %v2115_v15 }
 0x7af   : >> { %2137 = vmatprep.subr.bf16.mxu0 %v2114_v35  ;;  %v2318_v49 = vpop.permute.xlu0 %2317 }
 0x7b1   : >> { %v2239_v57 = vpop.permute.xlu1 %2238 }
 0x7b2   : >> { %2138 = vmatpush1.bf16.msra.mxu0 %v2113_v48 }
 0x7b3   : >> { %2139 = vmatprep.subr.bf16.mxu0 %v2112_v19  ;;  %v2224_v50 = vpop.permute.xlu0 %2223 }
 0x7b5   : >> { %v2323_v51 = vpop.permute.xlu1 %2322 }
 0x7b6   : >> { %2140 = vmatpush1.bf16.msra.mxu0 %v2111_v55 }
 0x7b7   : >> { %2141 = vmatprep.subr.bf16.mxu0 %v2110_v24  ;;  %v2308_v0 = vpop.permute.xlu0 %2307 }
 0x7b9   : >> { %v2229_v11 = vpop.permute.xlu1 %2228 }
 0x7ba   : >> { %2142 = vmatpush1.bf16.msra.mxu0 %v2109_v56 }
 0x7bd   : >> { %3436 = vmatmul.mubr.msk.bf16.vlgmr.msra.gmra.mxu0 %vm556_vm0, %v3434_v30  ;;  %v2313_v3 = vpop.permute.xlu1 %2312 }
 0x7be   : >> { %2513 = vmatprep.mubr.bf16.mxu0 %v4884_v37 }
 0x87d   : >> { %v2161_v32 = vpop.f32.mrf.mxu0 }
 0x87e   : >> { %v2162_v33 = vadd.f32 %v2161_v32, %v2122_v42 }
 0x87f   : >> { %v2163_v25 = vpop.f32.mrf.mxu0 }
 0x880   : >> { %3634 = vtanh.f32 %v2162_v33  ;;  %v2164_v20 = vadd.f32 %v2163_v25, %v2122_v42  ;;  %v2214_v42 = vpop.permute.xlu0 %2213 }
 0x881   : >> { %v2165_v10 = vpop.f32.mrf.mxu0 }
 0x882   : >> { %3636 = vtanh.f32 %v2164_v20  ;;  %v2188_v43 = vcombine.low %v2162_v33, %v2164_v20  ;;  %v2219_v10 = vpop.permute.xlu1 %2218 }
 0x883   : >> { %v2166_v60 = vpop.f32.mrf.mxu0 }
 0x88d   : >> { %v3635_v16 = vpop.eup %3634 }
 0x88e   : >> { %v2170_v7 = vmul.f32 1.442695, %v3635_v16  ;;  %v4670_v27 = vadd.f32 %v3635_v16, %v4616_v39  ;;  %v2195_v39 = vrot.slane %v2188_v43, %v4459_v46 }
 0x88f   : >> { %v3637_v62 = vpop.eup %3636 }
 0x890   : >> { %v2172_v22 = vmul.f32 1.442695, %v3637_v62  ;;  %v4673_v38 = vadd.f32 %v3637_v62, %v4618_v54  ;;  %3638 = vpow2.f32 %v2170_v7  ;;  %v3437_v54 = vrot.slane %v2195_v39, 9 }
 0x892   : >> { %3640 = vpow2.f32 %v2172_v22 }
 0x89d   : >> { %v3639_v59 = vpop.eup %3638 }
 0x89f   : >> { %v3641_v17 = vpop.eup %3640 }
 0x8a0   : >> { %v2176_v5 = vcombine.low %v3639_v59, %v3641_v17 }
 0x8a2   : >> { %v2183_v1 = vrot.slane %v2176_v5, %v4459_v46 }
 0x8a4   : >> { %v2185_v26 = vmul.f32 %v2183_v1, %v4562_v21 }
 0x8a6   : >> { %v4678_v40 = vadd.f32 %v3437_v54, %v2185_v26  ;;  %v2298_v54 = vpop.permute.xlu0 %2297 }
 0x8a8   : >> { %v2255_v15 = vrot.slane %v4678_v40, %v4892_v13  ;;  %v2259_v12 = vrot.slane %v4678_v40, %v4893_v9 }
 0x8aa   : >> { %v4685_v63 = vrot.slane %v2255_v15, %v4892_v13  ;;  %v2269_v35 = vrot.slane %v2259_v12, %v4892_v13 }
 0x8ac   : >> { %v2283_v52 = vmul.f32 %v2269_v35, %v2244_v34  ;;  %v2285_v21 = vmul.f32 %v2269_v35, %v2249_v41  ;;  %v2282_v28 = vmul.f32 %v4685_v63, %v2244_v34  ;;  %v2284_v45 = vmul.f32 %v4685_v63, %v2249_v41 }
 0x8ad   : >> { %v2279_v4 = vmul.f32 %v2269_v35, %v2234_v23  ;;  %v2281_v8 = vmul.f32 %v2269_v35, %v2239_v57  ;;  %v2278_v48 = vmul.f32 %v4685_v63, %v2234_v23  ;;  %v2280_v29 = vmul.f32 %v4685_v63, %v2239_v57 }
 0x8ae   : >> { %v2348_v9 = vadd.f32 %v2328_v36, %v2283_v52  ;;  %v2350_v19 = vadd.f32 %v2333_v18, %v2285_v21  ;;  %v2347_v61 = vadd.f32 %v2328_v36, %v2282_v28  ;;  %v2349_v6 = vadd.f32 %v2333_v18, %v2284_v45  ;;  %v2303_v28 = vpop.permute.xlu1 %2302 }
 0x8af   : >> { %v2344_v53 = vadd.f32 %v2318_v49, %v2279_v4  ;;  %v2346_v13 = vadd.f32 %v2323_v51, %v2281_v8  ;;  %v2343_v47 = vadd.f32 %v2318_v49, %v2278_v48  ;;  %v2345_v55 = vadd.f32 %v2323_v51, %v2280_v29 }
 0x8b0   : >> { %v2364_v24 = vmul.f32 0.01, %v2348_v9  ;;  %v2366_v31 = vmul.f32 0.01, %v2350_v19  ;;  %v2363_v56 = vmul.f32 0.01, %v2347_v61  ;;  %v2275_v30 = vmul.f32 %v2269_v35, %v2224_v50 }
 0x8b1   : >> { %v2365_v32 = vmul.f32 0.01, %v2349_v6  ;;  %v2360_v33 = vmul.f32 0.01, %v2344_v53  ;;  %v2362_v25 = vmul.f32 0.01, %v2346_v13  ;;  %v2277_v20 = vmul.f32 %v2269_v35, %v2229_v11 }
 0x8b2   : >> { %v2380_v60 = vmax.f32 %v2348_v9, %v2364_v24  ;;  %v2382_v16 = vmax.f32 %v2350_v19, %v2366_v31  ;;  %v2379_v34 = vmax.f32 %v2347_v61, %v2363_v56  ;;  %v2359_v41 = vmul.f32 0.01, %v2343_v47 }
 0x8b3   : >> { %v2381_v7 = vmax.f32 %v2349_v6, %v2365_v32  ;;  %v2376_v62 = vmax.f32 %v2344_v53, %v2360_v33  ;;  %v2378_v22 = vmax.f32 %v2346_v13, %v2362_v25  ;;  %v2361_v36 = vmul.f32 0.01, %v2345_v55  ;;  %v3602_v32 = vld [vmem:[%s4847_s3 + $0x80] sm:$0xff]   ;;  %v3603_v33 = vld [vmem:[%s4847_s3 + $0x88] sm:$0xff]   ;;  %v3604_v25 = vld [vmem:[%s4847_s3 + $0x90] sm:$0xff]  }
 0x8b4   : >> { %v2399_v18 = vpack.c.bf16 %v2382_v16, %v2380_v60  ;;  %v2375_v23 = vmax.f32 %v2343_v47, %v2359_v41  ;;  %v2340_v57 = vadd.f32 %v2308_v0, %v2275_v30  ;;  %v2342_v43 = vadd.f32 %v2313_v3, %v2277_v20  ;;  %v3605_v20 = vld [vmem:[%s4847_s3 + $0x98] sm:$0xff]  }
 0x8b5   : >> { %v2398_v59 = vpack.c.bf16 %v2381_v7, %v2379_v34  ;;  %v2397_v17 = vpack.c.bf16 %v2378_v22, %v2376_v62  ;;  %v2377_v49 = vmax.f32 %v2345_v55, %v2361_v36  ;;  %v2274_v51 = vmul.f32 %v4685_v63, %v2224_v50  ;;  %v2447_v36 = vpop.permute.xlu1 %2446 }
 0x8b6   : >> { %2489 = vmatprep.subr.bf16.mxu0 %v2399_v18  ;;  %v2356_v5 = vmul.f32 0.01, %v2340_v57  ;;  %v2358_v39 = vmul.f32 0.01, %v2342_v43  ;;  %v2276_v1 = vmul.f32 %v4685_v63, %v2229_v11  ;;  %v2271_v26 = vmul.f32 %v2269_v35, %v2214_v42 }
 0x8b7   : >> { %2490 = vmatpush1.bf16.msra.mxu0 %v2398_v59  ;;  %v2396_v15 = vpack.c.bf16 %v2377_v49, %v2375_v23  ;;  %v2339_v12 = vadd.f32 %v2308_v0, %v2274_v51  ;;  %v2273_v52 = vmul.f32 %v2269_v35, %v2219_v10  ;;  %v2270_v21 = vmul.f32 %v4685_v63, %v2214_v42  ;;  %v2442_v23 = vpop.permute.xlu0 %2441 }
 0x8b8   : >> { %2491 = vmatprep.subr.bf16.mxu0 %v2397_v17  ;;  %v2372_v45 = vmax.f32 %v2340_v57, %v2356_v5  ;;  %v2374_v4 = vmax.f32 %v2342_v43, %v2358_v39  ;;  %v2341_v8 = vadd.f32 %v2313_v3, %v2276_v1  ;;  %v2336_v48 = vadd.f32 %v2298_v54, %v2271_v26 }
 0x8b9   : >> { %v2355_v50 = vmul.f32 0.01, %v2339_v12  ;;  %v2338_v29 = vadd.f32 %v2303_v28, %v2273_v52  ;;  %v2272_v9 = vmul.f32 %v4685_v63, %v2219_v10  ;;  %v2335_v19 = vadd.f32 %v2298_v54, %v2270_v21  ;;  %v2437_v59 = vpop.permute.xlu1 %2436 }
 0x8ba   : >> { %v2395_v11 = vpack.c.bf16 %v2374_v4, %v2372_v45  ;;  %v2357_v61 = vmul.f32 0.01, %v2341_v8  ;;  %v2352_v6 = vmul.f32 0.01, %v2336_v48 }
 0x8bb   : >> { %2492 = vmatpush1.bf16.msra.mxu0 %v2396_v15  ;;  %v2371_v53 = vmax.f32 %v2339_v12, %v2355_v50  ;;  %v2354_v0 = vmul.f32 0.01, %v2338_v29  ;;  %v2337_v35 = vadd.f32 %v2303_v28, %v2272_v9  ;;  %v2351_v13 = vmul.f32 0.01, %v2335_v19  ;;  %v2432_v49 = vpop.permute.xlu0 %2431 }
 0x8bc   : >> { %2493 = vmatprep.subr.bf16.mxu0 %v2395_v11  ;;  %v2373_v47 = vmax.f32 %v2341_v8, %v2357_v61  ;;  %v2368_v55 = vmax.f32 %v2336_v48, %v2352_v6 }
 0x8bd   : >> { %v2370_v24 = vmax.f32 %v2338_v29, %v2354_v0  ;;  %v2353_v31 = vmul.f32 0.01, %v2337_v35  ;;  %v2367_v56 = vmax.f32 %v2335_v19, %v2351_v13  ;;  %v2427_v39 = vpop.permute.xlu1 %2426 }
 0x8be   : >> { %v2394_v3 = vpack.c.bf16 %v2373_v47, %v2371_v53 }
 0x8bf   : >> { %v2393_v30 = vpack.c.bf16 %v2370_v24, %v2368_v55  ;;  %v2369_v42 = vmax.f32 %v2337_v35, %v2353_v31  ;;  %v2422_v21 = vpop.permute.xlu0 %2421 }
 0x8c0   : >> { %2494 = vmatpush1.bf16.msra.mxu0 %v2394_v3 }
 0x8c1   : >> { %2495 = vmatprep.subr.bf16.mxu0 %v2393_v30  ;;  %v2392_v63 = vpack.c.bf16 %v2369_v42, %v2367_v56  ;;  %v2417_v11 = vpop.permute.xlu1 %2416 }
 0x8c3   : >> { %v2412_v56 = vpop.permute.xlu0 %2411 }
 0x8c4   : >> { %2496 = vmatpush1.bf16.msra.mxu0 %v2392_v63 }
 0x8c7   : >> { %3474 = vmatmul.mubr.msk.bf16.vlgmr.msra.gmra.mxu0 %vm556_vm0, %v3602_v32 }
 0x8c8   : >> { %2523 = vmatprep.mubr.bf16.mxu0 %v4884_v37 }
 0x8cf   : >> { %3475 = vmatmul.mubr.msk.bf16.gmra.mxu0 %vm556_vm0, %v3603_v33 }
 0x8d0   : >> { %2533 = vmatprep.mubr.bf16.mxu0 %v4884_v37 }
 0x8d7   : >> { %3476 = vmatmul.mubr.msk.bf16.gmra.mxu0 %vm556_vm0, %v3604_v25 }
 0x8d8   : >> { %2543 = vmatprep.mubr.bf16.mxu0 %v4884_v37 }
 0x8df   : >> { %3477 = vmatmul.mubr.msk.bf16.gmra.mxu0 %vm556_vm0, %v3605_v20 }
 0x8e0   : >> { %3116 = vmatprep.mubr.bf16.mxu0 %v4884_v37 }
 0x987   : >> { %v4716_v10 = vpop.f32.mrf.mxu0 }
 0x989   : >> { %v2517_v60 = vpop.f32.mrf.mxu0 }
 0x98a   : >> { %v2518_v32 = vadd.f32 %v2517_v60, %v2412_v56 }
 0x98b   : >> { %v2519_v16 = vpop.f32.mrf.mxu0 }
 0x98d   : >> { %v2521_v34 = vpop.f32.mrf.mxu0 }
 0x98e   : >> { %v2522_v0 = vadd.f32 %v2521_v34, %v2417_v11 }
 0x98f   : >> { %v2525_v41 = vpop.f32.mrf.mxu0 }
 0x990   : >> { %v2526_v30 = vadd.f32 %v2525_v41, %v2422_v21  ;;  %v2557_v34 = vmul.f32 0.01, %v2522_v0  ;;  %v2555_v41 = vmul.f32 0.01, %v2518_v32 }
 0x991   : >> { %v2527_v7 = vpop.f32.mrf.mxu0 }
 0x992   : >> { %v2528_v61 = vadd.f32 %v2527_v7, %v2422_v21  ;;  %v3478_v21 = vld [vmem:[%s4849_s5 + $0x4] sm:$0x1] }
 0x993   : >> { %v2529_v62 = vpop.f32.mrf.mxu0 }
 0x994   : >> { %v2530_v35 = vadd.f32 %v2529_v62, %v2427_v39  ;;  %v2559_v33 = vmul.f32 0.01, %v2528_v61 }
 0x995   : >> { %v2531_v22 = vpop.f32.mrf.mxu0 }
 0x996   : >> { %v2532_v28 = vadd.f32 %v2531_v22, %v2427_v39  ;;  %v2520_v22 = vadd.f32 %v2519_v16, %v2417_v11  ;;  %v2560_v7 = vmul.f32 0.01, %v2530_v35 }
 0x997   : >> { %v2535_v18 = vpop.f32.mrf.mxu0 }
 0x998   : >> { %v2536_v9 = vadd.f32 %v2535_v18, %v2432_v49  ;;  %v2561_v55 = vmul.f32 0.01, %v2532_v28  ;;  %v2556_v60 = vmul.f32 0.01, %v2520_v22 }
 0x999   : >> { %v2537_v57 = vpop.f32.mrf.mxu0 }
 0x99a   : >> { %v2538_v12 = vadd.f32 %v2537_v57, %v2432_v49  ;;  %v2562_v42 = vmul.f32 0.01, %v2536_v9  ;;  %v2577_v62 = vmax.f32 %v2532_v28, %v2561_v55  ;;  %v2516_v57 = vadd.f32 %v4716_v10, %v2412_v56  ;;  %v2601_v28 = vpop.permute.xlu0 %2600 }
 0x99b   : >> { %v2539_v43 = vpop.f32.mrf.mxu0  ;;  %v2576_v49 = vmax.f32 %v2530_v35, %v2560_v7 }
 0x99c   : >> { %v2540_v45 = vadd.f32 %v2539_v43, %v2437_v59  ;;  %v2563_v6 = vmul.f32 0.01, %v2538_v12  ;;  %v2558_v43 = vmul.f32 0.01, %v2526_v30  ;;  %v2554_v39 = vmul.f32 0.01, %v2516_v57 }
 0x99d   : >> { %v2541_v17 = vpop.f32.mrf.mxu0 }
 0x99e   : >> { %v2542_v1 = vadd.f32 %v2541_v17, %v2437_v59  ;;  %v2564_v13 = vmul.f32 0.01, %v2540_v45  ;;  %v2579_v25 = vmax.f32 %v2538_v12, %v2563_v6  ;;  %v2578_v59 = vmax.f32 %v2536_v9, %v2562_v42  ;;  %v2722_v6 = vpop.permute.xlu1 %2721 }
 0x99f   : >> { %v2545_v51 = vpop.f32.mrf.mxu0  ;;  %v2575_v17 = vmax.f32 %v2528_v61, %v2559_v33  ;;  %v2570_v10 = vmax.f32 %v2516_v57, %v2554_v39 }
 0x9a0   : >> { %v2546_v54 = vadd.f32 %v2545_v51, %v2442_v23  ;;  %v2565_v8 = vmul.f32 0.01, %v2542_v1 }
 0x9a1   : >> { %v2547_v5 = vpop.f32.mrf.mxu0  ;;  %v2591_v16 = vpack.c.bf16 %v2577_v62, %v2575_v17 }
 0x9a2   : >> { %v2548_v26 = vadd.f32 %v2547_v5, %v2442_v23  ;;  %v2566_v19 = vmul.f32 0.01, %v2546_v54  ;;  %v2581_v24 = vmax.f32 %v2542_v1, %v2565_v8  ;;  %v2573_v5 = vmax.f32 %v2522_v0, %v2557_v34 }
 0x9a3   : >> { %v2549_v15 = vpop.f32.mrf.mxu0  ;;  %v2574_v1 = vmax.f32 %v2526_v30, %v2558_v43  ;;  %v4897_v43 = vlaneseq }
 0x9a4   : >> { %v2550_v52 = vadd.f32 %v2549_v15, %v2447_v36  ;;  %v2567_v48 = vmul.f32 0.01, %v2548_v26  ;;  %v2582_v63 = vmax.f32 %v2546_v54, %v2566_v19  ;;  %v2593_v23 = vpack.c.bf16 %v2581_v24, %v2579_v25 }
 0x9a5   : >> { %v2551_v4 = vpop.f32.mrf.mxu0  ;;  %v2572_v54 = vmax.f32 %v2520_v22, %v2556_v60  ;;  %v2590_v15 = vpack.c.bf16 %v2576_v49, %v2574_v1  ;;  %vm4745_vm1 = vcmp.lt.s32.totalorder %v4897_v43, 256 }
 0x9a6   : >> { %v2568_v50 = vmul.f32 0.01, %v2550_v52  ;;  %v2552_v29 = vadd.f32 %v2551_v4, %v2447_v36  ;;  %v2583_v31 = vmax.f32 %v2548_v26, %v2567_v48  ;;  %v2580_v36 = vmax.f32 %v2540_v45, %v2564_v13  ;;  %v2806_v13 = vpop.permute.xlu1 %2805 }
 0x9a7   : >> { %v2571_v26 = vmax.f32 %v2518_v32, %v2555_v41 }
 0x9a8   : >> { %v2569_v53 = vmul.f32 0.01, %v2552_v29  ;;  %v2584_v47 = vmax.f32 %v2550_v52, %v2568_v50  ;;  %v2592_v51 = vpack.c.bf16 %v2580_v36, %v2578_v59  ;;  %v2588_v52 = vpack.c.bf16 %v2572_v54, %v2570_v10 }
 0x9a9   : >> { %v2589_v12 = vpack.c.bf16 %v2573_v5, %v2571_v26 }
 0x9aa   : >> { %v2585_v3 = vmax.f32 %v2552_v29, %v2569_v53  ;;  %v2594_v18 = vpack.c.bf16 %v2584_v47, %v2582_v63  ;;  %v2727_v53 = vpop.permute.xlu0 %2726  ;;  %v2712_v55 = vpop.permute.xlu1 %2711 }
 0x9ac   : >> { %v2595_v20 = vpack.c.bf16 %v2585_v3, %v2583_v31  ;;  %v3731_v3 = vmov 1966171168  }
 0x9ad   : >> { %v3161_v56 = vunpack.c.l.s4 %v3731_v3 }
 0x9ae   : >> { %2614 = vmatprep.subr.bf16.mxu1 %v2595_v20  ;;  %v2811_v47 = vpop.permute.xlu0 %2810  ;;  %v2796_v42 = vpop.permute.xlu1 %2795 }
 0x9af   : >> { %2615 = vmatpush1.bf16.msra.mxu1 %v2594_v18 }
 0x9b0   : >> { %2616 = vmatprep.subr.bf16.mxu1 %v2593_v23 }
 0x9b2   : >> { %v2717_v24 = vpop.permute.xlu0 %2716  ;;  %v2702_v36 = vpop.permute.xlu1 %2701 }
 0x9b3   : >> { %2617 = vmatpush1.bf16.msra.mxu1 %v2592_v51 }
 0x9b4   : >> { %2618 = vmatprep.subr.bf16.mxu1 %v2591_v16 }
 0x9b6   : >> { %v2801_v63 = vpop.permute.xlu0 %2800  ;;  %v2786_v17 = vpop.permute.xlu1 %2785 }
 0x9b7   : >> { %2619 = vmatpush1.bf16.msra.mxu1 %v2590_v15 }
 0x9b8   : >> { %2620 = vmatprep.subr.bf16.mxu1 %v2589_v12 }
 0x9ba   : >> { %v2707_v18 = vpop.permute.xlu0 %2706 }
 0x9bb   : >> { %2621 = vmatpush1.bf16.msra.mxu1 %v2588_v52 }
 0x9be   : >> { %3480 = vmatmul.mubr.msk.bf16.vlgmr.msra.gmra.mxu1 %vm556_vm0, %v3478_v21  ;;  %v2791_v60 = vpop.permute.xlu0 %2790 }
 0x9bf   : >> { %2991 = vmatprep.mubr.bf16.mxu1 %v4884_v37 }
 0xa7e   : >> { %v2640_v45 = vpop.f32.mrf.mxu1 }
 0xa7f   : >> { %v2641_v4 = vadd.f32 %v2640_v45, %v2601_v28 }
 0xa80   : >> { %v2642_v8 = vpop.f32.mrf.mxu1 }
 0xa81   : >> { %3642 = vtanh.f32 %v2641_v4  ;;  %v2643_v48 = vadd.f32 %v2642_v8, %v2601_v28 }
 0xa82   : >> { %v2644_v50 = vpop.f32.mrf.mxu1 }
 0xa83   : >> { %3644 = vtanh.f32 %v2643_v48  ;;  %v2668_v33 = vcombine.low %v2641_v4, %v2643_v48  ;;  %v2692_v50 = vpop.permute.xlu1 %2691 }
 0xa84   : >> { %v2645_v29 = vpop.f32.mrf.mxu1 }
 0xa85   : >> { %v2675_v22 = vrot.slane %v2668_v33, %v4459_v46 }
 0xa8e   : >> { %v3643_v9 = vpop.eup %3642 }
 0xa8f   : >> { %v2649_v19 = vmul.f32 1.442695, %v3643_v9  ;;  %v4725_v11 = vadd.f32 %v3643_v9, %v4670_v27 }
 0xa90   : >> { %v3645_v61 = vpop.eup %3644 }
 0xa91   : >> { %v2651_v0 = vmul.f32 1.442695, %v3645_v61  ;;  %v4728_v35 = vadd.f32 %v3645_v61, %v4673_v38  ;;  %3646 = vpow2.f32 %v2649_v19  ;;  %v3162_v38 = vunpack.c.0.s8 %v3161_v56 }
 0xa93   : >> { %3648 = vpow2.f32 %v2651_v0  ;;  %v4734_v7 = vsub.s32 %v3162_v38, %v4015_v58 }
 0xa9e   : >> { %v3647_v31 = vpop.eup %3646 }
 0xaa0   : >> { %v3649_v30 = vpop.eup %3648 }
 0xaa1   : >> { %v2655_v27 = vcombine.low %v3647_v31, %v3649_v30 }
 0xaa3   : >> { %v2662_v32 = vrot.slane %v2655_v27, %v4459_v46 }
 0xaa5   : >> { %v2663_v25 = vrot.slane %v2662_v32, 7 }
 0xaa7   : >> { %v2665_v20 = vmul.f32 %v2663_v25, %v4623_v44 }
 0xaa9   : >> { %v2677_v34 = vadd.f32 %v2675_v22, %v2665_v20 }
 0xaab   : >> { %v2733_v62 = vrot.slane %v2677_v34, %v4465_v14  ;;  %v2737_v23 = vrot.slane %v2677_v34, %v4468_v2  ;;  %v3181_v57 = vrot.slane %v2677_v34, %v4734_v7 }
 0xaad   : >> { %v4750_v58 = vrot.slane %v2733_v62, %v4465_v14  ;;  %v2747_v59 = vrot.slane %v2737_v23, %v4465_v14  ;;  %v3182_v41 = vcombine.high %v3181_v57, %v3181_v57  ;;  %v2776_v62 = vpop.permute.xlu1 %2775 }
 0xaaf   : >> { %v2761_v2 = vmul.f32 %v2747_v59, %v2722_v6  ;;  %v2763_v49 = vmul.f32 %v2747_v59, %v2727_v53  ;;  %v2760_v51 = vmul.f32 %v4750_v58, %v2722_v6  ;;  %v2762_v5 = vmul.f32 %v4750_v58, %v2727_v53  ;;  %3526 = vst.msk [vmem:[%s4742_s13 + $0x1] ss:$4 sm:$0x3] %vm4745_vm1, %v3182_v41  ;;  %v2697_v6 = vpop.permute.xlu0 %2696 }
 0xab0   : >> { %v2757_v16 = vmul.f32 %v2747_v59, %v2712_v55  ;;  %v2759_v39 = vmul.f32 %v2747_v59, %v2717_v24  ;;  %v2756_v1 = vmul.f32 %v4750_v58, %v2712_v55  ;;  %v2758_v26 = vmul.f32 %v4750_v58, %v2717_v24 }
 0xab1   : >> { %v2826_v54 = vadd.f32 %v2806_v13, %v2761_v2  ;;  %v2828_v14 = vadd.f32 %v2811_v47, %v2763_v49  ;;  %v2825_v15 = vadd.f32 %v2806_v13, %v2760_v51  ;;  %v2827_v12 = vadd.f32 %v2811_v47, %v2762_v5 }
 0xab2   : >> { %v2822_v10 = vadd.f32 %v2796_v42, %v2757_v16  ;;  %v2824_v52 = vadd.f32 %v2801_v63, %v2759_v39  ;;  %v2821_v21 = vadd.f32 %v2796_v42, %v2756_v1  ;;  %v2823_v28 = vadd.f32 %v2801_v63, %v2758_v26 }
 0xab3   : >> { %v2842_v45 = vmul.f32 0.01, %v2826_v54  ;;  %v2844_v4 = vmul.f32 0.01, %v2828_v14  ;;  %v2841_v8 = vmul.f32 0.01, %v2825_v15  ;;  %v2753_v48 = vmul.f32 %v2747_v59, %v2702_v36  ;;  %v2781_v2 = vpop.permute.xlu0 %2780 }
 0xab4   : >> { %v2843_v29 = vmul.f32 0.01, %v2827_v12  ;;  %v2838_v9 = vmul.f32 0.01, %v2822_v10  ;;  %v2840_v19 = vmul.f32 0.01, %v2824_v52  ;;  %v2755_v61 = vmul.f32 %v2747_v59, %v2707_v18 }
 0xab5   : >> { %v2858_v53 = vmax.f32 %v2826_v54, %v2842_v45  ;;  %v2860_v0 = vmax.f32 %v2828_v14, %v2844_v4  ;;  %v2857_v55 = vmax.f32 %v2825_v15, %v2841_v8  ;;  %v2837_v24 = vmul.f32 0.01, %v2821_v21 }
 0xab6   : >> { %v2859_v13 = vmax.f32 %v2827_v12, %v2843_v29  ;;  %v2854_v47 = vmax.f32 %v2822_v10, %v2838_v9  ;;  %v2856_v31 = vmax.f32 %v2824_v52, %v2840_v19  ;;  %v2839_v3 = vmul.f32 0.01, %v2823_v28  ;;  %v3608_v29 = vld [vmem:[%s4847_s3 + $0xb0] sm:$0xff]   ;;  %v3609_v9 = vld [vmem:[%s4847_s3 + $0xb8] sm:$0xff]  }
 0xab7   : >> { %v2877_v56 = vpack.c.bf16 %v2860_v0, %v2858_v53  ;;  %v2853_v30 = vmax.f32 %v2821_v21, %v2837_v24  ;;  %v2818_v27 = vadd.f32 %v2786_v17, %v2753_v48  ;;  %v2820_v42 = vadd.f32 %v2791_v60, %v2755_v61  ;;  %v3606_v48 = vld [vmem:[%s4847_s3 + $0xa0] sm:$0xff]  }
 0xab8   : >> { %v2876_v63 = vpack.c.bf16 %v2859_v13, %v2857_v55  ;;  %v2875_v32 = vpack.c.bf16 %v2856_v31, %v2854_v47  ;;  %v2855_v33 = vmax.f32 %v2823_v28, %v2839_v3  ;;  %v2752_v38 = vmul.f32 %v4750_v58, %v2702_v36  ;;  %v2925_v47 = vpop.permute.xlu0 %2924  ;;  %v2920_v3 = vpop.permute.xlu1 %2919 }
 0xab9   : >> { %2967 = vmatprep.subr.bf16.mxu1 %v2877_v56  ;;  %v2834_v25 = vmul.f32 0.01, %v2818_v27  ;;  %v2836_v20 = vmul.f32 0.01, %v2820_v42  ;;  %v2754_v22 = vmul.f32 %v4750_v58, %v2707_v18  ;;  %v2749_v34 = vmul.f32 %v2747_v59, %v2692_v50 }
 0xaba   : >> { %2968 = vmatpush1.bf16.msra.mxu1 %v2876_v63  ;;  %v2874_v23 = vpack.c.bf16 %v2855_v33, %v2853_v30  ;;  %v2817_v57 = vadd.f32 %v2786_v17, %v2752_v38  ;;  %v2751_v43 = vmul.f32 %v2747_v59, %v2697_v6  ;;  %v2748_v41 = vmul.f32 %v4750_v58, %v2692_v50  ;;  %v3607_v50 = vld [vmem:[%s4847_s3 + $0xa8] sm:$0xff]  }
 0xabb   : >> { %2969 = vmatprep.subr.bf16.mxu1 %v2875_v32  ;;  %v2850_v49 = vmax.f32 %v2818_v27, %v2834_v25  ;;  %v2852_v51 = vmax.f32 %v2820_v42, %v2836_v20  ;;  %v2819_v5 = vadd.f32 %v2791_v60, %v2754_v22  ;;  %v2814_v16 = vadd.f32 %v2776_v62, %v2749_v34 }
 0xabc   : >> { %v2833_v36 = vmul.f32 0.01, %v2817_v57  ;;  %v2816_v39 = vadd.f32 %v2781_v2, %v2751_v43  ;;  %v2750_v1 = vmul.f32 %v4750_v58, %v2697_v6  ;;  %v2813_v26 = vadd.f32 %v2776_v62, %v2748_v41  ;;  %v2915_v30 = vpop.permute.xlu0 %2914  ;;  %v2910_v42 = vpop.permute.xlu1 %2909 }
 0xabd   : >> { %v2873_v18 = vpack.c.bf16 %v2852_v51, %v2850_v49  ;;  %v2835_v54 = vmul.f32 0.01, %v2819_v5  ;;  %v2830_v14 = vmul.f32 0.01, %v2814_v16 }
 0xabe   : >> { %2970 = vmatpush1.bf16.msra.mxu1 %v2874_v23  ;;  %v2849_v15 = vmax.f32 %v2817_v57, %v2833_v36  ;;  %v2832_v17 = vmul.f32 0.01, %v2816_v39  ;;  %v2815_v59 = vadd.f32 %v2781_v2, %v2750_v1  ;;  %v2829_v12 = vmul.f32 0.01, %v2813_v26 }
 0xabf   : >> { %2971 = vmatprep.subr.bf16.mxu1 %v2873_v18  ;;  %v2851_v10 = vmax.f32 %v2819_v5, %v2835_v54  ;;  %v2846_v52 = vmax.f32 %v2814_v16, %v2830_v14 }
 0xac0   : >> { %v2848_v21 = vmax.f32 %v2816_v39, %v2832_v17  ;;  %v2831_v28 = vmul.f32 0.01, %v2815_v59  ;;  %v2845_v45 = vmax.f32 %v2813_v26, %v2829_v12  ;;  %v2905_v33 = vpop.permute.xlu0 %2904  ;;  %v2900_v23 = vpop.permute.xlu1 %2899 }
 0xac1   : >> { %v2872_v60 = vpack.c.bf16 %v2851_v10, %v2849_v15 }
 0xac2   : >> { %v2871_v4 = vpack.c.bf16 %v2848_v21, %v2846_v52  ;;  %v2847_v8 = vmax.f32 %v2815_v59, %v2831_v28 }
 0xac3   : >> { %2972 = vmatpush1.bf16.msra.mxu1 %v2872_v60 }
 0xac4   : >> { %2973 = vmatprep.subr.bf16.mxu1 %v2871_v4  ;;  %v2870_v58 = vpack.c.bf16 %v2847_v8, %v2845_v45  ;;  %v2895_v39 = vpop.permute.xlu0 %2894  ;;  %v2890_v21 = vpop.permute.xlu1 %2889 }
 0xac7   : >> { %2974 = vmatpush1.bf16.msra.mxu1 %v2870_v58 }
 0xaca   : >> { %3517 = vmatmul.mubr.msk.bf16.vlgmr.msra.gmra.mxu1 %vm556_vm0, %v3606_v48 }
 0xacb   : >> { %3001 = vmatprep.mubr.bf16.mxu1 %v4884_v37 }
 0xad2   : >> { %3518 = vmatmul.mubr.msk.bf16.gmra.mxu1 %vm556_vm0, %v3607_v50 }
 0xad3   : >> { %3011 = vmatprep.mubr.bf16.mxu1 %v4884_v37 }
 0xada   : >> { %3519 = vmatmul.mubr.msk.bf16.gmra.mxu1 %vm556_vm0, %v3608_v29 }
 0xadb   : >> { %3021 = vmatprep.mubr.bf16.mxu1 %v4884_v37 }
 0xae2   : >> { %3520 = vmatmul.mubr.msk.bf16.gmra.mxu1 %vm556_vm0, %v3609_v9 }
 0xb8a   : >> { %v4783_v19 = vpop.f32.mrf.mxu1 }
 0xb8c   : >> { %v2995_v61 = vpop.f32.mrf.mxu1 }
 0xb8d   : >> { %v2996_v4 = vadd.f32 %v2995_v61, %v2890_v21 }
 0xb8e   : >> { %v2997_v6 = vpop.f32.mrf.mxu1 }
 0xb8f   : >> { %v2998_v50 = vadd.f32 %v2997_v6, %v2895_v39 }
 0xb90   : >> { %v2999_v53 = vpop.f32.mrf.mxu1 }
 0xb91   : >> { %v3000_v54 = vadd.f32 %v2999_v53, %v2895_v39  ;;  %v3034_v61 = vmul.f32 0.01, %v2998_v50 }
 0xb92   : >> { %v3003_v0 = vpop.f32.mrf.mxu1 }
 0xb93   : >> { %v3004_v28 = vadd.f32 %v3003_v0, %v2900_v23  ;;  %v3035_v53 = vmul.f32 0.01, %v3000_v54  ;;  %v3033_v0 = vmul.f32 0.01, %v2996_v4 }
 0xb94   : >> { %v3005_v55 = vpop.f32.mrf.mxu1 }
 0xb95   : >> { %v3006_v1 = vadd.f32 %v3005_v55, %v2900_v23 }
 0xb96   : >> { %v3007_v24 = vpop.f32.mrf.mxu1 }
 0xb97   : >> { %v3008_v14 = vadd.f32 %v3007_v24, %v2905_v33  ;;  %v3037_v8 = vmul.f32 0.01, %v3006_v1 }
 0xb98   : >> { %v3009_v13 = vpop.f32.mrf.mxu1 }
 0xb99   : >> { %v3010_v57 = vadd.f32 %v3009_v13, %v2905_v33  ;;  %v3038_v29 = vmul.f32 0.01, %v3008_v14  ;;  %v3050_v33 = vmax.f32 %v2998_v50, %v3034_v61 }
 0xb9a   : >> { %v3013_v31 = vpop.f32.mrf.mxu1 }
 0xb9b   : >> { %v3014_v16 = vadd.f32 %v3013_v31, %v2910_v42  ;;  %v3039_v59 = vmul.f32 0.01, %v3010_v57  ;;  %v3036_v31 = vmul.f32 0.01, %v3004_v28 }
 0xb9c   : >> { %v3015_v56 = vpop.f32.mrf.mxu1 }
 0xb9d   : >> { %v3016_v34 = vadd.f32 %v3015_v56, %v2910_v42  ;;  %v3040_v60 = vmul.f32 0.01, %v3014_v16  ;;  %v3055_v24 = vmax.f32 %v3010_v57, %v3039_v59  ;;  %v3053_v56 = vmax.f32 %v3006_v1, %v3037_v8 }
 0xb9e   : >> { %v3017_v37 = vpop.f32.mrf.mxu1 }
 0xb9f   : >> { %v3018_v43 = vadd.f32 %v3017_v37, %v2915_v30  ;;  %v3041_v26 = vmul.f32 0.01, %v3016_v34  ;;  %v3054_v37 = vmax.f32 %v3008_v14, %v3038_v29  ;;  %v3069_v6 = vpack.c.bf16 %v3055_v24, %v3053_v56 }
 0xba0   : >> { %v3019_v27 = vpop.f32.mrf.mxu1 }
 0xba1   : >> { %v3020_v38 = vadd.f32 %v3019_v27, %v2915_v30  ;;  %v3042_v15 = vmul.f32 0.01, %v3018_v43  ;;  %v3057_v58 = vmax.f32 %v3016_v34, %v3041_v26  ;;  %v3051_v27 = vmax.f32 %v3000_v54, %v3035_v53  ;;  %v3079_v34 = vpop.permute.xlu1 %3078 }
 0xba2   : >> { %v3023_v63 = vpop.f32.mrf.mxu1 }
 0xba3   : >> { %v3024_v20 = vadd.f32 %v3023_v63, %v2920_v3  ;;  %v3043_v2 = vmul.f32 0.01, %v3020_v38  ;;  %v3058_v9 = vmax.f32 %v3018_v43, %v3042_v15  ;;  %v3052_v63 = vmax.f32 %v3004_v28, %v3036_v31 }
 0xba4   : >> { %v3025_v32 = vpop.f32.mrf.mxu1 }
 0xba5   : >> { %v3026_v25 = vadd.f32 %v3025_v32, %v2920_v3  ;;  %v3044_v36 = vmul.f32 0.01, %v3024_v20  ;;  %v3059_v12 = vmax.f32 %v3020_v38, %v3043_v2  ;;  %v3056_v3 = vmax.f32 %v3014_v16, %v3040_v60 }
 0xba6   : >> { %v3027_v22 = vpop.f32.mrf.mxu1  ;;  %v3049_v32 = vmax.f32 %v2996_v4, %v3033_v0  ;;  %v3068_v38 = vpack.c.bf16 %v3054_v37, %v3052_v63 }
 0xba7   : >> { %v3028_v62 = vadd.f32 %v3027_v22, %v2925_v47  ;;  %v3045_v49 = vmul.f32 0.01, %v3026_v25  ;;  %v3060_v45 = vmax.f32 %v3024_v20, %v3044_v36  ;;  %v3071_v13 = vpack.c.bf16 %v3059_v12, %v3057_v58  ;;  %v3521_v22 = vld [vmem:[%s4849_s5 + $0x5] sm:$0x1] }
 0xba8   : >> { %v3029_v41 = vpop.f32.mrf.mxu1  ;;  %v3070_v30 = vpack.c.bf16 %v3058_v9, %v3056_v3 }
 0xba9   : >> { %v3046_v51 = vmul.f32 0.01, %v3028_v62  ;;  %v3030_v5 = vadd.f32 %v3029_v41, %v2925_v47  ;;  %v3061_v10 = vmax.f32 %v3026_v25, %v3045_v49  ;;  %v2994_v47 = vadd.f32 %v4783_v19, %v2890_v21 }
 0xbaa   : >> { %v3067_v25 = vpack.c.bf16 %v3051_v27, %v3049_v32 }
 0xbab   : >> { %v3047_v18 = vmul.f32 0.01, %v3030_v5  ;;  %v3062_v17 = vmax.f32 %v3028_v62, %v3046_v51  ;;  %v3032_v42 = vmul.f32 0.01, %v2994_v47 }
 0xbad   : >> { %v3063_v52 = vmax.f32 %v3030_v5, %v3047_v18  ;;  %v3072_v55 = vpack.c.bf16 %v3062_v17, %v3060_v45  ;;  %v3048_v19 = vmax.f32 %v2994_v47, %v3032_v42 }
 0xbaf   : >> { %v3073_v48 = vpack.c.bf16 %v3063_v52, %v3061_v10  ;;  %v3066_v20 = vpack.c.bf16 %v3050_v33, %v3048_v19 }
 0xbb1   : >> { %3092 = vmatprep.subr.bf16.mxu0 %v3073_v48 }
 0xbb2   : >> { %3093 = vmatpush1.bf16.msra.mxu0 %v3072_v55 }
 0xbb3   : >> { %3094 = vmatprep.subr.bf16.mxu0 %v3071_v13 }
 0xbb6   : >> { %3095 = vmatpush1.bf16.msra.mxu0 %v3070_v30 }
 0xbb7   : >> { %3096 = vmatprep.subr.bf16.mxu0 %v3069_v6 }
 0xbba   : >> { %3097 = vmatpush1.bf16.msra.mxu0 %v3068_v38 }
 0xbbb   : >> { %3098 = vmatprep.subr.bf16.mxu0 %v3067_v25 }
 0xbbe   : >> { %3099 = vmatpush1.bf16.msra.mxu0 %v3066_v20 }
 0xbc1   : >> { %3523 = vmatmul.mubr.msk.bf16.vlgmr.msra.gmra.mxu0 %vm556_vm0, %v3521_v22 }
 0xc81   : >> { %v3118_v62 = vpop.f32.mrf.mxu0 }
 0xc82   : >> { %v3119_v23 = vadd.f32 %v3118_v62, %v3079_v34 }
 0xc83   : >> { %v3120_v57 = vpop.f32.mrf.mxu0 }
 0xc84   : >> { %3650 = vtanh.f32 %v3119_v23  ;;  %v3121_v43 = vadd.f32 %v3120_v57, %v3079_v34 }
 0xc85   : >> { %v3122_v41 = vpop.f32.mrf.mxu0 }
 0xc86   : >> { %3652 = vtanh.f32 %v3121_v43  ;;  %v3145_v54 = vcombine.low %v3119_v23, %v3121_v43 }
 0xc87   : >> { %v3123_v2 = vpop.f32.mrf.mxu0 }
 0xc91   : >> { %v3651_v49 = vpop.eup %3650 }
 0xc92   : >> { %v3127_v51 = vmul.f32 1.442695, %v3651_v49  ;;  %v3157_v16 = vadd.f32 %v3651_v49, %v4725_v11  ;;  %v3152_v11 = vrot.slane %v3145_v54, %v4459_v46 }
 0xc93   : >> { %v3653_v5 = vpop.eup %3652 }
 0xc94   : >> { %v3129_v36 = vmul.f32 1.442695, %v3653_v5  ;;  %v3158_v39 = vadd.f32 %v3653_v5, %v4728_v35  ;;  %3654 = vpow2.f32 %v3127_v51  ;;  %v3524_v12 = vrot.slane %v3152_v11, 9 }
 0xc96   : >> { %3656 = vpow2.f32 %v3129_v36  ;;  %v3188_v1 = vcombine.low %v3157_v16, %v3158_v39 }
 0xc98   : >> { %v3195_v26 = vrot.slane %v3188_v1, %v4734_v7 }
 0xc9a   : >> { %v3202_v18 = vrot.slane %v3195_v26, %v4734_v7 }
 0xc9c   : >> { %3527 = vst.msk [vmem:[%s4742_s13 + $0x2] ss:$4 sm:$0x3] %vm4745_vm1, %v3202_v18 }
 0xca1   : >> { %v3655_v14 = vpop.eup %3654 }
 0xca3   : >> { %v3657_v15 = vpop.eup %3656 }
 0xca4   : >> { %v3133_v17 = vcombine.low %v3655_v14, %v3657_v15 }
 0xca6   : >> { %v3140_v59 = vrot.slane %v3133_v17, %v4459_v46 }
 0xca8   : >> { %v3142_v35 = vmul.f32 %v3140_v59, %v4678_v40 }
 0xcaa   : >> { %v3156_v10 = vadd.f32 %v3524_v12, %v3142_v35  ;;  %285 = sbr.rel (!%p283_p11) target bundleno = 24 (0x18), region = 124 }
 0xcac   : >> { %v3166_v52 = vrot.slane %v3156_v10, %v4734_v7 }
 0xcae   : >> { %3174 = vst.msk [vmem:[%s4742_s13] ss:$4 sm:$0x3] %vm4745_vm1, %v3166_v52  ;;  %s3207_s13 = scalar_lea.sflag (%p283_p11), [#allocation3], %s4901_s8 }
 0xcaf   : > { %3672 = shalt.err (!%p3669_p4)
}
 0xcb0   : > { %s3673_s28 = scalar_lea.hbm %s3219_s17, 512  ;;  %s3677_s20 = scalar_lea.hbm %s4851_s7, 1024 }
 0xcb1   : > { %p3674_p7 = scmp.ne.s32.totalorder %s3219_s17, %s3673_s28  ;;  %p3678_p10 = scmp.lt.s32.totalorder %s3219_s17, %s4851_s7 }
 0xcb2   : > { %p3679_p11 = scmp.lt.s32.totalorder %s3677_s20, %s3673_s28 }
 0xcb3   : > { %p3675_p8 = pnand %p3674_p7, %p3811_p5 }
 0xcb4   : > { %p3680_p12 = por %p3679_p11, %p3678_p10 }
 0xcb5   : > { %p3676_p9 = pneg %p3675_p8 }
 0xcb7   : > { %p3681_p13 = pnand %p3680_p12, %p3676_p9 }
 0xcb9   : > { %3684 = shalt.err (!%p3681_p13)
}
 0xcba   : > { %3534 = dma.vmem_to_hbm [thread:$0]  (%p3811_p5), %s3222_s29, 512, %s3219_s17, %s3207_s13  }
 0xcbb PF: > { %p3540_p0 = scmp.ge.s32.totalorder %s3723_s27, 2  ;;  %s3233_s23 = sand.u32 1, %s3711_s24  }
 0xcbc   : > { %s3234_s18 = scalar_lea.sflag [#allocation3], %s3233_s23 }
 0xcbd   : > { %p3537_p1 = pnand %p3540_p0, %p3815_p6 }
 0xcbf   : > { %p3538_p2 = pneg %p3537_p1 }
 0xcc1   : > { %3706 = dma.done.wait (%p3538_p2), %s3234_s18, 512  }
 0xcc2   : > { %3708 = vsyncadd (%p3538_p2), %s3234_s18, 4294966784  ;;  %p17_p3 = scmp.ge.s32.totalorder %s3798_s30, 4   ;;  %s4902_s24 = smov %s3715_s25 }
 0xcc3   : > { %s4903_s25 = smov %s3719_s26  ;;  %s4904_s26 = smov %s3809_s10 }
 0xcc4   : > { %s4905_s27 = smov %s3798_s30  ;;  %19 = sbr.rel (!%p17_p3) target bundleno = 5 (0x5), region = 135 }
 0xcc9   :  { %3239 = vsyncpa [#allocation3], 1 }
 0xcca   :  { %3241 = vsyncpa [#allocation3 + $0x1], 1 }

</bundles_post_ra>
